<compile_context>
chip_gen: v5e
topology: v5e:2x2
jax: 0.10.0
libtpu: 0.0.40
codegen_flags: <defaults>
</compile_context>

<pallas_src>
import math

import jax
import jax.numpy as jnp
import numpy as np
from jax.experimental import pallas as pl
from jax.experimental.pallas import tpu as pltpu

# ----- config (matches PyTorch module defaults) -----
PATCH_DIM = 49
PATCH_PAD = 64        # zero-padded K dim: aligned loads / clean MXU K tile
EMBED = 32
SEQ = 16              # num_patches
CLASSES = 10
CLASSES_PAD = 128     # lane-dense output block, sliced back outside
HEADS = 4
HEAD_DIM = EMBED // HEADS
LAYERS = 3
FFN = EMBED * 2
EPS = 1e-5            # nn.LayerNorm default eps
TB_MAX = 16           # batch elements per grid step (TB*SEQ = 256 matmul rows)


def _layernorm(x, gamma, beta):
    mu = jnp.mean(x, axis=-1, keepdims=True)
    var = jnp.mean((x - mu) ** 2, axis=-1, keepdims=True)
    return (x - mu) * jax.lax.rsqrt(var + EPS) * gamma + beta


def _bf16(x):
    return x.astype(jnp.bfloat16)


def vit_kernel(x_ref, pos_ref, wpe_ref, bpe_ref,
               wqkv_ref, bqkv_ref, wo_ref, bo_ref,
               w1_ref, b1_ref, w2_ref, b2_ref,
               g1_ref, bt1_ref, g2_ref, bt2_ref,
               wc_ref, bc_ref, out_ref):
    tb = x_ref.shape[0]
    rows = tb * SEQ

    # fold (batch block, seq) into the matmul M dimension
    xp = x_ref[...].reshape(rows, PATCH_PAD)                        # f32

    # patch embedding (bf16 MXU, f32 acc) + sincos positional embedding
    x = jnp.dot(_bf16(xp), wpe_ref[...],
                preferred_element_type=jnp.float32) + bpe_ref[...]
    x = (x.reshape(tb, SEQ, EMBED) + pos_ref[...][None]).reshape(rows, EMBED)

    scale = 1.0 / math.sqrt(HEAD_DIM)
    for l in range(LAYERS):                                         # static unroll
        # ---------- multi-head self-attention block ----------
        res = x
        xn = _layernorm(x, g1_ref[l], bt1_ref[l])                   # f32
        qkv = jnp.dot(_bf16(xn), wqkv_ref[l],
                      preferred_element_type=jnp.float32) + bqkv_ref[l]   # (rows, 3E)
        q = qkv[:, 0 * EMBED:1 * EMBED].reshape(tb, SEQ, EMBED)
        k = qkv[:, 1 * EMBED:2 * EMBED].reshape(tb, SEQ, EMBED)
        v = qkv[:, 2 * EMBED:3 * EMBED].reshape(tb, SEQ, EMBED)

        heads = []
        for h in range(HEADS):                                      # static head slices
            sl = slice(h * HEAD_DIM, (h + 1) * HEAD_DIM)
            qh, kh, vh = q[..., sl], k[..., sl], v[..., sl]
            s = jnp.einsum('bqd,bkd->bqk', _bf16(qh), _bf16(kh),
                           preferred_element_type=jnp.float32) * scale
            s = s - jnp.max(s, axis=-1, keepdims=True)
            p = jnp.exp(s)                                          # f32 softmax
            p = p * pl.reciprocal(jnp.sum(p, axis=-1, keepdims=True), approx=True)
            heads.append(jnp.einsum('bqk,bkd->bqd', _bf16(p), _bf16(vh),
                                    preferred_element_type=jnp.float32))
        o = jnp.concatenate(heads, axis=-1).reshape(rows, EMBED)
        x = res + jnp.dot(_bf16(o), wo_ref[l],
                          preferred_element_type=jnp.float32) + bo_ref[l]

        # ---------- feed-forward block ----------
        res = x
        xn = _layernorm(x, g2_ref[l], bt2_ref[l])
        h1 = jnp.maximum(
            jnp.dot(_bf16(xn), w1_ref[l],
                    preferred_element_type=jnp.float32) + b1_ref[l], 0.0)
        x = res + jnp.dot(_bf16(h1), w2_ref[l],
                          preferred_element_type=jnp.float32) + b2_ref[l]

    # mean-pool over sequence, then classifier head (lane-padded output)
    pooled = jnp.mean(x.reshape(tb, SEQ, EMBED), axis=1)            # (tb, EMBED)
    logits = jnp.dot(_bf16(pooled), wc_ref[...],
                     preferred_element_type=jnp.float32) + bc_ref[...]
    out_ref[...] = logits.astype(out_ref.dtype)                     # (tb, CLASSES_PAD)


def build_sincos_pos_embed(num_patches, embed_dim):
    pos = jnp.arange(num_patches, dtype=jnp.float32)[:, None]
    i = jnp.arange(embed_dim, dtype=jnp.float32)[None, :]
    angle = pos / jnp.power(10000.0, 2.0 * jnp.floor(i / 2.0) / embed_dim)
    even = (jnp.arange(embed_dim) % 2) == 0
    return jnp.where(even[None, :], jnp.sin(angle), jnp.cos(angle))  # (SEQ, EMBED)


def init_params(key):
    ks = jax.random.split(key, 20)
    def w(k, shape, s=0.05):
        return (s * jax.random.normal(k, shape)).astype(jnp.float32)
    return dict(
        pos=build_sincos_pos_embed(SEQ, EMBED).astype(jnp.float32),
        wpe=w(ks[0], (PATCH_DIM, EMBED)),      bpe=w(ks[1], (1, EMBED)),
        wq=w(ks[2], (LAYERS, EMBED, EMBED)),   bq=w(ks[3], (LAYERS, 1, EMBED)),
        wk=w(ks[4], (LAYERS, EMBED, EMBED)),   bk=w(ks[5], (LAYERS, 1, EMBED)),
        wv=w(ks[6], (LAYERS, EMBED, EMBED)),   bv=w(ks[7], (LAYERS, 1, EMBED)),
        wo=w(ks[8], (LAYERS, EMBED, EMBED)),   bo=w(ks[9], (LAYERS, 1, EMBED)),
        w1=w(ks[10], (LAYERS, EMBED, FFN)),    b1=w(ks[11], (LAYERS, 1, FFN)),
        w2=w(ks[12], (LAYERS, FFN, EMBED)),    b2=w(ks[13], (LAYERS, 1, EMBED)),
        g1=jnp.ones((LAYERS, 1, EMBED), jnp.float32),
        bt1=jnp.zeros((LAYERS, 1, EMBED), jnp.float32),
        g2=jnp.ones((LAYERS, 1, EMBED), jnp.float32),
        bt2=jnp.zeros((LAYERS, 1, EMBED), jnp.float32),
        wc=w(ks[14], (EMBED, CLASSES)),        bc=w(ks[15], (1, CLASSES)),
    )


def _fullspec(a):
    nd = a.ndim
    return pl.BlockSpec(a.shape, lambda b, _nd=nd: (0,) * _nd)


def vit_forward(x, params, tb=None):
    B = x.shape[0]
    xf = x.reshape(B, SEQ, PATCH_DIM).astype(jnp.float32)           # flatten(start_dim=2)
    xf = jnp.pad(xf, ((0, 0), (0, 0), (0, PATCH_PAD - PATCH_DIM)))  # K pad 49 -> 64

    if tb is None:
        tb = min(B, TB_MAX)                                         # whole batch when small
    b_pad = pl.cdiv(B, tb) * tb
    if b_pad != B:
        xf = jnp.pad(xf, ((0, b_pad - B), (0, 0), (0, 0)))

    # matmul weight matrices as bf16 (biases / LN params / pos stay f32)
    wpe = jnp.pad(params["wpe"], ((0, PATCH_PAD - PATCH_DIM), (0, 0))).astype(jnp.bfloat16)
    wqkv = jnp.concatenate([params["wq"], params["wk"], params["wv"]],
                           axis=-1).astype(jnp.bfloat16)            # (L, E, 3E)
    bqkv = jnp.concatenate([params["bq"], params["bk"], params["bv"]], axis=-1)
    wc = jnp.pad(params["wc"], ((0, 0), (0, CLASSES_PAD - CLASSES))).astype(jnp.bfloat16)
    bc = jnp.pad(params["bc"], ((0, 0), (0, CLASSES_PAD - CLASSES)))

    ordered = [xf, params["pos"], wpe, params["bpe"],
               wqkv, bqkv, params["wo"].astype(jnp.bfloat16), params["bo"],
               params["w1"].astype(jnp.bfloat16), params["b1"],
               params["w2"].astype(jnp.bfloat16), params["b2"],
               params["g1"], params["bt1"], params["g2"], params["bt2"],
               wc, bc]

    in_specs = [pl.BlockSpec((tb, SEQ, PATCH_PAD), lambda b: (b, 0, 0))]
    in_specs += [_fullspec(a) for a in ordered[1:]]

    out = pl.pallas_call(
        vit_kernel,
        out_shape=jax.ShapeDtypeStruct((b_pad, CLASSES_PAD), jnp.float32),
        grid=(b_pad // tb,),
        in_specs=in_specs,
        out_specs=pl.BlockSpec((tb, CLASSES_PAD), lambda b: (b, 0)),
        # batch blocks are independent -> shard across the two v7x TensorCores;
        # harmless on v5e/v6e (single TC).
        compiler_params=pltpu.CompilerParams(dimension_semantics=("parallel",)),
    )(*ordered)
    return out[:B, :CLASSES]


def vit_reference(x, p):
    """Pure-JAX (f32) reference mirroring the PyTorch forward."""
    B = x.shape[0]
    xf = x.reshape(B, SEQ, PATCH_DIM).astype(jnp.float32)
    h = jnp.einsum('bsp,pe->bse', xf, p["wpe"]) + p["bpe"][0]
    h = h + p["pos"][None]
    scale = 1.0 / (HEAD_DIM ** 0.5)
    for l in range(LAYERS):
        res = h
        xn = _layernorm(h, p["g1"][l], p["bt1"][l])
        q = jnp.einsum('bse,ef->bsf', xn, p["wq"][l]) + p["bq"][l]
        k = jnp.einsum('bse,ef->bsf', xn, p["wk"][l]) + p["bk"][l]
        v = jnp.einsum('bse,ef->bsf', xn, p["wv"][l]) + p["bv"][l]
        q = q.reshape(B, SEQ, HEADS, HEAD_DIM).transpose(0, 2, 1, 3)
        k = k.reshape(B, SEQ, HEADS, HEAD_DIM).transpose(0, 2, 1, 3)
        v = v.reshape(B, SEQ, HEADS, HEAD_DIM).transpose(0, 2, 1, 3)
        s = jnp.einsum('bhqd,bhkd->bhqk', q, k) * scale
        a = jax.nn.softmax(s, axis=-1)
        o = jnp.einsum('bhqk,bhkd->bhqd', a, v).transpose(0, 2, 1, 3).reshape(B, SEQ, EMBED)
        h = res + jnp.einsum('bse,ef->bsf', o, p["wo"][l]) + p["bo"][l]
        res = h
        xn = _layernorm(h, p["g2"][l], p["bt2"][l])
        f1 = jax.nn.relu(jnp.einsum('bse,ef->bsf', xn, p["w1"][l]) + p["b1"][l])
        h = res + jnp.einsum('bsf,fe->bse', f1, p["w2"][l]) + p["b2"][l]
    pooled = jnp.mean(h, axis=1)
    return pooled @ p["wc"] + p["bc"][0]


if __name__ == "__main__":
    key = jax.random.PRNGKey(0)
    k_in, k_par = jax.random.split(key)
    # input: [batch=2, num_patches=16, 7, 7]  (flatten -> patch_dim=49)
    x = jax.random.normal(k_in, (2, SEQ, 7, 7), dtype=jnp.float32)
    params = init_params(k_par)

    logits = vit_forward(x, params)
    jax.block_until_ready(logits)

    ref = vit_reference(x, params)
    # bf16 MXU operands (f32 accumulation) + approx reciprocal -> bf16-level tolerance
    np.testing.assert_allclose(np.asarray(logits), np.asarray(ref), rtol=2e-2, atol=2e-2)

    assert logits.shape == (2, CLASSES)
    print("KERNEL_OK")
</pallas_src>

<mosaic_0001>
module attributes {stable_mosaic.version = 11 : i64} {
  func.func @vit_kernel(%arg0: i32, %arg1: memref<2x16x64xf32, #tpu.memory_space<vmem>>, %arg2: memref<16x32xf32, #tpu.memory_space<vmem>>, %arg3: memref<64x32xbf16, #tpu.memory_space<vmem>>, %arg4: memref<1x32xf32, #tpu.memory_space<vmem>>, %arg5: memref<3x32x96xbf16, #tpu.memory_space<vmem>>, %arg6: memref<3x1x96xf32, #tpu.memory_space<vmem>>, %arg7: memref<3x32x32xbf16, #tpu.memory_space<vmem>>, %arg8: memref<3x1x32xf32, #tpu.memory_space<vmem>>, %arg9: memref<3x32x64xbf16, #tpu.memory_space<vmem>>, %arg10: memref<3x1x64xf32, #tpu.memory_space<vmem>>, %arg11: memref<3x64x32xbf16, #tpu.memory_space<vmem>>, %arg12: memref<3x1x32xf32, #tpu.memory_space<vmem>>, %arg13: memref<3x1x32xf32, #tpu.memory_space<vmem>>, %arg14: memref<3x1x32xf32, #tpu.memory_space<vmem>>, %arg15: memref<3x1x32xf32, #tpu.memory_space<vmem>>, %arg16: memref<3x1x32xf32, #tpu.memory_space<vmem>>, %arg17: memref<32x128xbf16, #tpu.memory_space<vmem>>, %arg18: memref<1x128xf32, #tpu.memory_space<vmem>>, %arg19: memref<2x128xf32, #tpu.memory_space<vmem>>) attributes {dimension_semantics = [#tpu.dimension_semantics<parallel>], iteration_bounds = array<i64: 1>, scalar_prefetch = 0 : i64, scratch_operands = 0 : i64, tpu.core_type = #tpu.core_type<tc>, window_params = [{transform_indices = @transform_0, window_bounds = array<i64: 2, 16, 64>}, {pipeline_mode = #tpu.pipeline_mode<synchronous>, transform_indices = @transform_1, window_bounds = array<i64: 16, 32>}, {pipeline_mode = #tpu.pipeline_mode<synchronous>, transform_indices = @transform_2, window_bounds = array<i64: 64, 32>}, {pipeline_mode = #tpu.pipeline_mode<synchronous>, transform_indices = @transform_3, window_bounds = array<i64: 1, 32>}, {pipeline_mode = #tpu.pipeline_mode<synchronous>, transform_indices = @transform_4, window_bounds = array<i64: 3, 32, 96>}, {pipeline_mode = #tpu.pipeline_mode<synchronous>, transform_indices = @transform_5, window_bounds = array<i64: 3, 1, 96>}, {pipeline_mode = #tpu.pipeline_mode<synchronous>, transform_indices = @transform_6, window_bounds = array<i64: 3, 32, 32>}, {pipeline_mode = #tpu.pipeline_mode<synchronous>, transform_indices = @transform_7, window_bounds = array<i64: 3, 1, 32>}, {pipeline_mode = #tpu.pipeline_mode<synchronous>, transform_indices = @transform_8, window_bounds = array<i64: 3, 32, 64>}, {pipeline_mode = #tpu.pipeline_mode<synchronous>, transform_indices = @transform_9, window_bounds = array<i64: 3, 1, 64>}, {pipeline_mode = #tpu.pipeline_mode<synchronous>, transform_indices = @transform_10, window_bounds = array<i64: 3, 64, 32>}, {pipeline_mode = #tpu.pipeline_mode<synchronous>, transform_indices = @transform_11, window_bounds = array<i64: 3, 1, 32>}, {pipeline_mode = #tpu.pipeline_mode<synchronous>, transform_indices = @transform_12, window_bounds = array<i64: 3, 1, 32>}, {pipeline_mode = #tpu.pipeline_mode<synchronous>, transform_indices = @transform_13, window_bounds = array<i64: 3, 1, 32>}, {pipeline_mode = #tpu.pipeline_mode<synchronous>, transform_indices = @transform_14, window_bounds = array<i64: 3, 1, 32>}, {pipeline_mode = #tpu.pipeline_mode<synchronous>, transform_indices = @transform_15, window_bounds = array<i64: 3, 1, 32>}, {pipeline_mode = #tpu.pipeline_mode<synchronous>, transform_indices = @transform_16, window_bounds = array<i64: 32, 128>}, {pipeline_mode = #tpu.pipeline_mode<synchronous>, transform_indices = @transform_17, window_bounds = array<i64: 1, 128>}, {transform_indices = @transform_18, window_bounds = array<i64: 2, 128>}]} {
    %c0 = arith.constant 0 : index
    %c0_0 = arith.constant 0 : index
    %c0_1 = arith.constant 0 : index
    %0 = vector.load %arg1[%c0, %c0_0, %c0_1] : memref<2x16x64xf32, #tpu.memory_space<vmem>>, vector<2x16x64xf32>
    %1 = vector.shape_cast %0 : vector<2x16x64xf32> to vector<32x64xf32>
    %2 = arith.truncf %1 : vector<32x64xf32> to vector<32x64xbf16>
    %c0_2 = arith.constant 0 : index
    %c0_3 = arith.constant 0 : index
    %3 = vector.load %arg3[%c0_2, %c0_3] : memref<64x32xbf16, #tpu.memory_space<vmem>>, vector<64x32xbf16>
    %cst = arith.constant dense<0.000000e+00> : vector<32x32xf32>
    %4 = tpu.matmul %2, %3, %cst {dimension_numbers = #tpu.dot_dimension_numbers<[1], [0], [0], [1], [0, 0, 1, 1], [], []>} : vector<32x64xbf16>, vector<64x32xbf16>, vector<32x32xf32> -> vector<32x32xf32>
    %c0_4 = arith.constant 0 : index
    %c0_5 = arith.constant 0 : index
    %5 = vector.load %arg4[%c0_4, %c0_5] : memref<1x32xf32, #tpu.memory_space<vmem>>, vector<1x32xf32>
    %6 = vector.broadcast %5 : vector<1x32xf32> to vector<32x32xf32>
    %7 = arith.addf %4, %6 : vector<32x32xf32>
    %8 = vector.shape_cast %7 : vector<32x32xf32> to vector<2x16x32xf32>
    %c0_6 = arith.constant 0 : index
    %c0_7 = arith.constant 0 : index
    %9 = vector.load %arg2[%c0_6, %c0_7] : memref<16x32xf32, #tpu.memory_space<vmem>>, vector<16x32xf32>
    %10 = vector.shape_cast %9 : vector<16x32xf32> to vector<1x16x32xf32>
    %11 = vector.broadcast %10 : vector<1x16x32xf32> to vector<2x16x32xf32>
    %12 = arith.addf %8, %11 : vector<2x16x32xf32>
    %13 = vector.shape_cast %12 : vector<2x16x32xf32> to vector<32x32xf32>
    %c0_8 = arith.constant 0 : index
    %c0_9 = arith.constant 0 : index
    %c0_10 = arith.constant 0 : index
    %14 = vector.load %arg13[%c0_8, %c0_9, %c0_10] : memref<3x1x32xf32, #tpu.memory_space<vmem>>, vector<1x1x32xf32>
    %15 = vector.shape_cast %14 : vector<1x1x32xf32> to vector<1x32xf32>
    %c0_11 = arith.constant 0 : index
    %c0_12 = arith.constant 0 : index
    %c0_13 = arith.constant 0 : index
    %16 = vector.load %arg14[%c0_11, %c0_12, %c0_13] : memref<3x1x32xf32, #tpu.memory_space<vmem>>, vector<1x1x32xf32>
    %17 = vector.shape_cast %16 : vector<1x1x32xf32> to vector<1x32xf32>
    %cst_14 = arith.constant dense<0.000000e+00> : vector<32xf32>
    %18 = vector.multi_reduction <add>, %13, %cst_14 [1] : vector<32x32xf32> to vector<32xf32>
    %19 = vector.shape_cast %18 : vector<32xf32> to vector<32x1xf32>
    %cst_15 = arith.constant 3.200000e+01 : f32
    %20 = vector.broadcast %cst_15 : f32 to vector<32x1xf32>
    %21 = arith.divf %19, %20 : vector<32x1xf32>
    %22 = vector.broadcast %21 : vector<32x1xf32> to vector<32x32xf32>
    %23 = arith.subf %13, %22 : vector<32x32xf32>
    %24 = arith.mulf %23, %23 : vector<32x32xf32>
    %cst_16 = arith.constant dense<0.000000e+00> : vector<32xf32>
    %25 = vector.multi_reduction <add>, %24, %cst_16 [1] : vector<32x32xf32> to vector<32xf32>
    %26 = vector.shape_cast %25 : vector<32xf32> to vector<32x1xf32>
    %cst_17 = arith.constant 3.200000e+01 : f32
    %27 = vector.broadcast %cst_17 : f32 to vector<32x1xf32>
    %28 = arith.divf %26, %27 : vector<32x1xf32>
    %29 = vector.broadcast %21 : vector<32x1xf32> to vector<32x32xf32>
    %30 = arith.subf %13, %29 : vector<32x32xf32>
    %cst_18 = arith.constant 9.99999974E-6 : f32
    %31 = vector.broadcast %cst_18 : f32 to vector<32x1xf32>
    %32 = arith.addf %28, %31 : vector<32x1xf32>
    %33 = math.rsqrt %32 : vector<32x1xf32>
    %34 = vector.broadcast %33 : vector<32x1xf32> to vector<32x32xf32>
    %35 = arith.mulf %30, %34 : vector<32x32xf32>
    %36 = vector.broadcast %15 : vector<1x32xf32> to vector<32x32xf32>
    %37 = arith.mulf %35, %36 : vector<32x32xf32>
    %38 = vector.broadcast %17 : vector<1x32xf32> to vector<32x32xf32>
    %39 = arith.addf %37, %38 : vector<32x32xf32>
    %40 = arith.truncf %39 : vector<32x32xf32> to vector<32x32xbf16>
    %c0_19 = arith.constant 0 : index
    %c0_20 = arith.constant 0 : index
    %c0_21 = arith.constant 0 : index
    %41 = vector.load %arg5[%c0_19, %c0_20, %c0_21] : memref<3x32x96xbf16, #tpu.memory_space<vmem>>, vector<1x32x96xbf16>
    %42 = vector.shape_cast %41 : vector<1x32x96xbf16> to vector<32x96xbf16>
    %cst_22 = arith.constant dense<0.000000e+00> : vector<32x96xf32>
    %43 = tpu.matmul %40, %42, %cst_22 {dimension_numbers = #tpu.dot_dimension_numbers<[1], [0], [0], [1], [0, 0, 1, 1], [], []>} : vector<32x32xbf16>, vector<32x96xbf16>, vector<32x96xf32> -> vector<32x96xf32>
    %c0_23 = arith.constant 0 : index
    %c0_24 = arith.constant 0 : index
    %c0_25 = arith.constant 0 : index
    %44 = vector.load %arg6[%c0_23, %c0_24, %c0_25] : memref<3x1x96xf32, #tpu.memory_space<vmem>>, vector<1x1x96xf32>
    %45 = vector.shape_cast %44 : vector<1x1x96xf32> to vector<1x96xf32>
    %46 = vector.broadcast %45 : vector<1x96xf32> to vector<32x96xf32>
    %47 = arith.addf %43, %46 : vector<32x96xf32>
    %48 = vector.extract_strided_slice %47 {offsets = [0, 0], sizes = [32, 32], strides = [1, 1]} : vector<32x96xf32> to vector<32x32xf32>
    %49 = vector.shape_cast %48 : vector<32x32xf32> to vector<2x16x32xf32>
    %50 = vector.extract_strided_slice %47 {offsets = [0, 32], sizes = [32, 32], strides = [1, 1]} : vector<32x96xf32> to vector<32x32xf32>
    %51 = vector.shape_cast %50 : vector<32x32xf32> to vector<2x16x32xf32>
    %52 = vector.extract_strided_slice %47 {offsets = [0, 64], sizes = [32, 32], strides = [1, 1]} : vector<32x96xf32> to vector<32x32xf32>
    %53 = vector.shape_cast %52 : vector<32x32xf32> to vector<2x16x32xf32>
    %54 = vector.extract_strided_slice %49 {offsets = [0, 0, 0], sizes = [2, 16, 8], strides = [1, 1, 1]} : vector<2x16x32xf32> to vector<2x16x8xf32>
    %55 = vector.extract_strided_slice %51 {offsets = [0, 0, 0], sizes = [2, 16, 8], strides = [1, 1, 1]} : vector<2x16x32xf32> to vector<2x16x8xf32>
    %56 = vector.extract_strided_slice %53 {offsets = [0, 0, 0], sizes = [2, 16, 8], strides = [1, 1, 1]} : vector<2x16x32xf32> to vector<2x16x8xf32>
    %57 = arith.truncf %54 : vector<2x16x8xf32> to vector<2x16x8xbf16>
    %58 = arith.truncf %55 : vector<2x16x8xf32> to vector<2x16x8xbf16>
    "tpu.trace_start"() <{level = 10 : i32, message = "bqd,bkd->bqk"}> : () -> ()
    %cst_26 = arith.constant dense<0.000000e+00> : vector<2x16x16xf32>
    %59 = tpu.matmul %57, %58, %cst_26 {dimension_numbers = #tpu.dot_dimension_numbers<[2], [2], [1], [1], [0, 0, 0, 1, 1, 1], [0], [0]>} : vector<2x16x8xbf16>, vector<2x16x8xbf16>, vector<2x16x16xf32> -> vector<2x16x16xf32>
    "tpu.trace_stop"() : () -> ()
    %cst_27 = arith.constant 0.353553385 : f32
    %60 = vector.broadcast %cst_27 : f32 to vector<2x16x16xf32>
    %61 = arith.mulf %59, %60 : vector<2x16x16xf32>
    %cst_28 = arith.constant dense<0xFF800000> : vector<2x16xf32>
    %62 = vector.multi_reduction <maximumf>, %61, %cst_28 [2] : vector<2x16x16xf32> to vector<2x16xf32>
    %63 = vector.shape_cast %62 : vector<2x16xf32> to vector<2x16x1xf32>
    %64 = vector.broadcast %63 : vector<2x16x1xf32> to vector<2x16x16xf32>
    %65 = arith.subf %61, %64 : vector<2x16x16xf32>
    %66 = math.exp %65 : vector<2x16x16xf32>
    %cst_29 = arith.constant dense<0.000000e+00> : vector<2x16xf32>
    %67 = vector.multi_reduction <add>, %66, %cst_29 [2] : vector<2x16x16xf32> to vector<2x16xf32>
    %68 = vector.shape_cast %67 : vector<2x16xf32> to vector<2x16x1xf32>
    %69 = tpu.reciprocal %68 {approx = true} : vector<2x16x1xf32> -> vector<2x16x1xf32>
    %70 = vector.broadcast %69 : vector<2x16x1xf32> to vector<2x16x16xf32>
    %71 = arith.mulf %66, %70 : vector<2x16x16xf32>
    %72 = arith.truncf %71 : vector<2x16x16xf32> to vector<2x16x16xbf16>
    %73 = arith.truncf %56 : vector<2x16x8xf32> to vector<2x16x8xbf16>
    "tpu.trace_start"() <{level = 10 : i32, message = "bqk,bkd->bqd"}> : () -> ()
    %cst_30 = arith.constant dense<0.000000e+00> : vector<2x16x8xf32>
    %74 = tpu.matmul %72, %73, %cst_30 {dimension_numbers = #tpu.dot_dimension_numbers<[2], [1], [1], [2], [0, 0, 0, 1, 1, 2], [0], [0]>} : vector<2x16x16xbf16>, vector<2x16x8xbf16>, vector<2x16x8xf32> -> vector<2x16x8xf32>
    "tpu.trace_stop"() : () -> ()
    %75 = vector.extract_strided_slice %49 {offsets = [0, 0, 8], sizes = [2, 16, 8], strides = [1, 1, 1]} : vector<2x16x32xf32> to vector<2x16x8xf32>
    %76 = vector.extract_strided_slice %51 {offsets = [0, 0, 8], sizes = [2, 16, 8], strides = [1, 1, 1]} : vector<2x16x32xf32> to vector<2x16x8xf32>
    %77 = vector.extract_strided_slice %53 {offsets = [0, 0, 8], sizes = [2, 16, 8], strides = [1, 1, 1]} : vector<2x16x32xf32> to vector<2x16x8xf32>
    %78 = arith.truncf %75 : vector<2x16x8xf32> to vector<2x16x8xbf16>
    %79 = arith.truncf %76 : vector<2x16x8xf32> to vector<2x16x8xbf16>
    "tpu.trace_start"() <{level = 10 : i32, message = "bqd,bkd->bqk"}> : () -> ()
    %cst_31 = arith.constant dense<0.000000e+00> : vector<2x16x16xf32>
    %80 = tpu.matmul %78, %79, %cst_31 {dimension_numbers = #tpu.dot_dimension_numbers<[2], [2], [1], [1], [0, 0, 0, 1, 1, 1], [0], [0]>} : vector<2x16x8xbf16>, vector<2x16x8xbf16>, vector<2x16x16xf32> -> vector<2x16x16xf32>
    "tpu.trace_stop"() : () -> ()
    %cst_32 = arith.constant 0.353553385 : f32
    %81 = vector.broadcast %cst_32 : f32 to vector<2x16x16xf32>
    %82 = arith.mulf %80, %81 : vector<2x16x16xf32>
    %cst_33 = arith.constant dense<0xFF800000> : vector<2x16xf32>
    %83 = vector.multi_reduction <maximumf>, %82, %cst_33 [2] : vector<2x16x16xf32> to vector<2x16xf32>
    %84 = vector.shape_cast %83 : vector<2x16xf32> to vector<2x16x1xf32>
    %85 = vector.broadcast %84 : vector<2x16x1xf32> to vector<2x16x16xf32>
    %86 = arith.subf %82, %85 : vector<2x16x16xf32>
    %87 = math.exp %86 : vector<2x16x16xf32>
    %cst_34 = arith.constant dense<0.000000e+00> : vector<2x16xf32>
    %88 = vector.multi_reduction <add>, %87, %cst_34 [2] : vector<2x16x16xf32> to vector<2x16xf32>
    %89 = vector.shape_cast %88 : vector<2x16xf32> to vector<2x16x1xf32>
    %90 = tpu.reciprocal %89 {approx = true} : vector<2x16x1xf32> -> vector<2x16x1xf32>
    %91 = vector.broadcast %90 : vector<2x16x1xf32> to vector<2x16x16xf32>
    %92 = arith.mulf %87, %91 : vector<2x16x16xf32>
    %93 = arith.truncf %92 : vector<2x16x16xf32> to vector<2x16x16xbf16>
    %94 = arith.truncf %77 : vector<2x16x8xf32> to vector<2x16x8xbf16>
    "tpu.trace_start"() <{level = 10 : i32, message = "bqk,bkd->bqd"}> : () -> ()
    %cst_35 = arith.constant dense<0.000000e+00> : vector<2x16x8xf32>
    %95 = tpu.matmul %93, %94, %cst_35 {dimension_numbers = #tpu.dot_dimension_numbers<[2], [1], [1], [2], [0, 0, 0, 1, 1, 2], [0], [0]>} : vector<2x16x16xbf16>, vector<2x16x8xbf16>, vector<2x16x8xf32> -> vector<2x16x8xf32>
    "tpu.trace_stop"() : () -> ()
    %96 = vector.extract_strided_slice %49 {offsets = [0, 0, 16], sizes = [2, 16, 8], strides = [1, 1, 1]} : vector<2x16x32xf32> to vector<2x16x8xf32>
    %97 = vector.extract_strided_slice %51 {offsets = [0, 0, 16], sizes = [2, 16, 8], strides = [1, 1, 1]} : vector<2x16x32xf32> to vector<2x16x8xf32>
    %98 = vector.extract_strided_slice %53 {offsets = [0, 0, 16], sizes = [2, 16, 8], strides = [1, 1, 1]} : vector<2x16x32xf32> to vector<2x16x8xf32>
    %99 = arith.truncf %96 : vector<2x16x8xf32> to vector<2x16x8xbf16>
    %100 = arith.truncf %97 : vector<2x16x8xf32> to vector<2x16x8xbf16>
    "tpu.trace_start"() <{level = 10 : i32, message = "bqd,bkd->bqk"}> : () -> ()
    %cst_36 = arith.constant dense<0.000000e+00> : vector<2x16x16xf32>
    %101 = tpu.matmul %99, %100, %cst_36 {dimension_numbers = #tpu.dot_dimension_numbers<[2], [2], [1], [1], [0, 0, 0, 1, 1, 1], [0], [0]>} : vector<2x16x8xbf16>, vector<2x16x8xbf16>, vector<2x16x16xf32> -> vector<2x16x16xf32>
    "tpu.trace_stop"() : () -> ()
    %cst_37 = arith.constant 0.353553385 : f32
    %102 = vector.broadcast %cst_37 : f32 to vector<2x16x16xf32>
    %103 = arith.mulf %101, %102 : vector<2x16x16xf32>
    %cst_38 = arith.constant dense<0xFF800000> : vector<2x16xf32>
    %104 = vector.multi_reduction <maximumf>, %103, %cst_38 [2] : vector<2x16x16xf32> to vector<2x16xf32>
    %105 = vector.shape_cast %104 : vector<2x16xf32> to vector<2x16x1xf32>
    %106 = vector.broadcast %105 : vector<2x16x1xf32> to vector<2x16x16xf32>
    %107 = arith.subf %103, %106 : vector<2x16x16xf32>
    %108 = math.exp %107 : vector<2x16x16xf32>
    %cst_39 = arith.constant dense<0.000000e+00> : vector<2x16xf32>
    %109 = vector.multi_reduction <add>, %108, %cst_39 [2] : vector<2x16x16xf32> to vector<2x16xf32>
    %110 = vector.shape_cast %109 : vector<2x16xf32> to vector<2x16x1xf32>
    %111 = tpu.reciprocal %110 {approx = true} : vector<2x16x1xf32> -> vector<2x16x1xf32>
    %112 = vector.broadcast %111 : vector<2x16x1xf32> to vector<2x16x16xf32>
    %113 = arith.mulf %108, %112 : vector<2x16x16xf32>
    %114 = arith.truncf %113 : vector<2x16x16xf32> to vector<2x16x16xbf16>
    %115 = arith.truncf %98 : vector<2x16x8xf32> to vector<2x16x8xbf16>
    "tpu.trace_start"() <{level = 10 : i32, message = "bqk,bkd->bqd"}> : () -> ()
    %cst_40 = arith.constant dense<0.000000e+00> : vector<2x16x8xf32>
    %116 = tpu.matmul %114, %115, %cst_40 {dimension_numbers = #tpu.dot_dimension_numbers<[2], [1], [1], [2], [0, 0, 0, 1, 1, 2], [0], [0]>} : vector<2x16x16xbf16>, vector<2x16x8xbf16>, vector<2x16x8xf32> -> vector<2x16x8xf32>
    "tpu.trace_stop"() : () -> ()
    %117 = vector.extract_strided_slice %49 {offsets = [0, 0, 24], sizes = [2, 16, 8], strides = [1, 1, 1]} : vector<2x16x32xf32> to vector<2x16x8xf32>
    %118 = vector.extract_strided_slice %51 {offsets = [0, 0, 24], sizes = [2, 16, 8], strides = [1, 1, 1]} : vector<2x16x32xf32> to vector<2x16x8xf32>
    %119 = vector.extract_strided_slice %53 {offsets = [0, 0, 24], sizes = [2, 16, 8], strides = [1, 1, 1]} : vector<2x16x32xf32> to vector<2x16x8xf32>
    %120 = arith.truncf %117 : vector<2x16x8xf32> to vector<2x16x8xbf16>
    %121 = arith.truncf %118 : vector<2x16x8xf32> to vector<2x16x8xbf16>
    "tpu.trace_start"() <{level = 10 : i32, message = "bqd,bkd->bqk"}> : () -> ()
    %cst_41 = arith.constant dense<0.000000e+00> : vector<2x16x16xf32>
    %122 = tpu.matmul %120, %121, %cst_41 {dimension_numbers = #tpu.dot_dimension_numbers<[2], [2], [1], [1], [0, 0, 0, 1, 1, 1], [0], [0]>} : vector<2x16x8xbf16>, vector<2x16x8xbf16>, vector<2x16x16xf32> -> vector<2x16x16xf32>
    "tpu.trace_stop"() : () -> ()
    %cst_42 = arith.constant 0.353553385 : f32
    %123 = vector.broadcast %cst_42 : f32 to vector<2x16x16xf32>
    %124 = arith.mulf %122, %123 : vector<2x16x16xf32>
    %cst_43 = arith.constant dense<0xFF800000> : vector<2x16xf32>
    %125 = vector.multi_reduction <maximumf>, %124, %cst_43 [2] : vector<2x16x16xf32> to vector<2x16xf32>
    %126 = vector.shape_cast %125 : vector<2x16xf32> to vector<2x16x1xf32>
    %127 = vector.broadcast %126 : vector<2x16x1xf32> to vector<2x16x16xf32>
    %128 = arith.subf %124, %127 : vector<2x16x16xf32>
    %129 = math.exp %128 : vector<2x16x16xf32>
    %cst_44 = arith.constant dense<0.000000e+00> : vector<2x16xf32>
    %130 = vector.multi_reduction <add>, %129, %cst_44 [2] : vector<2x16x16xf32> to vector<2x16xf32>
    %131 = vector.shape_cast %130 : vector<2x16xf32> to vector<2x16x1xf32>
    %132 = tpu.reciprocal %131 {approx = true} : vector<2x16x1xf32> -> vector<2x16x1xf32>
    %133 = vector.broadcast %132 : vector<2x16x1xf32> to vector<2x16x16xf32>
    %134 = arith.mulf %129, %133 : vector<2x16x16xf32>
    %135 = arith.truncf %134 : vector<2x16x16xf32> to vector<2x16x16xbf16>
    %136 = arith.truncf %119 : vector<2x16x8xf32> to vector<2x16x8xbf16>
    "tpu.trace_start"() <{level = 10 : i32, message = "bqk,bkd->bqd"}> : () -> ()
    %cst_45 = arith.constant dense<0.000000e+00> : vector<2x16x8xf32>
    %137 = tpu.matmul %135, %136, %cst_45 {dimension_numbers = #tpu.dot_dimension_numbers<[2], [1], [1], [2], [0, 0, 0, 1, 1, 2], [0], [0]>} : vector<2x16x16xbf16>, vector<2x16x8xbf16>, vector<2x16x8xf32> -> vector<2x16x8xf32>
    "tpu.trace_stop"() : () -> ()
    %138 = tpu.concatenate %74, %95, %116, %137 in 2 : vector<2x16x8xf32>, vector<2x16x8xf32>, vector<2x16x8xf32>, vector<2x16x8xf32> -> vector<2x16x32xf32>
    %139 = vector.shape_cast %138 : vector<2x16x32xf32> to vector<32x32xf32>
    %140 = arith.truncf %139 : vector<32x32xf32> to vector<32x32xbf16>
    %c0_46 = arith.constant 0 : index
    %c0_47 = arith.constant 0 : index
    %c0_48 = arith.constant 0 : index
    %141 = vector.load %arg7[%c0_46, %c0_47, %c0_48] : memref<3x32x32xbf16, #tpu.memory_space<vmem>>, vector<1x32x32xbf16>
    %142 = vector.shape_cast %141 : vector<1x32x32xbf16> to vector<32x32xbf16>
    %cst_49 = arith.constant dense<0.000000e+00> : vector<32x32xf32>
    %143 = tpu.matmul %140, %142, %cst_49 {dimension_numbers = #tpu.dot_dimension_numbers<[1], [0], [0], [1], [0, 0, 1, 1], [], []>} : vector<32x32xbf16>, vector<32x32xbf16>, vector<32x32xf32> -> vector<32x32xf32>
    %144 = arith.addf %13, %143 : vector<32x32xf32>
    %c0_50 = arith.constant 0 : index
    %c0_51 = arith.constant 0 : index
    %c0_52 = arith.constant 0 : index
    %145 = vector.load %arg8[%c0_50, %c0_51, %c0_52] : memref<3x1x32xf32, #tpu.memory_space<vmem>>, vector<1x1x32xf32>
    %146 = vector.shape_cast %145 : vector<1x1x32xf32> to vector<1x32xf32>
    %147 = vector.broadcast %146 : vector<1x32xf32> to vector<32x32xf32>
    %148 = arith.addf %144, %147 : vector<32x32xf32>
    %c0_53 = arith.constant 0 : index
    %c0_54 = arith.constant 0 : index
    %c0_55 = arith.constant 0 : index
    %149 = vector.load %arg15[%c0_53, %c0_54, %c0_55] : memref<3x1x32xf32, #tpu.memory_space<vmem>>, vector<1x1x32xf32>
    %150 = vector.shape_cast %149 : vector<1x1x32xf32> to vector<1x32xf32>
    %c0_56 = arith.constant 0 : index
    %c0_57 = arith.constant 0 : index
    %c0_58 = arith.constant 0 : index
    %151 = vector.load %arg16[%c0_56, %c0_57, %c0_58] : memref<3x1x32xf32, #tpu.memory_space<vmem>>, vector<1x1x32xf32>
    %152 = vector.shape_cast %151 : vector<1x1x32xf32> to vector<1x32xf32>
    %cst_59 = arith.constant dense<0.000000e+00> : vector<32xf32>
    %153 = vector.multi_reduction <add>, %148, %cst_59 [1] : vector<32x32xf32> to vector<32xf32>
    %154 = vector.shape_cast %153 : vector<32xf32> to vector<32x1xf32>
    %cst_60 = arith.constant 3.200000e+01 : f32
    %155 = vector.broadcast %cst_60 : f32 to vector<32x1xf32>
    %156 = arith.divf %154, %155 : vector<32x1xf32>
    %157 = vector.broadcast %156 : vector<32x1xf32> to vector<32x32xf32>
    %158 = arith.subf %148, %157 : vector<32x32xf32>
    %159 = arith.mulf %158, %158 : vector<32x32xf32>
    %cst_61 = arith.constant dense<0.000000e+00> : vector<32xf32>
    %160 = vector.multi_reduction <add>, %159, %cst_61 [1] : vector<32x32xf32> to vector<32xf32>
    %161 = vector.shape_cast %160 : vector<32xf32> to vector<32x1xf32>
    %cst_62 = arith.constant 3.200000e+01 : f32
    %162 = vector.broadcast %cst_62 : f32 to vector<32x1xf32>
    %163 = arith.divf %161, %162 : vector<32x1xf32>
    %164 = vector.broadcast %156 : vector<32x1xf32> to vector<32x32xf32>
    %165 = arith.subf %148, %164 : vector<32x32xf32>
    %cst_63 = arith.constant 9.99999974E-6 : f32
    %166 = vector.broadcast %cst_63 : f32 to vector<32x1xf32>
    %167 = arith.addf %163, %166 : vector<32x1xf32>
    %168 = math.rsqrt %167 : vector<32x1xf32>
    %169 = vector.broadcast %168 : vector<32x1xf32> to vector<32x32xf32>
    %170 = arith.mulf %165, %169 : vector<32x32xf32>
    %171 = vector.broadcast %150 : vector<1x32xf32> to vector<32x32xf32>
    %172 = arith.mulf %170, %171 : vector<32x32xf32>
    %173 = vector.broadcast %152 : vector<1x32xf32> to vector<32x32xf32>
    %174 = arith.addf %172, %173 : vector<32x32xf32>
    %175 = arith.truncf %174 : vector<32x32xf32> to vector<32x32xbf16>
    %c0_64 = arith.constant 0 : index
    %c0_65 = arith.constant 0 : index
    %c0_66 = arith.constant 0 : index
    %176 = vector.load %arg9[%c0_64, %c0_65, %c0_66] : memref<3x32x64xbf16, #tpu.memory_space<vmem>>, vector<1x32x64xbf16>
    %177 = vector.shape_cast %176 : vector<1x32x64xbf16> to vector<32x64xbf16>
    %cst_67 = arith.constant dense<0.000000e+00> : vector<32x64xf32>
    %178 = tpu.matmul %175, %177, %cst_67 {dimension_numbers = #tpu.dot_dimension_numbers<[1], [0], [0], [1], [0, 0, 1, 1], [], []>} : vector<32x32xbf16>, vector<32x64xbf16>, vector<32x64xf32> -> vector<32x64xf32>
    %c0_68 = arith.constant 0 : index
    %c0_69 = arith.constant 0 : index
    %c0_70 = arith.constant 0 : index
    %179 = vector.load %arg10[%c0_68, %c0_69, %c0_70] : memref<3x1x64xf32, #tpu.memory_space<vmem>>, vector<1x1x64xf32>
    %180 = vector.shape_cast %179 : vector<1x1x64xf32> to vector<1x64xf32>
    %181 = vector.broadcast %180 : vector<1x64xf32> to vector<32x64xf32>
    %182 = arith.addf %178, %181 : vector<32x64xf32>
    %cst_71 = arith.constant 0.000000e+00 : f32
    %183 = vector.broadcast %cst_71 : f32 to vector<32x64xf32>
    %184 = arith.maximumf %182, %183 : vector<32x64xf32>
    %185 = arith.truncf %184 : vector<32x64xf32> to vector<32x64xbf16>
    %c0_72 = arith.constant 0 : index
    %c0_73 = arith.constant 0 : index
    %c0_74 = arith.constant 0 : index
    %186 = vector.load %arg11[%c0_72, %c0_73, %c0_74] : memref<3x64x32xbf16, #tpu.memory_space<vmem>>, vector<1x64x32xbf16>
    %187 = vector.shape_cast %186 : vector<1x64x32xbf16> to vector<64x32xbf16>
    %cst_75 = arith.constant dense<0.000000e+00> : vector<32x32xf32>
    %188 = tpu.matmul %185, %187, %cst_75 {dimension_numbers = #tpu.dot_dimension_numbers<[1], [0], [0], [1], [0, 0, 1, 1], [], []>} : vector<32x64xbf16>, vector<64x32xbf16>, vector<32x32xf32> -> vector<32x32xf32>
    %189 = arith.addf %148, %188 : vector<32x32xf32>
    %c0_76 = arith.constant 0 : index
    %c0_77 = arith.constant 0 : index
    %c0_78 = arith.constant 0 : index
    %190 = vector.load %arg12[%c0_76, %c0_77, %c0_78] : memref<3x1x32xf32, #tpu.memory_space<vmem>>, vector<1x1x32xf32>
    %191 = vector.shape_cast %190 : vector<1x1x32xf32> to vector<1x32xf32>
    %192 = vector.broadcast %191 : vector<1x32xf32> to vector<32x32xf32>
    %193 = arith.addf %189, %192 : vector<32x32xf32>
    %c1 = arith.constant 1 : index
    %c0_79 = arith.constant 0 : index
    %c0_80 = arith.constant 0 : index
    %194 = vector.load %arg13[%c1, %c0_79, %c0_80] : memref<3x1x32xf32, #tpu.memory_space<vmem>>, vector<1x1x32xf32>
    %195 = vector.shape_cast %194 : vector<1x1x32xf32> to vector<1x32xf32>
    %c1_81 = arith.constant 1 : index
    %c0_82 = arith.constant 0 : index
    %c0_83 = arith.constant 0 : index
    %196 = vector.load %arg14[%c1_81, %c0_82, %c0_83] : memref<3x1x32xf32, #tpu.memory_space<vmem>>, vector<1x1x32xf32>
    %197 = vector.shape_cast %196 : vector<1x1x32xf32> to vector<1x32xf32>
    %cst_84 = arith.constant dense<0.000000e+00> : vector<32xf32>
    %198 = vector.multi_reduction <add>, %193, %cst_84 [1] : vector<32x32xf32> to vector<32xf32>
    %199 = vector.shape_cast %198 : vector<32xf32> to vector<32x1xf32>
    %cst_85 = arith.constant 3.200000e+01 : f32
    %200 = vector.broadcast %cst_85 : f32 to vector<32x1xf32>
    %201 = arith.divf %199, %200 : vector<32x1xf32>
    %202 = vector.broadcast %201 : vector<32x1xf32> to vector<32x32xf32>
    %203 = arith.subf %193, %202 : vector<32x32xf32>
    %204 = arith.mulf %203, %203 : vector<32x32xf32>
    %cst_86 = arith.constant dense<0.000000e+00> : vector<32xf32>
    %205 = vector.multi_reduction <add>, %204, %cst_86 [1] : vector<32x32xf32> to vector<32xf32>
    %206 = vector.shape_cast %205 : vector<32xf32> to vector<32x1xf32>
    %cst_87 = arith.constant 3.200000e+01 : f32
    %207 = vector.broadcast %cst_87 : f32 to vector<32x1xf32>
    %208 = arith.divf %206, %207 : vector<32x1xf32>
    %209 = vector.broadcast %201 : vector<32x1xf32> to vector<32x32xf32>
    %210 = arith.subf %193, %209 : vector<32x32xf32>
    %cst_88 = arith.constant 9.99999974E-6 : f32
    %211 = vector.broadcast %cst_88 : f32 to vector<32x1xf32>
    %212 = arith.addf %208, %211 : vector<32x1xf32>
    %213 = math.rsqrt %212 : vector<32x1xf32>
    %214 = vector.broadcast %213 : vector<32x1xf32> to vector<32x32xf32>
    %215 = arith.mulf %210, %214 : vector<32x32xf32>
    %216 = vector.broadcast %195 : vector<1x32xf32> to vector<32x32xf32>
    %217 = arith.mulf %215, %216 : vector<32x32xf32>
    %218 = vector.broadcast %197 : vector<1x32xf32> to vector<32x32xf32>
    %219 = arith.addf %217, %218 : vector<32x32xf32>
    %220 = arith.truncf %219 : vector<32x32xf32> to vector<32x32xbf16>
    %c1_89 = arith.constant 1 : index
    %c0_90 = arith.constant 0 : index
    %c0_91 = arith.constant 0 : index
    %221 = vector.load %arg5[%c1_89, %c0_90, %c0_91] : memref<3x32x96xbf16, #tpu.memory_space<vmem>>, vector<1x32x96xbf16>
    %222 = vector.shape_cast %221 : vector<1x32x96xbf16> to vector<32x96xbf16>
    %cst_92 = arith.constant dense<0.000000e+00> : vector<32x96xf32>
    %223 = tpu.matmul %220, %222, %cst_92 {dimension_numbers = #tpu.dot_dimension_numbers<[1], [0], [0], [1], [0, 0, 1, 1], [], []>} : vector<32x32xbf16>, vector<32x96xbf16>, vector<32x96xf32> -> vector<32x96xf32>
    %c1_93 = arith.constant 1 : index
    %c0_94 = arith.constant 0 : index
    %c0_95 = arith.constant 0 : index
    %224 = vector.load %arg6[%c1_93, %c0_94, %c0_95] : memref<3x1x96xf32, #tpu.memory_space<vmem>>, vector<1x1x96xf32>
    %225 = vector.shape_cast %224 : vector<1x1x96xf32> to vector<1x96xf32>
    %226 = vector.broadcast %225 : vector<1x96xf32> to vector<32x96xf32>
    %227 = arith.addf %223, %226 : vector<32x96xf32>
    %228 = vector.extract_strided_slice %227 {offsets = [0, 0], sizes = [32, 32], strides = [1, 1]} : vector<32x96xf32> to vector<32x32xf32>
    %229 = vector.shape_cast %228 : vector<32x32xf32> to vector<2x16x32xf32>
    %230 = vector.extract_strided_slice %227 {offsets = [0, 32], sizes = [32, 32], strides = [1, 1]} : vector<32x96xf32> to vector<32x32xf32>
    %231 = vector.shape_cast %230 : vector<32x32xf32> to vector<2x16x32xf32>
    %232 = vector.extract_strided_slice %227 {offsets = [0, 64], sizes = [32, 32], strides = [1, 1]} : vector<32x96xf32> to vector<32x32xf32>
    %233 = vector.shape_cast %232 : vector<32x32xf32> to vector<2x16x32xf32>
    %234 = vector.extract_strided_slice %229 {offsets = [0, 0, 0], sizes = [2, 16, 8], strides = [1, 1, 1]} : vector<2x16x32xf32> to vector<2x16x8xf32>
    %235 = vector.extract_strided_slice %231 {offsets = [0, 0, 0], sizes = [2, 16, 8], strides = [1, 1, 1]} : vector<2x16x32xf32> to vector<2x16x8xf32>
    %236 = vector.extract_strided_slice %233 {offsets = [0, 0, 0], sizes = [2, 16, 8], strides = [1, 1, 1]} : vector<2x16x32xf32> to vector<2x16x8xf32>
    %237 = arith.truncf %234 : vector<2x16x8xf32> to vector<2x16x8xbf16>
    %238 = arith.truncf %235 : vector<2x16x8xf32> to vector<2x16x8xbf16>
    "tpu.trace_start"() <{level = 10 : i32, message = "bqd,bkd->bqk"}> : () -> ()
    %cst_96 = arith.constant dense<0.000000e+00> : vector<2x16x16xf32>
    %239 = tpu.matmul %237, %238, %cst_96 {dimension_numbers = #tpu.dot_dimension_numbers<[2], [2], [1], [1], [0, 0, 0, 1, 1, 1], [0], [0]>} : vector<2x16x8xbf16>, vector<2x16x8xbf16>, vector<2x16x16xf32> -> vector<2x16x16xf32>
    "tpu.trace_stop"() : () -> ()
    %cst_97 = arith.constant 0.353553385 : f32
    %240 = vector.broadcast %cst_97 : f32 to vector<2x16x16xf32>
    %241 = arith.mulf %239, %240 : vector<2x16x16xf32>
    %cst_98 = arith.constant dense<0xFF800000> : vector<2x16xf32>
    %242 = vector.multi_reduction <maximumf>, %241, %cst_98 [2] : vector<2x16x16xf32> to vector<2x16xf32>
    %243 = vector.shape_cast %242 : vector<2x16xf32> to vector<2x16x1xf32>
    %244 = vector.broadcast %243 : vector<2x16x1xf32> to vector<2x16x16xf32>
    %245 = arith.subf %241, %244 : vector<2x16x16xf32>
    %246 = math.exp %245 : vector<2x16x16xf32>
    %cst_99 = arith.constant dense<0.000000e+00> : vector<2x16xf32>
    %247 = vector.multi_reduction <add>, %246, %cst_99 [2] : vector<2x16x16xf32> to vector<2x16xf32>
    %248 = vector.shape_cast %247 : vector<2x16xf32> to vector<2x16x1xf32>
    %249 = tpu.reciprocal %248 {approx = true} : vector<2x16x1xf32> -> vector<2x16x1xf32>
    %250 = vector.broadcast %249 : vector<2x16x1xf32> to vector<2x16x16xf32>
    %251 = arith.mulf %246, %250 : vector<2x16x16xf32>
    %252 = arith.truncf %251 : vector<2x16x16xf32> to vector<2x16x16xbf16>
    %253 = arith.truncf %236 : vector<2x16x8xf32> to vector<2x16x8xbf16>
    "tpu.trace_start"() <{level = 10 : i32, message = "bqk,bkd->bqd"}> : () -> ()
    %cst_100 = arith.constant dense<0.000000e+00> : vector<2x16x8xf32>
    %254 = tpu.matmul %252, %253, %cst_100 {dimension_numbers = #tpu.dot_dimension_numbers<[2], [1], [1], [2], [0, 0, 0, 1, 1, 2], [0], [0]>} : vector<2x16x16xbf16>, vector<2x16x8xbf16>, vector<2x16x8xf32> -> vector<2x16x8xf32>
    "tpu.trace_stop"() : () -> ()
    %255 = vector.extract_strided_slice %229 {offsets = [0, 0, 8], sizes = [2, 16, 8], strides = [1, 1, 1]} : vector<2x16x32xf32> to vector<2x16x8xf32>
    %256 = vector.extract_strided_slice %231 {offsets = [0, 0, 8], sizes = [2, 16, 8], strides = [1, 1, 1]} : vector<2x16x32xf32> to vector<2x16x8xf32>
    %257 = vector.extract_strided_slice %233 {offsets = [0, 0, 8], sizes = [2, 16, 8], strides = [1, 1, 1]} : vector<2x16x32xf32> to vector<2x16x8xf32>
    %258 = arith.truncf %255 : vector<2x16x8xf32> to vector<2x16x8xbf16>
    %259 = arith.truncf %256 : vector<2x16x8xf32> to vector<2x16x8xbf16>
    "tpu.trace_start"() <{level = 10 : i32, message = "bqd,bkd->bqk"}> : () -> ()
    %cst_101 = arith.constant dense<0.000000e+00> : vector<2x16x16xf32>
    %260 = tpu.matmul %258, %259, %cst_101 {dimension_numbers = #tpu.dot_dimension_numbers<[2], [2], [1], [1], [0, 0, 0, 1, 1, 1], [0], [0]>} : vector<2x16x8xbf16>, vector<2x16x8xbf16>, vector<2x16x16xf32> -> vector<2x16x16xf32>
    "tpu.trace_stop"() : () -> ()
    %cst_102 = arith.constant 0.353553385 : f32
    %261 = vector.broadcast %cst_102 : f32 to vector<2x16x16xf32>
    %262 = arith.mulf %260, %261 : vector<2x16x16xf32>
    %cst_103 = arith.constant dense<0xFF800000> : vector<2x16xf32>
    %263 = vector.multi_reduction <maximumf>, %262, %cst_103 [2] : vector<2x16x16xf32> to vector<2x16xf32>
    %264 = vector.shape_cast %263 : vector<2x16xf32> to vector<2x16x1xf32>
    %265 = vector.broadcast %264 : vector<2x16x1xf32> to vector<2x16x16xf32>
    %266 = arith.subf %262, %265 : vector<2x16x16xf32>
    %267 = math.exp %266 : vector<2x16x16xf32>
    %cst_104 = arith.constant dense<0.000000e+00> : vector<2x16xf32>
    %268 = vector.multi_reduction <add>, %267, %cst_104 [2] : vector<2x16x16xf32> to vector<2x16xf32>
    %269 = vector.shape_cast %268 : vector<2x16xf32> to vector<2x16x1xf32>
    %270 = tpu.reciprocal %269 {approx = true} : vector<2x16x1xf32> -> vector<2x16x1xf32>
    %271 = vector.broadcast %270 : vector<2x16x1xf32> to vector<2x16x16xf32>
    %272 = arith.mulf %267, %271 : vector<2x16x16xf32>
    %273 = arith.truncf %272 : vector<2x16x16xf32> to vector<2x16x16xbf16>
    %274 = arith.truncf %257 : vector<2x16x8xf32> to vector<2x16x8xbf16>
    "tpu.trace_start"() <{level = 10 : i32, message = "bqk,bkd->bqd"}> : () -> ()
    %cst_105 = arith.constant dense<0.000000e+00> : vector<2x16x8xf32>
    %275 = tpu.matmul %273, %274, %cst_105 {dimension_numbers = #tpu.dot_dimension_numbers<[2], [1], [1], [2], [0, 0, 0, 1, 1, 2], [0], [0]>} : vector<2x16x16xbf16>, vector<2x16x8xbf16>, vector<2x16x8xf32> -> vector<2x16x8xf32>
    "tpu.trace_stop"() : () -> ()
    %276 = vector.extract_strided_slice %229 {offsets = [0, 0, 16], sizes = [2, 16, 8], strides = [1, 1, 1]} : vector<2x16x32xf32> to vector<2x16x8xf32>
    %277 = vector.extract_strided_slice %231 {offsets = [0, 0, 16], sizes = [2, 16, 8], strides = [1, 1, 1]} : vector<2x16x32xf32> to vector<2x16x8xf32>
    %278 = vector.extract_strided_slice %233 {offsets = [0, 0, 16], sizes = [2, 16, 8], strides = [1, 1, 1]} : vector<2x16x32xf32> to vector<2x16x8xf32>
    %279 = arith.truncf %276 : vector<2x16x8xf32> to vector<2x16x8xbf16>
    %280 = arith.truncf %277 : vector<2x16x8xf32> to vector<2x16x8xbf16>
    "tpu.trace_start"() <{level = 10 : i32, message = "bqd,bkd->bqk"}> : () -> ()
    %cst_106 = arith.constant dense<0.000000e+00> : vector<2x16x16xf32>
    %281 = tpu.matmul %279, %280, %cst_106 {dimension_numbers = #tpu.dot_dimension_numbers<[2], [2], [1], [1], [0, 0, 0, 1, 1, 1], [0], [0]>} : vector<2x16x8xbf16>, vector<2x16x8xbf16>, vector<2x16x16xf32> -> vector<2x16x16xf32>
    "tpu.trace_stop"() : () -> ()
    %cst_107 = arith.constant 0.353553385 : f32
    %282 = vector.broadcast %cst_107 : f32 to vector<2x16x16xf32>
    %283 = arith.mulf %281, %282 : vector<2x16x16xf32>
    %cst_108 = arith.constant dense<0xFF800000> : vector<2x16xf32>
    %284 = vector.multi_reduction <maximumf>, %283, %cst_108 [2] : vector<2x16x16xf32> to vector<2x16xf32>
    %285 = vector.shape_cast %284 : vector<2x16xf32> to vector<2x16x1xf32>
    %286 = vector.broadcast %285 : vector<2x16x1xf32> to vector<2x16x16xf32>
    %287 = arith.subf %283, %286 : vector<2x16x16xf32>
    %288 = math.exp %287 : vector<2x16x16xf32>
    %cst_109 = arith.constant dense<0.000000e+00> : vector<2x16xf32>
    %289 = vector.multi_reduction <add>, %288, %cst_109 [2] : vector<2x16x16xf32> to vector<2x16xf32>
    %290 = vector.shape_cast %289 : vector<2x16xf32> to vector<2x16x1xf32>
    %291 = tpu.reciprocal %290 {approx = true} : vector<2x16x1xf32> -> vector<2x16x1xf32>
    %292 = vector.broadcast %291 : vector<2x16x1xf32> to vector<2x16x16xf32>
    %293 = arith.mulf %288, %292 : vector<2x16x16xf32>
    %294 = arith.truncf %293 : vector<2x16x16xf32> to vector<2x16x16xbf16>
    %295 = arith.truncf %278 : vector<2x16x8xf32> to vector<2x16x8xbf16>
    "tpu.trace_start"() <{level = 10 : i32, message = "bqk,bkd->bqd"}> : () -> ()
    %cst_110 = arith.constant dense<0.000000e+00> : vector<2x16x8xf32>
    %296 = tpu.matmul %294, %295, %cst_110 {dimension_numbers = #tpu.dot_dimension_numbers<[2], [1], [1], [2], [0, 0, 0, 1, 1, 2], [0], [0]>} : vector<2x16x16xbf16>, vector<2x16x8xbf16>, vector<2x16x8xf32> -> vector<2x16x8xf32>
    "tpu.trace_stop"() : () -> ()
    %297 = vector.extract_strided_slice %229 {offsets = [0, 0, 24], sizes = [2, 16, 8], strides = [1, 1, 1]} : vector<2x16x32xf32> to vector<2x16x8xf32>
    %298 = vector.extract_strided_slice %231 {offsets = [0, 0, 24], sizes = [2, 16, 8], strides = [1, 1, 1]} : vector<2x16x32xf32> to vector<2x16x8xf32>
    %299 = vector.extract_strided_slice %233 {offsets = [0, 0, 24], sizes = [2, 16, 8], strides = [1, 1, 1]} : vector<2x16x32xf32> to vector<2x16x8xf32>
    %300 = arith.truncf %297 : vector<2x16x8xf32> to vector<2x16x8xbf16>
    %301 = arith.truncf %298 : vector<2x16x8xf32> to vector<2x16x8xbf16>
    "tpu.trace_start"() <{level = 10 : i32, message = "bqd,bkd->bqk"}> : () -> ()
    %cst_111 = arith.constant dense<0.000000e+00> : vector<2x16x16xf32>
    %302 = tpu.matmul %300, %301, %cst_111 {dimension_numbers = #tpu.dot_dimension_numbers<[2], [2], [1], [1], [0, 0, 0, 1, 1, 1], [0], [0]>} : vector<2x16x8xbf16>, vector<2x16x8xbf16>, vector<2x16x16xf32> -> vector<2x16x16xf32>
    "tpu.trace_stop"() : () -> ()
    %cst_112 = arith.constant 0.353553385 : f32
    %303 = vector.broadcast %cst_112 : f32 to vector<2x16x16xf32>
    %304 = arith.mulf %302, %303 : vector<2x16x16xf32>
    %cst_113 = arith.constant dense<0xFF800000> : vector<2x16xf32>
    %305 = vector.multi_reduction <maximumf>, %304, %cst_113 [2] : vector<2x16x16xf32> to vector<2x16xf32>
    %306 = vector.shape_cast %305 : vector<2x16xf32> to vector<2x16x1xf32>
    %307 = vector.broadcast %306 : vector<2x16x1xf32> to vector<2x16x16xf32>
    %308 = arith.subf %304, %307 : vector<2x16x16xf32>
    %309 = math.exp %308 : vector<2x16x16xf32>
    %cst_114 = arith.constant dense<0.000000e+00> : vector<2x16xf32>
    %310 = vector.multi_reduction <add>, %309, %cst_114 [2] : vector<2x16x16xf32> to vector<2x16xf32>
    %311 = vector.shape_cast %310 : vector<2x16xf32> to vector<2x16x1xf32>
    %312 = tpu.reciprocal %311 {approx = true} : vector<2x16x1xf32> -> vector<2x16x1xf32>
    %313 = vector.broadcast %312 : vector<2x16x1xf32> to vector<2x16x16xf32>
    %314 = arith.mulf %309, %313 : vector<2x16x16xf32>
    %315 = arith.truncf %314 : vector<2x16x16xf32> to vector<2x16x16xbf16>
    %316 = arith.truncf %299 : vector<2x16x8xf32> to vector<2x16x8xbf16>
    "tpu.trace_start"() <{level = 10 : i32, message = "bqk,bkd->bqd"}> : () -> ()
    %cst_115 = arith.constant dense<0.000000e+00> : vector<2x16x8xf32>
    %317 = tpu.matmul %315, %316, %cst_115 {dimension_numbers = #tpu.dot_dimension_numbers<[2], [1], [1], [2], [0, 0, 0, 1, 1, 2], [0], [0]>} : vector<2x16x16xbf16>, vector<2x16x8xbf16>, vector<2x16x8xf32> -> vector<2x16x8xf32>
    "tpu.trace_stop"() : () -> ()
    %318 = tpu.concatenate %254, %275, %296, %317 in 2 : vector<2x16x8xf32>, vector<2x16x8xf32>, vector<2x16x8xf32>, vector<2x16x8xf32> -> vector<2x16x32xf32>
    %319 = vector.shape_cast %318 : vector<2x16x32xf32> to vector<32x32xf32>
    %320 = arith.truncf %319 : vector<32x32xf32> to vector<32x32xbf16>
    %c1_116 = arith.constant 1 : index
    %c0_117 = arith.constant 0 : index
    %c0_118 = arith.constant 0 : index
    %321 = vector.load %arg7[%c1_116, %c0_117, %c0_118] : memref<3x32x32xbf16, #tpu.memory_space<vmem>>, vector<1x32x32xbf16>
    %322 = vector.shape_cast %321 : vector<1x32x32xbf16> to vector<32x32xbf16>
    %cst_119 = arith.constant dense<0.000000e+00> : vector<32x32xf32>
    %323 = tpu.matmul %320, %322, %cst_119 {dimension_numbers = #tpu.dot_dimension_numbers<[1], [0], [0], [1], [0, 0, 1, 1], [], []>} : vector<32x32xbf16>, vector<32x32xbf16>, vector<32x32xf32> -> vector<32x32xf32>
    %324 = arith.addf %193, %323 : vector<32x32xf32>
    %c1_120 = arith.constant 1 : index
    %c0_121 = arith.constant 0 : index
    %c0_122 = arith.constant 0 : index
    %325 = vector.load %arg8[%c1_120, %c0_121, %c0_122] : memref<3x1x32xf32, #tpu.memory_space<vmem>>, vector<1x1x32xf32>
    %326 = vector.shape_cast %325 : vector<1x1x32xf32> to vector<1x32xf32>
    %327 = vector.broadcast %326 : vector<1x32xf32> to vector<32x32xf32>
    %328 = arith.addf %324, %327 : vector<32x32xf32>
    %c1_123 = arith.constant 1 : index
    %c0_124 = arith.constant 0 : index
    %c0_125 = arith.constant 0 : index
    %329 = vector.load %arg15[%c1_123, %c0_124, %c0_125] : memref<3x1x32xf32, #tpu.memory_space<vmem>>, vector<1x1x32xf32>
    %330 = vector.shape_cast %329 : vector<1x1x32xf32> to vector<1x32xf32>
    %c1_126 = arith.constant 1 : index
    %c0_127 = arith.constant 0 : index
    %c0_128 = arith.constant 0 : index
    %331 = vector.load %arg16[%c1_126, %c0_127, %c0_128] : memref<3x1x32xf32, #tpu.memory_space<vmem>>, vector<1x1x32xf32>
    %332 = vector.shape_cast %331 : vector<1x1x32xf32> to vector<1x32xf32>
    %cst_129 = arith.constant dense<0.000000e+00> : vector<32xf32>
    %333 = vector.multi_reduction <add>, %328, %cst_129 [1] : vector<32x32xf32> to vector<32xf32>
    %334 = vector.shape_cast %333 : vector<32xf32> to vector<32x1xf32>
    %cst_130 = arith.constant 3.200000e+01 : f32
    %335 = vector.broadcast %cst_130 : f32 to vector<32x1xf32>
    %336 = arith.divf %334, %335 : vector<32x1xf32>
    %337 = vector.broadcast %336 : vector<32x1xf32> to vector<32x32xf32>
    %338 = arith.subf %328, %337 : vector<32x32xf32>
    %339 = arith.mulf %338, %338 : vector<32x32xf32>
    %cst_131 = arith.constant dense<0.000000e+00> : vector<32xf32>
    %340 = vector.multi_reduction <add>, %339, %cst_131 [1] : vector<32x32xf32> to vector<32xf32>
    %341 = vector.shape_cast %340 : vector<32xf32> to vector<32x1xf32>
    %cst_132 = arith.constant 3.200000e+01 : f32
    %342 = vector.broadcast %cst_132 : f32 to vector<32x1xf32>
    %343 = arith.divf %341, %342 : vector<32x1xf32>
    %344 = vector.broadcast %336 : vector<32x1xf32> to vector<32x32xf32>
    %345 = arith.subf %328, %344 : vector<32x32xf32>
    %cst_133 = arith.constant 9.99999974E-6 : f32
    %346 = vector.broadcast %cst_133 : f32 to vector<32x1xf32>
    %347 = arith.addf %343, %346 : vector<32x1xf32>
    %348 = math.rsqrt %347 : vector<32x1xf32>
    %349 = vector.broadcast %348 : vector<32x1xf32> to vector<32x32xf32>
    %350 = arith.mulf %345, %349 : vector<32x32xf32>
    %351 = vector.broadcast %330 : vector<1x32xf32> to vector<32x32xf32>
    %352 = arith.mulf %350, %351 : vector<32x32xf32>
    %353 = vector.broadcast %332 : vector<1x32xf32> to vector<32x32xf32>
    %354 = arith.addf %352, %353 : vector<32x32xf32>
    %355 = arith.truncf %354 : vector<32x32xf32> to vector<32x32xbf16>
    %c1_134 = arith.constant 1 : index
    %c0_135 = arith.constant 0 : index
    %c0_136 = arith.constant 0 : index
    %356 = vector.load %arg9[%c1_134, %c0_135, %c0_136] : memref<3x32x64xbf16, #tpu.memory_space<vmem>>, vector<1x32x64xbf16>
    %357 = vector.shape_cast %356 : vector<1x32x64xbf16> to vector<32x64xbf16>
    %cst_137 = arith.constant dense<0.000000e+00> : vector<32x64xf32>
    %358 = tpu.matmul %355, %357, %cst_137 {dimension_numbers = #tpu.dot_dimension_numbers<[1], [0], [0], [1], [0, 0, 1, 1], [], []>} : vector<32x32xbf16>, vector<32x64xbf16>, vector<32x64xf32> -> vector<32x64xf32>
    %c1_138 = arith.constant 1 : index
    %c0_139 = arith.constant 0 : index
    %c0_140 = arith.constant 0 : index
    %359 = vector.load %arg10[%c1_138, %c0_139, %c0_140] : memref<3x1x64xf32, #tpu.memory_space<vmem>>, vector<1x1x64xf32>
    %360 = vector.shape_cast %359 : vector<1x1x64xf32> to vector<1x64xf32>
    %361 = vector.broadcast %360 : vector<1x64xf32> to vector<32x64xf32>
    %362 = arith.addf %358, %361 : vector<32x64xf32>
    %cst_141 = arith.constant 0.000000e+00 : f32
    %363 = vector.broadcast %cst_141 : f32 to vector<32x64xf32>
    %364 = arith.maximumf %362, %363 : vector<32x64xf32>
    %365 = arith.truncf %364 : vector<32x64xf32> to vector<32x64xbf16>
    %c1_142 = arith.constant 1 : index
    %c0_143 = arith.constant 0 : index
    %c0_144 = arith.constant 0 : index
    %366 = vector.load %arg11[%c1_142, %c0_143, %c0_144] : memref<3x64x32xbf16, #tpu.memory_space<vmem>>, vector<1x64x32xbf16>
    %367 = vector.shape_cast %366 : vector<1x64x32xbf16> to vector<64x32xbf16>
    %cst_145 = arith.constant dense<0.000000e+00> : vector<32x32xf32>
    %368 = tpu.matmul %365, %367, %cst_145 {dimension_numbers = #tpu.dot_dimension_numbers<[1], [0], [0], [1], [0, 0, 1, 1], [], []>} : vector<32x64xbf16>, vector<64x32xbf16>, vector<32x32xf32> -> vector<32x32xf32>
    %369 = arith.addf %328, %368 : vector<32x32xf32>
    %c1_146 = arith.constant 1 : index
    %c0_147 = arith.constant 0 : index
    %c0_148 = arith.constant 0 : index
    %370 = vector.load %arg12[%c1_146, %c0_147, %c0_148] : memref<3x1x32xf32, #tpu.memory_space<vmem>>, vector<1x1x32xf32>
    %371 = vector.shape_cast %370 : vector<1x1x32xf32> to vector<1x32xf32>
    %372 = vector.broadcast %371 : vector<1x32xf32> to vector<32x32xf32>
    %373 = arith.addf %369, %372 : vector<32x32xf32>
    %c2 = arith.constant 2 : index
    %c0_149 = arith.constant 0 : index
    %c0_150 = arith.constant 0 : index
    %374 = vector.load %arg13[%c2, %c0_149, %c0_150] : memref<3x1x32xf32, #tpu.memory_space<vmem>>, vector<1x1x32xf32>
    %375 = vector.shape_cast %374 : vector<1x1x32xf32> to vector<1x32xf32>
    %c2_151 = arith.constant 2 : index
    %c0_152 = arith.constant 0 : index
    %c0_153 = arith.constant 0 : index
    %376 = vector.load %arg14[%c2_151, %c0_152, %c0_153] : memref<3x1x32xf32, #tpu.memory_space<vmem>>, vector<1x1x32xf32>
    %377 = vector.shape_cast %376 : vector<1x1x32xf32> to vector<1x32xf32>
    %cst_154 = arith.constant dense<0.000000e+00> : vector<32xf32>
    %378 = vector.multi_reduction <add>, %373, %cst_154 [1] : vector<32x32xf32> to vector<32xf32>
    %379 = vector.shape_cast %378 : vector<32xf32> to vector<32x1xf32>
    %cst_155 = arith.constant 3.200000e+01 : f32
    %380 = vector.broadcast %cst_155 : f32 to vector<32x1xf32>
    %381 = arith.divf %379, %380 : vector<32x1xf32>
    %382 = vector.broadcast %381 : vector<32x1xf32> to vector<32x32xf32>
    %383 = arith.subf %373, %382 : vector<32x32xf32>
    %384 = arith.mulf %383, %383 : vector<32x32xf32>
    %cst_156 = arith.constant dense<0.000000e+00> : vector<32xf32>
    %385 = vector.multi_reduction <add>, %384, %cst_156 [1] : vector<32x32xf32> to vector<32xf32>
    %386 = vector.shape_cast %385 : vector<32xf32> to vector<32x1xf32>
    %cst_157 = arith.constant 3.200000e+01 : f32
    %387 = vector.broadcast %cst_157 : f32 to vector<32x1xf32>
    %388 = arith.divf %386, %387 : vector<32x1xf32>
    %389 = vector.broadcast %381 : vector<32x1xf32> to vector<32x32xf32>
    %390 = arith.subf %373, %389 : vector<32x32xf32>
    %cst_158 = arith.constant 9.99999974E-6 : f32
    %391 = vector.broadcast %cst_158 : f32 to vector<32x1xf32>
    %392 = arith.addf %388, %391 : vector<32x1xf32>
    %393 = math.rsqrt %392 : vector<32x1xf32>
    %394 = vector.broadcast %393 : vector<32x1xf32> to vector<32x32xf32>
    %395 = arith.mulf %390, %394 : vector<32x32xf32>
    %396 = vector.broadcast %375 : vector<1x32xf32> to vector<32x32xf32>
    %397 = arith.mulf %395, %396 : vector<32x32xf32>
    %398 = vector.broadcast %377 : vector<1x32xf32> to vector<32x32xf32>
    %399 = arith.addf %397, %398 : vector<32x32xf32>
    %400 = arith.truncf %399 : vector<32x32xf32> to vector<32x32xbf16>
    %c2_159 = arith.constant 2 : index
    %c0_160 = arith.constant 0 : index
    %c0_161 = arith.constant 0 : index
    %401 = vector.load %arg5[%c2_159, %c0_160, %c0_161] : memref<3x32x96xbf16, #tpu.memory_space<vmem>>, vector<1x32x96xbf16>
    %402 = vector.shape_cast %401 : vector<1x32x96xbf16> to vector<32x96xbf16>
    %cst_162 = arith.constant dense<0.000000e+00> : vector<32x96xf32>
    %403 = tpu.matmul %400, %402, %cst_162 {dimension_numbers = #tpu.dot_dimension_numbers<[1], [0], [0], [1], [0, 0, 1, 1], [], []>} : vector<32x32xbf16>, vector<32x96xbf16>, vector<32x96xf32> -> vector<32x96xf32>
    %c2_163 = arith.constant 2 : index
    %c0_164 = arith.constant 0 : index
    %c0_165 = arith.constant 0 : index
    %404 = vector.load %arg6[%c2_163, %c0_164, %c0_165] : memref<3x1x96xf32, #tpu.memory_space<vmem>>, vector<1x1x96xf32>
    %405 = vector.shape_cast %404 : vector<1x1x96xf32> to vector<1x96xf32>
    %406 = vector.broadcast %405 : vector<1x96xf32> to vector<32x96xf32>
    %407 = arith.addf %403, %406 : vector<32x96xf32>
    %408 = vector.extract_strided_slice %407 {offsets = [0, 0], sizes = [32, 32], strides = [1, 1]} : vector<32x96xf32> to vector<32x32xf32>
    %409 = vector.shape_cast %408 : vector<32x32xf32> to vector<2x16x32xf32>
    %410 = vector.extract_strided_slice %407 {offsets = [0, 32], sizes = [32, 32], strides = [1, 1]} : vector<32x96xf32> to vector<32x32xf32>
    %411 = vector.shape_cast %410 : vector<32x32xf32> to vector<2x16x32xf32>
    %412 = vector.extract_strided_slice %407 {offsets = [0, 64], sizes = [32, 32], strides = [1, 1]} : vector<32x96xf32> to vector<32x32xf32>
    %413 = vector.shape_cast %412 : vector<32x32xf32> to vector<2x16x32xf32>
    %414 = vector.extract_strided_slice %409 {offsets = [0, 0, 0], sizes = [2, 16, 8], strides = [1, 1, 1]} : vector<2x16x32xf32> to vector<2x16x8xf32>
    %415 = vector.extract_strided_slice %411 {offsets = [0, 0, 0], sizes = [2, 16, 8], strides = [1, 1, 1]} : vector<2x16x32xf32> to vector<2x16x8xf32>
    %416 = vector.extract_strided_slice %413 {offsets = [0, 0, 0], sizes = [2, 16, 8], strides = [1, 1, 1]} : vector<2x16x32xf32> to vector<2x16x8xf32>
    %417 = arith.truncf %414 : vector<2x16x8xf32> to vector<2x16x8xbf16>
    %418 = arith.truncf %415 : vector<2x16x8xf32> to vector<2x16x8xbf16>
    "tpu.trace_start"() <{level = 10 : i32, message = "bqd,bkd->bqk"}> : () -> ()
    %cst_166 = arith.constant dense<0.000000e+00> : vector<2x16x16xf32>
    %419 = tpu.matmul %417, %418, %cst_166 {dimension_numbers = #tpu.dot_dimension_numbers<[2], [2], [1], [1], [0, 0, 0, 1, 1, 1], [0], [0]>} : vector<2x16x8xbf16>, vector<2x16x8xbf16>, vector<2x16x16xf32> -> vector<2x16x16xf32>
    "tpu.trace_stop"() : () -> ()
    %cst_167 = arith.constant 0.353553385 : f32
    %420 = vector.broadcast %cst_167 : f32 to vector<2x16x16xf32>
    %421 = arith.mulf %419, %420 : vector<2x16x16xf32>
    %cst_168 = arith.constant dense<0xFF800000> : vector<2x16xf32>
    %422 = vector.multi_reduction <maximumf>, %421, %cst_168 [2] : vector<2x16x16xf32> to vector<2x16xf32>
    %423 = vector.shape_cast %422 : vector<2x16xf32> to vector<2x16x1xf32>
    %424 = vector.broadcast %423 : vector<2x16x1xf32> to vector<2x16x16xf32>
    %425 = arith.subf %421, %424 : vector<2x16x16xf32>
    %426 = math.exp %425 : vector<2x16x16xf32>
    %cst_169 = arith.constant dense<0.000000e+00> : vector<2x16xf32>
    %427 = vector.multi_reduction <add>, %426, %cst_169 [2] : vector<2x16x16xf32> to vector<2x16xf32>
    %428 = vector.shape_cast %427 : vector<2x16xf32> to vector<2x16x1xf32>
    %429 = tpu.reciprocal %428 {approx = true} : vector<2x16x1xf32> -> vector<2x16x1xf32>
    %430 = vector.broadcast %429 : vector<2x16x1xf32> to vector<2x16x16xf32>
    %431 = arith.mulf %426, %430 : vector<2x16x16xf32>
    %432 = arith.truncf %431 : vector<2x16x16xf32> to vector<2x16x16xbf16>
    %433 = arith.truncf %416 : vector<2x16x8xf32> to vector<2x16x8xbf16>
    "tpu.trace_start"() <{level = 10 : i32, message = "bqk,bkd->bqd"}> : () -> ()
    %cst_170 = arith.constant dense<0.000000e+00> : vector<2x16x8xf32>
    %434 = tpu.matmul %432, %433, %cst_170 {dimension_numbers = #tpu.dot_dimension_numbers<[2], [1], [1], [2], [0, 0, 0, 1, 1, 2], [0], [0]>} : vector<2x16x16xbf16>, vector<2x16x8xbf16>, vector<2x16x8xf32> -> vector<2x16x8xf32>
    "tpu.trace_stop"() : () -> ()
    %435 = vector.extract_strided_slice %409 {offsets = [0, 0, 8], sizes = [2, 16, 8], strides = [1, 1, 1]} : vector<2x16x32xf32> to vector<2x16x8xf32>
    %436 = vector.extract_strided_slice %411 {offsets = [0, 0, 8], sizes = [2, 16, 8], strides = [1, 1, 1]} : vector<2x16x32xf32> to vector<2x16x8xf32>
    %437 = vector.extract_strided_slice %413 {offsets = [0, 0, 8], sizes = [2, 16, 8], strides = [1, 1, 1]} : vector<2x16x32xf32> to vector<2x16x8xf32>
    %438 = arith.truncf %435 : vector<2x16x8xf32> to vector<2x16x8xbf16>
    %439 = arith.truncf %436 : vector<2x16x8xf32> to vector<2x16x8xbf16>
    "tpu.trace_start"() <{level = 10 : i32, message = "bqd,bkd->bqk"}> : () -> ()
    %cst_171 = arith.constant dense<0.000000e+00> : vector<2x16x16xf32>
    %440 = tpu.matmul %438, %439, %cst_171 {dimension_numbers = #tpu.dot_dimension_numbers<[2], [2], [1], [1], [0, 0, 0, 1, 1, 1], [0], [0]>} : vector<2x16x8xbf16>, vector<2x16x8xbf16>, vector<2x16x16xf32> -> vector<2x16x16xf32>
    "tpu.trace_stop"() : () -> ()
    %cst_172 = arith.constant 0.353553385 : f32
    %441 = vector.broadcast %cst_172 : f32 to vector<2x16x16xf32>
    %442 = arith.mulf %440, %441 : vector<2x16x16xf32>
    %cst_173 = arith.constant dense<0xFF800000> : vector<2x16xf32>
    %443 = vector.multi_reduction <maximumf>, %442, %cst_173 [2] : vector<2x16x16xf32> to vector<2x16xf32>
    %444 = vector.shape_cast %443 : vector<2x16xf32> to vector<2x16x1xf32>
    %445 = vector.broadcast %444 : vector<2x16x1xf32> to vector<2x16x16xf32>
    %446 = arith.subf %442, %445 : vector<2x16x16xf32>
    %447 = math.exp %446 : vector<2x16x16xf32>
    %cst_174 = arith.constant dense<0.000000e+00> : vector<2x16xf32>
    %448 = vector.multi_reduction <add>, %447, %cst_174 [2] : vector<2x16x16xf32> to vector<2x16xf32>
    %449 = vector.shape_cast %448 : vector<2x16xf32> to vector<2x16x1xf32>
    %450 = tpu.reciprocal %449 {approx = true} : vector<2x16x1xf32> -> vector<2x16x1xf32>
    %451 = vector.broadcast %450 : vector<2x16x1xf32> to vector<2x16x16xf32>
    %452 = arith.mulf %447, %451 : vector<2x16x16xf32>
    %453 = arith.truncf %452 : vector<2x16x16xf32> to vector<2x16x16xbf16>
    %454 = arith.truncf %437 : vector<2x16x8xf32> to vector<2x16x8xbf16>
    "tpu.trace_start"() <{level = 10 : i32, message = "bqk,bkd->bqd"}> : () -> ()
    %cst_175 = arith.constant dense<0.000000e+00> : vector<2x16x8xf32>
    %455 = tpu.matmul %453, %454, %cst_175 {dimension_numbers = #tpu.dot_dimension_numbers<[2], [1], [1], [2], [0, 0, 0, 1, 1, 2], [0], [0]>} : vector<2x16x16xbf16>, vector<2x16x8xbf16>, vector<2x16x8xf32> -> vector<2x16x8xf32>
    "tpu.trace_stop"() : () -> ()
    %456 = vector.extract_strided_slice %409 {offsets = [0, 0, 16], sizes = [2, 16, 8], strides = [1, 1, 1]} : vector<2x16x32xf32> to vector<2x16x8xf32>
    %457 = vector.extract_strided_slice %411 {offsets = [0, 0, 16], sizes = [2, 16, 8], strides = [1, 1, 1]} : vector<2x16x32xf32> to vector<2x16x8xf32>
    %458 = vector.extract_strided_slice %413 {offsets = [0, 0, 16], sizes = [2, 16, 8], strides = [1, 1, 1]} : vector<2x16x32xf32> to vector<2x16x8xf32>
    %459 = arith.truncf %456 : vector<2x16x8xf32> to vector<2x16x8xbf16>
    %460 = arith.truncf %457 : vector<2x16x8xf32> to vector<2x16x8xbf16>
    "tpu.trace_start"() <{level = 10 : i32, message = "bqd,bkd->bqk"}> : () -> ()
    %cst_176 = arith.constant dense<0.000000e+00> : vector<2x16x16xf32>
    %461 = tpu.matmul %459, %460, %cst_176 {dimension_numbers = #tpu.dot_dimension_numbers<[2], [2], [1], [1], [0, 0, 0, 1, 1, 1], [0], [0]>} : vector<2x16x8xbf16>, vector<2x16x8xbf16>, vector<2x16x16xf32> -> vector<2x16x16xf32>
    "tpu.trace_stop"() : () -> ()
    %cst_177 = arith.constant 0.353553385 : f32
    %462 = vector.broadcast %cst_177 : f32 to vector<2x16x16xf32>
    %463 = arith.mulf %461, %462 : vector<2x16x16xf32>
    %cst_178 = arith.constant dense<0xFF800000> : vector<2x16xf32>
    %464 = vector.multi_reduction <maximumf>, %463, %cst_178 [2] : vector<2x16x16xf32> to vector<2x16xf32>
    %465 = vector.shape_cast %464 : vector<2x16xf32> to vector<2x16x1xf32>
    %466 = vector.broadcast %465 : vector<2x16x1xf32> to vector<2x16x16xf32>
    %467 = arith.subf %463, %466 : vector<2x16x16xf32>
    %468 = math.exp %467 : vector<2x16x16xf32>
    %cst_179 = arith.constant dense<0.000000e+00> : vector<2x16xf32>
    %469 = vector.multi_reduction <add>, %468, %cst_179 [2] : vector<2x16x16xf32> to vector<2x16xf32>
    %470 = vector.shape_cast %469 : vector<2x16xf32> to vector<2x16x1xf32>
    %471 = tpu.reciprocal %470 {approx = true} : vector<2x16x1xf32> -> vector<2x16x1xf32>
    %472 = vector.broadcast %471 : vector<2x16x1xf32> to vector<2x16x16xf32>
    %473 = arith.mulf %468, %472 : vector<2x16x16xf32>
    %474 = arith.truncf %473 : vector<2x16x16xf32> to vector<2x16x16xbf16>
    %475 = arith.truncf %458 : vector<2x16x8xf32> to vector<2x16x8xbf16>
    "tpu.trace_start"() <{level = 10 : i32, message = "bqk,bkd->bqd"}> : () -> ()
    %cst_180 = arith.constant dense<0.000000e+00> : vector<2x16x8xf32>
    %476 = tpu.matmul %474, %475, %cst_180 {dimension_numbers = #tpu.dot_dimension_numbers<[2], [1], [1], [2], [0, 0, 0, 1, 1, 2], [0], [0]>} : vector<2x16x16xbf16>, vector<2x16x8xbf16>, vector<2x16x8xf32> -> vector<2x16x8xf32>
    "tpu.trace_stop"() : () -> ()
    %477 = vector.extract_strided_slice %409 {offsets = [0, 0, 24], sizes = [2, 16, 8], strides = [1, 1, 1]} : vector<2x16x32xf32> to vector<2x16x8xf32>
    %478 = vector.extract_strided_slice %411 {offsets = [0, 0, 24], sizes = [2, 16, 8], strides = [1, 1, 1]} : vector<2x16x32xf32> to vector<2x16x8xf32>
    %479 = vector.extract_strided_slice %413 {offsets = [0, 0, 24], sizes = [2, 16, 8], strides = [1, 1, 1]} : vector<2x16x32xf32> to vector<2x16x8xf32>
    %480 = arith.truncf %477 : vector<2x16x8xf32> to vector<2x16x8xbf16>
    %481 = arith.truncf %478 : vector<2x16x8xf32> to vector<2x16x8xbf16>
    "tpu.trace_start"() <{level = 10 : i32, message = "bqd,bkd->bqk"}> : () -> ()
    %cst_181 = arith.constant dense<0.000000e+00> : vector<2x16x16xf32>
    %482 = tpu.matmul %480, %481, %cst_181 {dimension_numbers = #tpu.dot_dimension_numbers<[2], [2], [1], [1], [0, 0, 0, 1, 1, 1], [0], [0]>} : vector<2x16x8xbf16>, vector<2x16x8xbf16>, vector<2x16x16xf32> -> vector<2x16x16xf32>
    "tpu.trace_stop"() : () -> ()
    %cst_182 = arith.constant 0.353553385 : f32
    %483 = vector.broadcast %cst_182 : f32 to vector<2x16x16xf32>
    %484 = arith.mulf %482, %483 : vector<2x16x16xf32>
    %cst_183 = arith.constant dense<0xFF800000> : vector<2x16xf32>
    %485 = vector.multi_reduction <maximumf>, %484, %cst_183 [2] : vector<2x16x16xf32> to vector<2x16xf32>
    %486 = vector.shape_cast %485 : vector<2x16xf32> to vector<2x16x1xf32>
    %487 = vector.broadcast %486 : vector<2x16x1xf32> to vector<2x16x16xf32>
    %488 = arith.subf %484, %487 : vector<2x16x16xf32>
    %489 = math.exp %488 : vector<2x16x16xf32>
    %cst_184 = arith.constant dense<0.000000e+00> : vector<2x16xf32>
    %490 = vector.multi_reduction <add>, %489, %cst_184 [2] : vector<2x16x16xf32> to vector<2x16xf32>
    %491 = vector.shape_cast %490 : vector<2x16xf32> to vector<2x16x1xf32>
    %492 = tpu.reciprocal %491 {approx = true} : vector<2x16x1xf32> -> vector<2x16x1xf32>
    %493 = vector.broadcast %492 : vector<2x16x1xf32> to vector<2x16x16xf32>
    %494 = arith.mulf %489, %493 : vector<2x16x16xf32>
    %495 = arith.truncf %494 : vector<2x16x16xf32> to vector<2x16x16xbf16>
    %496 = arith.truncf %479 : vector<2x16x8xf32> to vector<2x16x8xbf16>
    "tpu.trace_start"() <{level = 10 : i32, message = "bqk,bkd->bqd"}> : () -> ()
    %cst_185 = arith.constant dense<0.000000e+00> : vector<2x16x8xf32>
    %497 = tpu.matmul %495, %496, %cst_185 {dimension_numbers = #tpu.dot_dimension_numbers<[2], [1], [1], [2], [0, 0, 0, 1, 1, 2], [0], [0]>} : vector<2x16x16xbf16>, vector<2x16x8xbf16>, vector<2x16x8xf32> -> vector<2x16x8xf32>
    "tpu.trace_stop"() : () -> ()
    %498 = tpu.concatenate %434, %455, %476, %497 in 2 : vector<2x16x8xf32>, vector<2x16x8xf32>, vector<2x16x8xf32>, vector<2x16x8xf32> -> vector<2x16x32xf32>
    %499 = vector.shape_cast %498 : vector<2x16x32xf32> to vector<32x32xf32>
    %500 = arith.truncf %499 : vector<32x32xf32> to vector<32x32xbf16>
    %c2_186 = arith.constant 2 : index
    %c0_187 = arith.constant 0 : index
    %c0_188 = arith.constant 0 : index
    %501 = vector.load %arg7[%c2_186, %c0_187, %c0_188] : memref<3x32x32xbf16, #tpu.memory_space<vmem>>, vector<1x32x32xbf16>
    %502 = vector.shape_cast %501 : vector<1x32x32xbf16> to vector<32x32xbf16>
    %cst_189 = arith.constant dense<0.000000e+00> : vector<32x32xf32>
    %503 = tpu.matmul %500, %502, %cst_189 {dimension_numbers = #tpu.dot_dimension_numbers<[1], [0], [0], [1], [0, 0, 1, 1], [], []>} : vector<32x32xbf16>, vector<32x32xbf16>, vector<32x32xf32> -> vector<32x32xf32>
    %504 = arith.addf %373, %503 : vector<32x32xf32>
    %c2_190 = arith.constant 2 : index
    %c0_191 = arith.constant 0 : index
    %c0_192 = arith.constant 0 : index
    %505 = vector.load %arg8[%c2_190, %c0_191, %c0_192] : memref<3x1x32xf32, #tpu.memory_space<vmem>>, vector<1x1x32xf32>
    %506 = vector.shape_cast %505 : vector<1x1x32xf32> to vector<1x32xf32>
    %507 = vector.broadcast %506 : vector<1x32xf32> to vector<32x32xf32>
    %508 = arith.addf %504, %507 : vector<32x32xf32>
    %c2_193 = arith.constant 2 : index
    %c0_194 = arith.constant 0 : index
    %c0_195 = arith.constant 0 : index
    %509 = vector.load %arg15[%c2_193, %c0_194, %c0_195] : memref<3x1x32xf32, #tpu.memory_space<vmem>>, vector<1x1x32xf32>
    %510 = vector.shape_cast %509 : vector<1x1x32xf32> to vector<1x32xf32>
    %c2_196 = arith.constant 2 : index
    %c0_197 = arith.constant 0 : index
    %c0_198 = arith.constant 0 : index
    %511 = vector.load %arg16[%c2_196, %c0_197, %c0_198] : memref<3x1x32xf32, #tpu.memory_space<vmem>>, vector<1x1x32xf32>
    %512 = vector.shape_cast %511 : vector<1x1x32xf32> to vector<1x32xf32>
    %cst_199 = arith.constant dense<0.000000e+00> : vector<32xf32>
    %513 = vector.multi_reduction <add>, %508, %cst_199 [1] : vector<32x32xf32> to vector<32xf32>
    %514 = vector.shape_cast %513 : vector<32xf32> to vector<32x1xf32>
    %cst_200 = arith.constant 3.200000e+01 : f32
    %515 = vector.broadcast %cst_200 : f32 to vector<32x1xf32>
    %516 = arith.divf %514, %515 : vector<32x1xf32>
    %517 = vector.broadcast %516 : vector<32x1xf32> to vector<32x32xf32>
    %518 = arith.subf %508, %517 : vector<32x32xf32>
    %519 = arith.mulf %518, %518 : vector<32x32xf32>
    %cst_201 = arith.constant dense<0.000000e+00> : vector<32xf32>
    %520 = vector.multi_reduction <add>, %519, %cst_201 [1] : vector<32x32xf32> to vector<32xf32>
    %521 = vector.shape_cast %520 : vector<32xf32> to vector<32x1xf32>
    %cst_202 = arith.constant 3.200000e+01 : f32
    %522 = vector.broadcast %cst_202 : f32 to vector<32x1xf32>
    %523 = arith.divf %521, %522 : vector<32x1xf32>
    %524 = vector.broadcast %516 : vector<32x1xf32> to vector<32x32xf32>
    %525 = arith.subf %508, %524 : vector<32x32xf32>
    %cst_203 = arith.constant 9.99999974E-6 : f32
    %526 = vector.broadcast %cst_203 : f32 to vector<32x1xf32>
    %527 = arith.addf %523, %526 : vector<32x1xf32>
    %528 = math.rsqrt %527 : vector<32x1xf32>
    %529 = vector.broadcast %528 : vector<32x1xf32> to vector<32x32xf32>
    %530 = arith.mulf %525, %529 : vector<32x32xf32>
    %531 = vector.broadcast %510 : vector<1x32xf32> to vector<32x32xf32>
    %532 = arith.mulf %530, %531 : vector<32x32xf32>
    %533 = vector.broadcast %512 : vector<1x32xf32> to vector<32x32xf32>
    %534 = arith.addf %532, %533 : vector<32x32xf32>
    %535 = arith.truncf %534 : vector<32x32xf32> to vector<32x32xbf16>
    %c2_204 = arith.constant 2 : index
    %c0_205 = arith.constant 0 : index
    %c0_206 = arith.constant 0 : index
    %536 = vector.load %arg9[%c2_204, %c0_205, %c0_206] : memref<3x32x64xbf16, #tpu.memory_space<vmem>>, vector<1x32x64xbf16>
    %537 = vector.shape_cast %536 : vector<1x32x64xbf16> to vector<32x64xbf16>
    %cst_207 = arith.constant dense<0.000000e+00> : vector<32x64xf32>
    %538 = tpu.matmul %535, %537, %cst_207 {dimension_numbers = #tpu.dot_dimension_numbers<[1], [0], [0], [1], [0, 0, 1, 1], [], []>} : vector<32x32xbf16>, vector<32x64xbf16>, vector<32x64xf32> -> vector<32x64xf32>
    %c2_208 = arith.constant 2 : index
    %c0_209 = arith.constant 0 : index
    %c0_210 = arith.constant 0 : index
    %539 = vector.load %arg10[%c2_208, %c0_209, %c0_210] : memref<3x1x64xf32, #tpu.memory_space<vmem>>, vector<1x1x64xf32>
    %540 = vector.shape_cast %539 : vector<1x1x64xf32> to vector<1x64xf32>
    %541 = vector.broadcast %540 : vector<1x64xf32> to vector<32x64xf32>
    %542 = arith.addf %538, %541 : vector<32x64xf32>
    %cst_211 = arith.constant 0.000000e+00 : f32
    %543 = vector.broadcast %cst_211 : f32 to vector<32x64xf32>
    %544 = arith.maximumf %542, %543 : vector<32x64xf32>
    %545 = arith.truncf %544 : vector<32x64xf32> to vector<32x64xbf16>
    %c2_212 = arith.constant 2 : index
    %c0_213 = arith.constant 0 : index
    %c0_214 = arith.constant 0 : index
    %546 = vector.load %arg11[%c2_212, %c0_213, %c0_214] : memref<3x64x32xbf16, #tpu.memory_space<vmem>>, vector<1x64x32xbf16>
    %547 = vector.shape_cast %546 : vector<1x64x32xbf16> to vector<64x32xbf16>
    %cst_215 = arith.constant dense<0.000000e+00> : vector<32x32xf32>
    %548 = tpu.matmul %545, %547, %cst_215 {dimension_numbers = #tpu.dot_dimension_numbers<[1], [0], [0], [1], [0, 0, 1, 1], [], []>} : vector<32x64xbf16>, vector<64x32xbf16>, vector<32x32xf32> -> vector<32x32xf32>
    %549 = arith.addf %508, %548 : vector<32x32xf32>
    %c2_216 = arith.constant 2 : index
    %c0_217 = arith.constant 0 : index
    %c0_218 = arith.constant 0 : index
    %550 = vector.load %arg12[%c2_216, %c0_217, %c0_218] : memref<3x1x32xf32, #tpu.memory_space<vmem>>, vector<1x1x32xf32>
    %551 = vector.shape_cast %550 : vector<1x1x32xf32> to vector<1x32xf32>
    %552 = vector.broadcast %551 : vector<1x32xf32> to vector<32x32xf32>
    %553 = arith.addf %549, %552 : vector<32x32xf32>
    %554 = vector.shape_cast %553 : vector<32x32xf32> to vector<2x16x32xf32>
    %cst_219 = arith.constant dense<0.000000e+00> : vector<2x32xf32>
    %555 = vector.multi_reduction <add>, %554, %cst_219 [1] : vector<2x16x32xf32> to vector<2x32xf32>
    %cst_220 = arith.constant 1.600000e+01 : f32
    %556 = vector.broadcast %cst_220 : f32 to vector<2x32xf32>
    %557 = arith.divf %555, %556 : vector<2x32xf32>
    %558 = arith.truncf %557 : vector<2x32xf32> to vector<2x32xbf16>
    %c0_221 = arith.constant 0 : index
    %c0_222 = arith.constant 0 : index
    %559 = vector.load %arg17[%c0_221, %c0_222] : memref<32x128xbf16, #tpu.memory_space<vmem>>, vector<32x128xbf16>
    %cst_223 = arith.constant dense<0.000000e+00> : vector<2x128xf32>
    %560 = tpu.matmul %558, %559, %cst_223 {dimension_numbers = #tpu.dot_dimension_numbers<[1], [0], [0], [1], [0, 0, 1, 1], [], []>} : vector<2x32xbf16>, vector<32x128xbf16>, vector<2x128xf32> -> vector<2x128xf32>
    %c0_224 = arith.constant 0 : index
    %c0_225 = arith.constant 0 : index
    %561 = vector.load %arg18[%c0_224, %c0_225] : memref<1x128xf32, #tpu.memory_space<vmem>>, vector<1x128xf32>
    %562 = vector.broadcast %561 : vector<1x128xf32> to vector<2x128xf32>
    %563 = arith.addf %560, %562 : vector<2x128xf32>
    %c0_226 = arith.constant 0 : index
    %c0_227 = arith.constant 0 : index
    %564 = vector.load %arg19[%c0_226, %c0_227] : memref<2x128xf32, #tpu.memory_space<vmem>>, vector<2x128xf32>
    tpu.vector_store %arg19[%c0_226, %c0_227], %563 {strides = array<i32>} : memref<2x128xf32, #tpu.memory_space<vmem>>, vector<2x128xf32>,
    return
  }
  func.func @transform_0(%arg0: i32) -> (i32, i32, i32) {
    %c0_i32 = arith.constant 0 : i32
    %c0_i32_0 = arith.constant 0 : i32
    %c0_i32_1 = arith.constant 0 : i32
    return %arg0, %c0_i32, %c0_i32_0 : i32, i32, i32
  }
  func.func @transform_1(%arg0: i32) -> (i32, i32) {
    %c0_i32 = arith.constant 0 : i32
    %c0_i32_0 = arith.constant 0 : i32
    %c0_i32_1 = arith.constant 0 : i32
    return %c0_i32, %c0_i32_0 : i32, i32
  }
  func.func @transform_2(%arg0: i32) -> (i32, i32) {
    %c0_i32 = arith.constant 0 : i32
    %c0_i32_0 = arith.constant 0 : i32
    %c0_i32_1 = arith.constant 0 : i32
    return %c0_i32, %c0_i32_0 : i32, i32
  }
  func.func @transform_3(%arg0: i32) -> (i32, i32) {
    %c0_i32 = arith.constant 0 : i32
    %c0_i32_0 = arith.constant 0 : i32
    %c0_i32_1 = arith.constant 0 : i32
    return %c0_i32, %c0_i32_0 : i32, i32
  }
  func.func @transform_4(%arg0: i32) -> (i32, i32, i32) {
    %c0_i32 = arith.constant 0 : i32
    %c0_i32_0 = arith.constant 0 : i32
    %c0_i32_1 = arith.constant 0 : i32
    %c0_i32_2 = arith.constant 0 : i32
    return %c0_i32, %c0_i32_0, %c0_i32_1 : i32, i32, i32
  }
  func.func @transform_5(%arg0: i32) -> (i32, i32, i32) {
    %c0_i32 = arith.constant 0 : i32
    %c0_i32_0 = arith.constant 0 : i32
    %c0_i32_1 = arith.constant 0 : i32
    %c0_i32_2 = arith.constant 0 : i32
    return %c0_i32, %c0_i32_0, %c0_i32_1 : i32, i32, i32
  }
  func.func @transform_6(%arg0: i32) -> (i32, i32, i32) {
    %c0_i32 = arith.constant 0 : i32
    %c0_i32_0 = arith.constant 0 : i32
    %c0_i32_1 = arith.constant 0 : i32
    %c0_i32_2 = arith.constant 0 : i32
    return %c0_i32, %c0_i32_0, %c0_i32_1 : i32, i32, i32
  }
  func.func @transform_7(%arg0: i32) -> (i32, i32, i32) {
    %c0_i32 = arith.constant 0 : i32
    %c0_i32_0 = arith.constant 0 : i32
    %c0_i32_1 = arith.constant 0 : i32
    %c0_i32_2 = arith.constant 0 : i32
    return %c0_i32, %c0_i32_0, %c0_i32_1 : i32, i32, i32
  }
  func.func @transform_8(%arg0: i32) -> (i32, i32, i32) {
    %c0_i32 = arith.constant 0 : i32
    %c0_i32_0 = arith.constant 0 : i32
    %c0_i32_1 = arith.constant 0 : i32
    %c0_i32_2 = arith.constant 0 : i32
    return %c0_i32, %c0_i32_0, %c0_i32_1 : i32, i32, i32
  }
  func.func @transform_9(%arg0: i32) -> (i32, i32, i32) {
    %c0_i32 = arith.constant 0 : i32
    %c0_i32_0 = arith.constant 0 : i32
    %c0_i32_1 = arith.constant 0 : i32
    %c0_i32_2 = arith.constant 0 : i32
    return %c0_i32, %c0_i32_0, %c0_i32_1 : i32, i32, i32
  }
  func.func @transform_10(%arg0: i32) -> (i32, i32, i32) {
    %c0_i32 = arith.constant 0 : i32
    %c0_i32_0 = arith.constant 0 : i32
    %c0_i32_1 = arith.constant 0 : i32
    %c0_i32_2 = arith.constant 0 : i32
    return %c0_i32, %c0_i32_0, %c0_i32_1 : i32, i32, i32
  }
  func.func @transform_11(%arg0: i32) -> (i32, i32, i32) {
    %c0_i32 = arith.constant 0 : i32
    %c0_i32_0 = arith.constant 0 : i32
    %c0_i32_1 = arith.constant 0 : i32
    %c0_i32_2 = arith.constant 0 : i32
    return %c0_i32, %c0_i32_0, %c0_i32_1 : i32, i32, i32
  }
  func.func @transform_12(%arg0: i32) -> (i32, i32, i32) {
    %c0_i32 = arith.constant 0 : i32
    %c0_i32_0 = arith.constant 0 : i32
    %c0_i32_1 = arith.constant 0 : i32
    %c0_i32_2 = arith.constant 0 : i32
    return %c0_i32, %c0_i32_0, %c0_i32_1 : i32, i32, i32
  }
  func.func @transform_13(%arg0: i32) -> (i32, i32, i32) {
    %c0_i32 = arith.constant 0 : i32
    %c0_i32_0 = arith.constant 0 : i32
    %c0_i32_1 = arith.constant 0 : i32
    %c0_i32_2 = arith.constant 0 : i32
    return %c0_i32, %c0_i32_0, %c0_i32_1 : i32, i32, i32
  }
  func.func @transform_14(%arg0: i32) -> (i32, i32, i32) {
    %c0_i32 = arith.constant 0 : i32
    %c0_i32_0 = arith.constant 0 : i32
    %c0_i32_1 = arith.constant 0 : i32
    %c0_i32_2 = arith.constant 0 : i32
    return %c0_i32, %c0_i32_0, %c0_i32_1 : i32, i32, i32
  }
  func.func @transform_15(%arg0: i32) -> (i32, i32, i32) {
    %c0_i32 = arith.constant 0 : i32
    %c0_i32_0 = arith.constant 0 : i32
    %c0_i32_1 = arith.constant 0 : i32
    %c0_i32_2 = arith.constant 0 : i32
    return %c0_i32, %c0_i32_0, %c0_i32_1 : i32, i32, i32
  }
  func.func @transform_16(%arg0: i32) -> (i32, i32) {
    %c0_i32 = arith.constant 0 : i32
    %c0_i32_0 = arith.constant 0 : i32
    %c0_i32_1 = arith.constant 0 : i32
    return %c0_i32, %c0_i32_0 : i32, i32
  }
  func.func @transform_17(%arg0: i32) -> (i32, i32) {
    %c0_i32 = arith.constant 0 : i32
    %c0_i32_0 = arith.constant 0 : i32
    %c0_i32_1 = arith.constant 0 : i32
    return %c0_i32, %c0_i32_0 : i32, i32
  }
  func.func @transform_18(%arg0: i32) -> (i32, i32) {
    %c0_i32 = arith.constant 0 : i32
    %c0_i32_0 = arith.constant 0 : i32
    return %arg0, %c0_i32 : i32, i32
  }
}

</mosaic_0001>

<bundles_post_ra>
// kernel: tpu_custom_call.1
= control target key start
LH: loop header
LB: loop body
LE: loop exit
PB: predicated region body
PF: predicated region fallthrough
CT: control target
= control target key end

     0   :  { %s5917_s0 = inlined_call_operand.hbm [shape: f32[2,16,64], index: 0, kind: input, shape index: {}]   ;;  %s5918_s1 = inlined_call_operand.hbm [shape: f32[16,32], index: 1, kind: input, shape index: {}]   ;;  %s5919_s2 = inlined_call_operand.vmem [shape: bf16[64,32], index: 2, kind: input, shape index: {}]   ;;  %s5920_s3 = inlined_call_operand.hbm [shape: f32[1,32], index: 3, kind: input, shape index: {}]   ;;  %s5921_s4 = inlined_call_operand.vmem [shape: bf16[3,32,96], index: 4, kind: input, shape index: {}]   ;;  %s5922_s5 = inlined_call_operand.vmem [shape: f32[3,1,96], index: 5, kind: input, shape index: {}]   ;;  %s5923_s6 = inlined_call_operand.vmem [shape: bf16[3,32,32], index: 6, kind: input, shape index: {}]   ;;  %s5924_s7 = inlined_call_operand.vmem [shape: f32[3,1,32], index: 7, kind: input, shape index: {}]   ;;  %s5925_s8 = inlined_call_operand.vmem [shape: bf16[3,32,64], index: 8, kind: input, shape index: {}]   ;;  %s5926_s9 = inlined_call_operand.vmem [shape: f32[3,1,64], index: 9, kind: input, shape index: {}]   ;;  %s5927_s10 = inlined_call_operand.vmem [shape: bf16[3,64,32], index: 10, kind: input, shape index: {}]   ;;  %s5928_s11 = inlined_call_operand.hbm [shape: f32[3,1,32], index: 11, kind: input, shape index: {}]   ;;  %s5929_s12 = inlined_call_operand.hbm [shape: f32[3,1,32], index: 12, kind: input, shape index: {}]   ;;  %s5930_s13 = inlined_call_operand.hbm [shape: f32[3,1,32], index: 13, kind: input, shape index: {}]   ;;  %s5931_s14 = inlined_call_operand.hbm [shape: f32[3,1,32], index: 14, kind: input, shape index: {}]   ;;  %s5932_s15 = inlined_call_operand.vmem [shape: f32[3,1,32], index: 15, kind: input, shape index: {}]   ;;  %s5933_s16 = inlined_call_operand.hbm [shape: bf16[32,128], index: 16, kind: input, shape index: {}]   ;;  %s5934_s17 = inlined_call_operand.vmem [shape: f32[1,128], index: 17, kind: input, shape index: {}]   ;;  %s5935_s18 = inlined_call_operand.hbm [shape: f32[2,128], index: 18, kind: output, shape index: {}]  }
   0x1   :  { %5949 = sst [smem:[#allocation23_spill]] %s5917_s0 }
   0x2   :  { %5950 = sst [smem:[#allocation24_spill]] %s5918_s1 }
   0x3   :  { %5951 = sst [smem:[#allocation25_spill]] %s5919_s2 }
   0x4   :  { %23 = vsyncpa [#allocation3], 0 }
   0x5   :  { %24 = vsyncpa [#allocation6], 0 }
   0x6   :  { %25 = vsyncpa [#allocation9], 0 }
   0x7   :  { %26 = vsyncpa [#allocation12], 0 }
   0x8   :  { %27 = vsyncpa [#allocation15], 0 }
   0x9   :  { %28 = vsyncpa [#allocation4], 0  ;;  %s5952_s29 = sld [smem:[#allocation24_spill]]  ;;  %s4612_s0 = smov [#allocation5]  }
   0xa   :  { %s48_s19 = sshll.u32 %s4612_s0, 4  ;;  %s86_s21 = sshll.u32 %s5928_s11, 4  ;;  %s49_s19 = int_to_ptr.vmem [resolvable:$true] %s48_s19  ;;  %s87_s21 = int_to_ptr.hbm [resolvable:$true] %s86_s21 }
   0xb   :  { %s4613_s22 = smov 128   ;;  %s5937_s2 = smov 8  }
   0xc   :  { %s4615_s23 = smov [#allocation8]   ;;  %s5939_s25 = smov 16  }
   0xd   :  { %s88_s24 = sshll.u32 %s4615_s23, 4  ;;  %s4617_s26 = smov 1   ;;  %s89_s24 = int_to_ptr.vmem [resolvable:$true] %s88_s24 }
   0xe   :  { %94 = dma.hbm_to_vmem [thread:$0]  %s87_s21, 48, %s89_s24, [#allocation9], %s5939_s25, %s5939_s25, %s4617_s26  }
   0xf   :  { %s46_s30 = sshll.u32 %s5952_s29, 4  ;;  %s112_s29 = sshll.u32 %s5930_s13, 4  ;;  %s47_s30 = int_to_ptr.hbm [resolvable:$true] %s46_s30  ;;  %s113_s29 = int_to_ptr.hbm [resolvable:$true] %s112_s29 }
  0x10   :  { %54 = dma.hbm_to_vmem [thread:$0]  %s47_s30, 256, %s49_s19, [#allocation6], %s4613_s22, %s4613_s22, %s5937_s2  }
  0x11   :  { %s4618_s11 = smov [#allocation11]   ;;  %s5953_s19 = sld [smem:[#allocation23_spill]] }
  0x12   :  { %s114_s0 = sshll.u32 %s4618_s11, 4  ;;  %s4619_s23 = smov [#allocation2]   ;;  %s115_s0 = int_to_ptr.vmem [resolvable:$true] %s114_s0 }
  0x13   :  { %120 = dma.hbm_to_vmem [thread:$0]  %s113_s29, 48, %s115_s0, [#allocation12], %s5939_s25, %s5939_s25, %s4617_s26  }
  0x14   :  { %s35_s2 = sshll.u32 %s4619_s23, 4  ;;  %s62_s27 = sshll.u32 %s5920_s3, 4  ;;  %s36_s2 = int_to_ptr.vmem [resolvable:$true] %s35_s2  ;;  %s63_s27 = int_to_ptr.hbm [resolvable:$true] %s62_s27 }
  0x15   :  { %s5954_s13 = smov 8   ;;  %s99_s1 = sshll.u32 %s5929_s12, 4  ;;  %s100_s1 = int_to_ptr.hbm [resolvable:$true] %s99_s1 }
  0x16   :  { %s4620_s30 = smov [#allocation7]   ;;  %s4621_s29 = smov [#allocation10]  }
  0x17   :  { %s33_s20 = sshll.u32 %s5953_s19, 4  ;;  %s64_s19 = sshll.u32 %s4620_s30, 4  ;;  %s34_s20 = int_to_ptr.hbm [resolvable:$true] %s33_s20  ;;  %s65_s19 = int_to_ptr.vmem [resolvable:$true] %s64_s19 }
  0x18   :  { %41 = dma.hbm_to_vmem [thread:$0]  %s34_s20, 512, %s36_s2, [#allocation3], %s4613_s22, %s4613_s22, %s5954_s13  }
  0x19   :  { %67 = dma.hbm_to_vmem [thread:$0]  %s63_s27, 16, %s65_s19, [#allocation6]  }
  0x1a   :  { %s101_s0 = sshll.u32 %s4621_s29, 4  ;;  %s125_s21 = sshll.u32 %s5931_s14, 4  ;;  %s102_s0 = int_to_ptr.vmem [resolvable:$true] %s101_s0  ;;  %s126_s21 = int_to_ptr.hbm [resolvable:$true] %s125_s21 }
  0x1b   :  { %s5955_s3 = smov 16   ;;  %s140_s12 = sshll.u32 %s5933_s16, 4  ;;  %s141_s12 = int_to_ptr.hbm [resolvable:$true] %s140_s12 }
  0x1c   :  { %107 = dma.hbm_to_vmem [thread:$0]  %s100_s1, 48, %s102_s0, [#allocation9], %s5955_s3, %s5955_s3, %s4617_s26  }
  0x1d   :  { %s4622_s20 = smov [#allocation13]   ;;  %s4623_s25 = smov [#allocation14]  }
  0x1e   :  { %s127_s24 = sshll.u32 %s4622_s20, 4  ;;  %s142_s14 = sshll.u32 %s4623_s25, 4  ;;  %s128_s24 = int_to_ptr.vmem [resolvable:$true] %s127_s24  ;;  %s143_s14 = int_to_ptr.vmem [resolvable:$true] %s142_s14 }
  0x1f   :  { %133 = dma.hbm_to_vmem [thread:$0]  %s126_s21, 48, %s128_s24, [#allocation12], %s5955_s3, %s5955_s3, %s4617_s26  }
  0x20   :  { %s4624_s27 = smov 64   ;;  %s4625_s28 = smov 4  }
  0x21   :  { %148 = dma.hbm_to_vmem [thread:$0]  %s141_s12, 256, %s143_s14, [#allocation15], %s4624_s27, %s4624_s27, %s4625_s28  }
  0x22   :  { %4600 = dma.done.wait [#allocation3], 512  }
  0x23   :  { %4601 = vsyncadd [#allocation3], 4294966784 }
  0x24   :  { %4602 = dma.done.wait [#allocation6], 272  }
  0x25   :  { %4603 = vsyncadd [#allocation6], 4294967024 }
  0x26   :  { %4604 = dma.done.wait [#allocation9], 96  }
  0x27   :  { %4605 = vsyncadd [#allocation9], 4294967200 }
  0x28   :  { %4606 = dma.done.wait [#allocation12], 96  }
  0x29   :  { %4607 = vsyncadd [#allocation12], 4294967200 }
  0x2a   :  { %4608 = dma.done.wait [#allocation15], 256  }
  0x2b   :  { %4609 = vsyncadd [#allocation15], 4294967040  ;;  %s5956_s11 = sld [smem:[#allocation25_spill]]  ;;  %v184_v4 = vld [vmem:[#allocation2] sm:$0xff]  ;;  %v185_v5 = vld [vmem:[#allocation2 + $0x8] sm:$0xff]  ;;  %vm226_vm0 = vcmask 523264  }
  0x2c   :  { %v188_v6 = vpack.c.bf16 %v185_v5, %v184_v4  ;;  %v186_v7 = vld [vmem:[#allocation2 + $0x10] sm:$0xff]  ;;  %v187_v8 = vld [vmem:[#allocation2 + $0x18] sm:$0xff]  ;;  %v252_v12 = vld [vmem:[#allocation5] sm:$0xff]  ;;  %vm260_vm1 = vcmask 261120   ;;  %v4626_v29 = vmov 32.0   ;;  %s4627_s25 = smov 88  }
  0x2d   :  { %v189_v9 = vpack.c.bf16 %v187_v8, %v186_v7  ;;  %v4114_v10 = vld [vmem:[#allocation7] ss:$0 sm:$0xff]  ;;  %v253_v17 = vld [vmem:[#allocation5 + $0x8] sm:$0xff]  ;;  %4140 = vrcp.f32 %v4626_v29  ;;  %v3964_v58 = vld [vmem:[%s5921_s4] sm:$0xff]  ;;  %s4628_s14 = smov 96   ;;  %s4629_s28 = smov 120  }
  0x2e   :  { %v3965_v56 = vld [vmem:[%s5921_s4 + $0x8] sm:$0xff]  ;;  %vm428_vm15 = vcmask 64512   ;;  %s4630_s16 = smov 80   ;;  %s4631_s26 = smov 72  }
  0x2f   :  { %404 = vmatpush.bf16.msra.mxu1 %v3965_v56  ;;  %s4633_s1 = smov 112   ;;  %s5947_s30 = smov 56  }
  0x30   :  { %s5945_s19 = smov 48   ;;  %s5943_s29 = smov 40  }
  0x31   :  { %v3963_v0 = vld [vmem:[%s5956_s11 + $0x18] sm:$0xff]  ;;  %v3962_v1 = vld [vmem:[%s5956_s11 + $0x10] sm:$0xff]  ;;  %v3961_v2 = vld [vmem:[%s5956_s11 + $0x8] sm:$0xff]  ;;  %s5941_s0 = smov 24   ;;  %s5957_s2 = smov 40  }
  0x32   :  { %237 = vmatpush.bf16.msra.mxu0 %v3963_v0  ;;  %v3960_v3 = vld [vmem:[%s5956_s11] sm:$0xff]  ;;  %s4632_s11 = smov 104   ;;  %s5958_s12 = smov 24  }
  0x33   :  { %v4141_v30 = vpop.eup %4140  ;;  %405 = vmatpush.bf16.msra.mxu1 %v3964_v58  ;;  %v4117_v58 = vld [vmem:[%s5922_s5] ss:$0 sm:$0xff]  ;;  %s4639_s20 = smov [#allocation16]  }
  0x34   :  { %v274_v31 = vmul.f32 32.0, %v4141_v30  ;;  %vm278_vm2 = vweird.f32 %v4141_v30 }
  0x36   :  { %238 = vmatpush.bf16.msra.mxu0 %v3962_v1  ;;  %v275_v32 = vsub.f32 1.0, %v274_v31 }
  0x38   :  { %v276_v33 = vmul.f32 %v4141_v30, %v275_v32 }
  0x3a   :  { %239 = vmatpush.bf16.msra.mxu0 %v3961_v2  ;;  %v277_v34 = vadd.f32 %v4141_v30, %v276_v33 }
  0x3c   :  { %v4805_v35 = vsel %vm278_vm2, %v4141_v30, %v277_v34  ;;  %vm480_vm2 = vcmask 130048  }
  0x3e   :  { %240 = vmatpush.bf16.msra.mxu0 %v3960_v3 }
  0x41   :  { %3709 = vmatmul.msk.bf16.vlgmr.msra.gmra.mxu0 %vm226_vm0, %v188_v6 }
  0x51   :  { %3710 = vmatmul.msk.bf16.gmra.mxu0 %vm226_vm0, %v189_v9 }
  0xbe   :  { %v242_v11 = vpop.f32.mrf.mxu0 }
  0xbf   :  { %v243_v13 = vadd.f32 %v4114_v10, %v242_v11 }
  0xc1   :  { %v4789_v14 = vadd.f32 %v252_v12, %v243_v13  ;;  %v4115_v13 = vld [vmem:[#allocation10] ss:$0 sm:$0xff] }
  0xc3   :  { %v261_v15 = vsel %vm260_vm1, %v4789_v14, 0.0 }
  0xc4   :  { %262 = vadd.xlane.f32.xlu0 %v261_v15 }
  0xc6   :  { %v244_v16 = vpop.f32.mrf.mxu0 }
  0xc7   :  { %v245_v18 = vadd.f32 %v4114_v10, %v244_v16 }
  0xc9   :  { %v4793_v19 = vadd.f32 %v253_v17, %v245_v18 }
  0xcb   :  { %v264_v20 = vsel %vm260_vm1, %v4793_v19, 0.0 }
  0xcc   :  { %265 = vadd.xlane.f32.xlu0 %v264_v20  ;;  %v4116_v20 = vld [vmem:[#allocation11] ss:$0 sm:$0xff] }
  0xce   :  { %v247_v21 = vpop.f32.mrf.mxu0 }
  0xcf   :  { %v248_v22 = vadd.f32 %v4114_v10, %v247_v21 }
  0xd1   :  { %v4797_v23 = vadd.f32 %v252_v12, %v248_v22 }
  0xd3   :  { %v267_v24 = vsel %vm260_vm1, %v4797_v23, 0.0 }
  0xd4   :  { %268 = vadd.xlane.f32.xlu2 %v267_v24 }
  0xd6   :  { %v249_v25 = vpop.f32.mrf.mxu0 }
  0xd7   :  { %v250_v26 = vadd.f32 %v4114_v10, %v249_v25 }
  0xd9   :  { %v4801_v27 = vadd.f32 %v253_v17, %v250_v26 }
  0xdb   :  { %v270_v28 = vsel %vm260_vm1, %v4801_v27, 0.0 }
  0xdc   :  { %271 = vadd.xlane.f32.xlu2 %v270_v28 }
 0x137   :  { %v263_v36 = vpop.xlane.xlu0 %262 }
 0x138   :  { %v280_v37 = vmul.f32 %v4805_v35, %v263_v36 }
 0x13a   :  { %v284_v38 = vsub.f32 %v4789_v14, %v280_v37 }
 0x13c   :  { %v288_v39 = vmul.f32 %v284_v38, %v284_v38 }
 0x13e   :  { %v292_v40 = vsel %vm260_vm1, %v288_v39, 0.0 }
 0x13f   :  { %293 = vadd.xlane.f32.xlu1 %v292_v40  ;;  %v266_v41 = vpop.xlane.xlu0 %265 }
 0x140   :  { %v281_v42 = vmul.f32 %v4805_v35, %v266_v41 }
 0x142   :  { %v285_v43 = vsub.f32 %v4793_v19, %v281_v42 }
 0x144   :  { %v289_v44 = vmul.f32 %v285_v43, %v285_v43 }
 0x146   :  { %v295_v45 = vsel %vm260_vm1, %v289_v44, 0.0 }
 0x147   :  { %296 = vadd.xlane.f32.xlu1 %v295_v45  ;;  %v269_v46 = vpop.xlane.xlu2 %268 }
 0x148   :  { %v282_v47 = vmul.f32 %v4805_v35, %v269_v46 }
 0x14a   :  { %v4815_v49 = vsub.f32 %v4797_v23, %v282_v47 }
 0x14c   :  { %v290_v53 = vmul.f32 %v4815_v49, %v4815_v49 }
 0x14e   :  { %v298_v55 = vsel %vm260_vm1, %v290_v53, 0.0 }
 0x14f   :  { %v272_v48 = vpop.xlane.xlu2 %271  ;;  %299 = vadd.xlane.f32.xlu1 %v298_v55 }
 0x150   :  { %v283_v50 = vmul.f32 %v4805_v35, %v272_v48 }
 0x152   :  { %v4819_v51 = vsub.f32 %v4801_v27, %v283_v50 }
 0x154   :  { %v291_v52 = vmul.f32 %v4819_v51, %v4819_v51 }
 0x156   :  { %v301_v54 = vsel %vm260_vm1, %v291_v52, 0.0 }
 0x157   :  { %302 = vadd.xlane.f32.xlu2 %v301_v54 }
 0x1b2   :  { %v294_v57 = vpop.xlane.xlu1 %293 }
 0x1b3   :  { %v304_v59 = vmul.f32 %v294_v57, %v4805_v35 }
 0x1b5   :  { %v308_v60 = vadd.f32 1e-05, %v304_v59 }
 0x1b7   :  { %4142 = vrsqrt.f32 %v308_v60  ;;  %vm318_vm4 = vweird.f32 %v308_v60 }
 0x1ba   :  { %v297_v61 = vpop.xlane.xlu1 %296 }
 0x1bb   :  { %v305_v62 = vmul.f32 %v297_v61, %v4805_v35 }
 0x1bd   :  { %v4143_v63 = vpop.eup %4142  ;;  %v309_v0 = vadd.f32 1e-05, %v305_v62 }
 0x1be   :  { %v313_v1 = vmul.f32 %v4143_v63, %v308_v60  ;;  %vm319_vm3 = vweird.f32 %v4143_v63 }
 0x1bf   :  { %4144 = vrsqrt.f32 %v309_v0  ;;  %vm320_vm5 = vmor %vm318_vm4, %vm319_vm3  ;;  %vm328_vm7 = vweird.f32 %v309_v0  ;;  %vm1085_vm3 = vcmask 195584  }
 0x1c0   :  { %v314_v2 = vmul.f32 %v4143_v63, %v313_v1 }
 0x1c2   :  { %v315_v3 = vmul.f32 0.5, %v314_v2  ;;  %v300_v28 = vpop.xlane.xlu1 %299 }
 0x1c3   :  { %v306_v30 = vmul.f32 %v300_v28, %v4805_v35 }
 0x1c4   :  { %v316_v4 = vsub.f32 1.5, %v315_v3 }
 0x1c5   :  { %v4145_v5 = vpop.eup %4144  ;;  %v310_v32 = vadd.f32 1e-05, %v306_v30 }
 0x1c6   :  { %v317_v6 = vmul.f32 %v4143_v63, %v316_v4  ;;  %v323_v7 = vmul.f32 %v4145_v5, %v309_v0  ;;  %vm329_vm6 = vweird.f32 %v4145_v5 }
 0x1c7   :  { %vm330_vm8 = vmor %vm328_vm7, %vm329_vm6  ;;  %vm338_vm11 = vweird.f32 %v310_v32 }
 0x1c8   :  { %v324_v8 = vmul.f32 %v4145_v5, %v323_v7  ;;  %v321_v9 = vsel %vm320_vm5, %v4143_v63, %v317_v6 }
 0x1c9   :  { %v352_v12 = vmul.f32 %v321_v9, %v284_v38 }
 0x1ca   :  { %v325_v10 = vmul.f32 0.5, %v324_v8  ;;  %v303_v26 = vpop.xlane.xlu2 %302 }
 0x1cb   :  { %v359_v18 = vmul.f32 %v4115_v13, %v352_v12  ;;  %v307_v29 = vmul.f32 %v303_v26, %v4805_v35 }
 0x1cc   :  { %v326_v11 = vsub.f32 1.5, %v325_v10 }
 0x1cd   :  { %v366_v22 = vadd.f32 %v4116_v20, %v359_v18  ;;  %v311_v31 = vadd.f32 1e-05, %v307_v29 }
 0x1ce   :  { %v327_v15 = vmul.f32 %v4145_v5, %v326_v11 }
 0x1cf   :  { %4146 = vrsqrt.f32 %v311_v31  ;;  %vm348_vm9 = vweird.f32 %v311_v31 }
 0x1d0   :  { %v331_v16 = vsel %vm330_vm8, %v4145_v5, %v327_v15  ;;  %4148 = vrsqrt.f32 %v310_v32 }
 0x1d1   :  { %v353_v17 = vmul.f32 %v331_v16, %v285_v43 }
 0x1d3   :  { %v360_v21 = vmul.f32 %v4115_v13, %v353_v17 }
 0x1d5   :  { %v367_v24 = vadd.f32 %v4116_v20, %v360_v21  ;;  %v4147_v33 = vpop.eup %4146 }
 0x1d6   :  { %v4149_v34 = vpop.eup %4148  ;;  %v343_v36 = vmul.f32 %v4147_v33, %v311_v31  ;;  %vm349_vm10 = vweird.f32 %v4147_v33 }
 0x1d7   :  { %v370_v25 = vpack.c.bf16 %v367_v24, %v366_v22  ;;  %v333_v37 = vmul.f32 %v4149_v34, %v310_v32  ;;  %vm339_vm12 = vweird.f32 %v4149_v34  ;;  %vm350_vm13 = vmor %vm348_vm9, %vm349_vm10 }
 0x1d8   :  { %v344_v38 = vmul.f32 %v4147_v33, %v343_v36  ;;  %vm340_vm14 = vmor %vm338_vm11, %vm339_vm12 }
 0x1d9   :  { %3719 = vmatmul.msk.bf16.vlgmr.msra.gmra.mxu1 %vm260_vm1, %v370_v25  ;;  %v334_v39 = vmul.f32 %v4149_v34, %v333_v37 }
 0x1da   :  { %v345_v40 = vmul.f32 0.5, %v344_v38 }
 0x1db   :  { %v335_v41 = vmul.f32 0.5, %v334_v39 }
 0x1dc   :  { %v346_v42 = vsub.f32 1.5, %v345_v40 }
 0x1dd   :  { %v336_v43 = vsub.f32 1.5, %v335_v41 }
 0x1de   :  { %v347_v44 = vmul.f32 %v4147_v33, %v346_v42 }
 0x1df   :  { %v337_v45 = vmul.f32 %v4149_v34, %v336_v43 }
 0x1e0   :  { %v351_v46 = vsel %vm350_vm13, %v4147_v33, %v347_v44 }
 0x1e1   :  { %v341_v47 = vsel %vm340_vm14, %v4149_v34, %v337_v45  ;;  %v355_v48 = vmul.f32 %v351_v46, %v4819_v51 }
 0x1e2   :  { %v354_v50 = vmul.f32 %v341_v47, %v4815_v49 }
 0x1e3   :  { %v362_v52 = vmul.f32 %v4115_v13, %v355_v48 }
 0x1e4   :  { %v361_v53 = vmul.f32 %v4115_v13, %v354_v50 }
 0x1e5   :  { %v369_v54 = vadd.f32 %v4116_v20, %v362_v52 }
 0x1e6   :  { %v368_v55 = vadd.f32 %v4116_v20, %v361_v53 }
 0x1e8   :  { %v371_v56 = vpack.c.bf16 %v369_v54, %v368_v55 }
 0x1ea   :  { %3720 = vmatmul.msk.bf16.gmra.mxu1 %vm260_vm1, %v371_v56 }
 0x256   :  { %v407_v57 = vpop.f32.mrf.mxu1 }
 0x257   :  { %v408_v59 = vadd.f32 %v4117_v58, %v407_v57 }
 0x259   :  { %v417_v61 = vpack.c.bf16 %v408_v59, %v408_v59 }
 0x25b   :  { %v423_v51 = vunpack.c.l.b16 %v417_v61 }
 0x25e   :  { %v409_v60 = vpop.f32.mrf.mxu1 }
 0x25f   :  { %v410_v62 = vadd.f32 %v4117_v58, %v409_v60 }
 0x261   :  { %v418_v63 = vpack.c.bf16 %v410_v62, %v410_v62 }
 0x263   :  { %v424_v0 = vunpack.c.l.b16 %v418_v63 }
 0x265   :  { %v4844_v49 = vpack.c.b16 %v424_v0, %v423_v51 }
 0x267   :  { %581 = vrot.lane.b32.xlu2 %v4844_v49, %s4627_s25  ;;  %426 = vrot.lane.b32.xlu0 %v4844_v49, %s4628_s14  ;;  %v412_v8 = vpop.f32.mrf.mxu1 }
 0x268   :  { %v413_v15 = vadd.f32 %v4117_v58, %v412_v8 }
 0x26a   :  { %v419_v17 = vpack.c.bf16 %v413_v15, %v413_v15 }
 0x26c   :  { %v451_v20 = vunpack.c.l.b16 %v419_v17 }
 0x26f   :  { %579 = vrot.lane.b32.xlu2 %v4844_v49, %s4629_s28  ;;  %v414_v13 = vpop.f32.mrf.mxu1 }
 0x270   :  { %v415_v16 = vadd.f32 %v4117_v58, %v414_v13 }
 0x272   :  { %v420_v18 = vpack.c.bf16 %v415_v16, %v415_v16 }
 0x274   :  { %v452_v21 = vunpack.c.l.b16 %v420_v18 }
 0x276   :  { %v4859_v22 = vpack.c.b16 %v452_v21, %v451_v20 }
 0x2c1   :  { %v582_v1 = vpop.permute.xlu2 %581 }
 0x2c2   :  { %v587_v2 = vsel %vm428_vm15, %v582_v1, 0 }
 0x2c3   :  { %596 = vmatpush.bf16.xpose.msrb.mxu1 %v587_v2 }
 0x2c9   :  { %v580_v3 = vpop.permute.xlu2 %579 }
 0x2ca   :  { %3725 = vmatmul.msk.bf16.vlgmr.msrb.gmra.mxu1 %vm428_vm15, %v580_v3 }
 0x2d9   :  { %v427_v4 = vpop.permute.xlu0 %426 }
 0x2da   :  { %v433_v5 = vsel %vm428_vm15, %v427_v4, 0 }
 0x2db   :  { %442 = vmatpush.bf16.xpose.msra.mxu2 %v433_v5 }
 0x2e2   :  { %3721 = vmatmul.msk.bf16.vlgmr.msra.gmra.mxu2 %vm428_vm15, %v4844_v49 }
 0x347   :  { %v598_v24 = vpop.f32.mrf.mxu1 }
 0x348   :  { %v4877_v25 = vmul.f32 0.35355338, %v598_v24 }
 0x34a   :  { %v631_v26 = vsel %vm480_vm2, %v4877_v25, -inf }
 0x34f   :  { %v600_v5 = vpop.f32.mrf.mxu1 }
 0x365   :  { %v444_v6 = vpop.f32.mrf.mxu2 }
 0x366   :  { %v476_v7 = vmul.f32 0.35355338, %v444_v6 }
 0x368   :  { %v481_v9 = vsel %vm480_vm2, %v476_v7, -inf }
 0x369   :  { %482 = vmax.xlane.f32.xlu1 %v481_v9 }
 0x36d   :  { %v446_v10 = vpop.f32.mrf.mxu2 }
 0x36e   :  { %v477_v11 = vmul.f32 0.35355338, %v446_v10 }
 0x370   :  { %v484_v12 = vsel %vm480_vm2, %v477_v11, -inf }
 0x371   :  { %485 = vmax.xlane.f32.xlu2 %v484_v12 }
 0x382   :  { %454 = vrot.lane.b32.xlu1 %v4859_v22, %s4628_s14 }
 0x389   :  { %731 = vrot.lane.b32.xlu2 %v4844_v49, %s4630_s16 }
 0x38a   :  { %534 = vrot.lane.b32.xlu1 %v4844_v49, %s4624_s27 }
 0x392   :  { %605 = vrot.lane.b32.xlu1 %v4859_v22, %s4627_s25 }
 0x39a   :  { %603 = vrot.lane.b32.xlu1 %v4859_v22, %s4629_s28 }
 0x3a2   :  { %881 = vrot.lane.b32.xlu1 %v4844_v49, %s4631_s26 }
 0x3aa   :  { %879 = vrot.lane.b32.xlu1 %v4844_v49, %s4632_s11 }
 0x3b2   :  { %903 = vrot.lane.b32.xlu1 %v4859_v22, %s4632_s11 }
 0x3dc   :  { %632 = vmax.xlane.f32.xlu1 %v631_v26  ;;  %v483_v28 = vpop.xlane.xlu1 %482 }
 0x3dd   :  { %v493_v29 = vsub.f32 %v476_v7, %v483_v28  ;;  %v628_v7 = vmul.f32 0.35355338, %v600_v5 }
 0x3df   :  { %v497_v30 = vmul.f32 1.442695, %v493_v29 }
 0x3e1   :  { %4150 = vpow2.f32 %v497_v30 }
 0x3e4   :  { %v486_v31 = vpop.xlane.xlu2 %485 }
 0x3e5   :  { %v494_v32 = vsub.f32 %v477_v11, %v486_v31  ;;  %v634_v11 = vsel %vm480_vm2, %v628_v7, -inf }
 0x3e7   :  { %v4151_v33 = vpop.eup %4150  ;;  %v499_v34 = vmul.f32 1.442695, %v494_v32 }
 0x3e8   :  { %v505_v36 = vsel %vm480_vm2, %v4151_v33, 0.0 }
 0x3e9   :  { %4152 = vpow2.f32 %v499_v34  ;;  %506 = vadd.xlane.f32.xlu2 %v505_v36 }
 0x3ec   :  { %v732_v37 = vpop.permute.xlu2 %731 }
 0x3ed   :  { %v737_v38 = vsel %vm428_vm15, %v732_v37, 0 }
 0x3ee   :  { %746 = vmatpush.bf16.xpose.msra.mxu1 %v737_v38 }
 0x3ef   :  { %v4153_v39 = vpop.eup %4152 }
 0x3f0   :  { %v508_v40 = vsel %vm480_vm2, %v4153_v39, 0.0 }
 0x3f1   :  { %509 = vadd.xlane.f32.xlu0 %v508_v40 }
 0x3f4   :  { %v455_v41 = vpop.permute.xlu1 %454 }
 0x3f5   :  { %v460_v42 = vsel %vm428_vm15, %v455_v41, 0 }
 0x3f6   :  { %469 = vmatpush.bf16.xpose.msra.mxu3 %v460_v42 }
 0x3fc   :  { %v535_v43 = vpop.permute.xlu1 %534 }
 0x3fd   :  { %3722 = vmatmul.msk.bf16.vlgmr.msra.gmra.mxu3 %vm428_vm15, %v4859_v22  ;;  %547 = vmatpush.bf16.msrb.mxu2 %v535_v43 }
 0x401   :  { %755 = vrot.lane.b32.xlu2 %v4859_v22, %s4630_s16 }
 0x404   :  { %v606_v44 = vpop.permute.xlu1 %605 }
 0x405   :  { %v611_v45 = vsel %vm428_vm15, %v606_v44, 0  ;;  %729 = vrot.lane.b32.xlu0 %v4844_v49, %s4633_s1 }
 0x406   :  { %620 = vmatpush.bf16.xpose.msra.mxu2 %v611_v45 }
 0x409   :  { %753 = vrot.lane.b32.xlu2 %v4859_v22, %s4633_s1 }
 0x40c   :  { %v604_v46 = vpop.permute.xlu1 %603 }
 0x411   :  { %905 = vrot.lane.b32.xlu2 %v4859_v22, %s4631_s26 }
 0x414   :  { %v882_v47 = vpop.permute.xlu1 %881 }
 0x415   :  { %v887_v48 = vsel %vm428_vm15, %v882_v47, 0 }
 0x416   :  { %896 = vmatpush.bf16.xpose.msrb.mxu1 %v887_v48 }
 0x41c   :  { %v880_v8 = vpop.permute.xlu1 %879 }
 0x424   :  { %v904_v13 = vpop.permute.xlu1 %903 }
 0x44f   :  { %v633_v30 = vpop.xlane.xlu1 %632 }
 0x45c   :  { %v507_v50 = vpop.xlane.xlu2 %506 }
 0x45d   :  { %4154 = vrcp.f32 %v507_v50 }
 0x463   :  { %v4155_v53 = vpop.eup %4154 }
 0x464   :  { %v510_v52 = vpop.xlane.xlu0 %509  ;;  %v521_v54 = vmul.f32 %v4155_v53, %v4151_v33  ;;  %v756_v58 = vpop.permute.xlu2 %755  ;;  %v643_v33 = vsub.f32 %v4877_v25, %v633_v30 }
 0x465   :  { %4156 = vrcp.f32 %v510_v52  ;;  %v761_v63 = vsel %vm428_vm15, %v756_v58, 0 }
 0x466   :  { %v525_v56 = vpack.c.bf16 %v521_v54, %v521_v54  ;;  %v647_v37 = vmul.f32 1.442695, %v643_v33 }
 0x468   :  { %v531_v60 = vunpack.c.l.b16 %v525_v56 }
 0x46b   :  { %v4157_v55 = vpop.eup %4156 }
 0x46c   :  { %v522_v57 = vmul.f32 %v4157_v55, %v4153_v39  ;;  %v754_v51 = vpop.permute.xlu2 %753 }
 0x46e   :  { %v526_v59 = vpack.c.bf16 %v522_v57, %v522_v57 }
 0x470   :  { %v532_v61 = vunpack.c.l.b16 %v526_v59 }
 0x472   :  { %v533_v62 = vpack.c.b16 %v532_v61, %v531_v60 }
 0x474   :  { %3723 = vmatmul.msk.bf16.vlgmr.msrb.gmra.mxu2 %vm480_vm2, %v533_v62  ;;  %v906_v2 = vpop.permute.xlu2 %905 }
 0x475   :  { %770 = vmatpush.bf16.xpose.msrb.mxu2 %v761_v63  ;;  %v911_v6 = vsel %vm428_vm15, %v906_v2, 0 }
 0x477   :  { %v730_v0 = vpop.permute.xlu0 %729 }
 0x478   :  { %3729 = vmatmul.msk.bf16.vlgmr.msra.gmra.mxu1 %vm428_vm15, %v730_v0 }
 0x480   :  { %v471_v1 = vpop.f32.mrf.mxu3 }
 0x481   :  { %v4900_v3 = vmul.f32 0.35355338, %v471_v1 }
 0x483   :  { %v487_v4 = vsel %vm480_vm2, %v4900_v3, -inf }
 0x484   :  { %488 = vmax.xlane.f32.xlu0 %v487_v4  ;;  %3726 = vmatmul.msk.bf16.vlgmr.msra.gmra.mxu2 %vm428_vm15, %v604_v46 }
 0x485   :  { %920 = vmatpush.bf16.xpose.msra.mxu2 %v911_v6 }
 0x488   :  { %v473_v9 = vpop.f32.mrf.mxu3  ;;  %3733 = vmatmul.msk.bf16.vlgmr.msrb.gmra.mxu1 %vm428_vm15, %v880_v8 }
 0x489   :  { %v4907_v10 = vmul.f32 0.35355338, %v473_v9 }
 0x48b   :  { %v490_v12 = vsel %vm480_vm2, %v4907_v10, -inf }
 0x48c   :  { %635 = vmax.xlane.f32.xlu0 %v634_v11  ;;  %491 = vmax.xlane.f32.xlu2 %v490_v12 }
 0x494   :  { %3730 = vmatmul.msk.bf16.vlgmr.msrb.gmra.mxu2 %vm428_vm15, %v754_v51 }
 0x4a4   :  { %3734 = vmatmul.msk.bf16.vlgmr.msra.gmra.mxu2 %vm428_vm15, %v904_v13 }
 0x4f5   :  { %v748_v15 = vpop.f32.mrf.mxu1 }
 0x4f6   :  { %v777_v16 = vmul.f32 0.35355338, %v748_v15 }
 0x4f7   :  { %v489_v17 = vpop.xlane.xlu0 %488  ;;  %v4932_v43 = vpop.f32.mrf.mxu2 }
 0x4f8   :  { %v781_v18 = vsel %vm480_vm2, %v777_v16, -inf  ;;  %v495_v61 = vsub.f32 %v4900_v3, %v489_v17 }
 0x4f9   :  { %782 = vmax.xlane.f32.xlu2 %v781_v18 }
 0x4fa   :  { %v501_v63 = vmul.f32 1.442695, %v495_v61 }
 0x4fd   :  { %v750_v20 = vpop.f32.mrf.mxu1 }
 0x4fe   :  { %v778_v21 = vmul.f32 0.35355338, %v750_v20 }
 0x4ff   :  { %v636_v24 = vpop.xlane.xlu0 %635  ;;  %v4934_v44 = vpop.f32.mrf.mxu2 }
 0x500   :  { %v644_v26 = vsub.f32 %v628_v7, %v636_v24  ;;  %v784_v28 = vsel %vm480_vm2, %v778_v21, -inf  ;;  %v492_v57 = vpop.xlane.xlu2 %491 }
 0x501   :  { %785 = vmax.xlane.f32.xlu1 %v784_v28  ;;  %v496_v2 = vsub.f32 %v4907_v10, %v492_v57 }
 0x502   :  { %v649_v29 = vmul.f32 1.442695, %v644_v26 }
 0x503   :  { %v503_v6 = vmul.f32 1.442695, %v496_v2 }
 0x504   :  { %4158 = vpow2.f32 %v649_v29 }
 0x505   :  { %v898_v31 = vpop.f32.mrf.mxu1  ;;  %4160 = vpow2.f32 %v647_v37 }
 0x506   :  { %v4916_v32 = vmul.f32 0.35355338, %v898_v31 }
 0x507   :  { %v622_v45 = vpop.f32.mrf.mxu2 }
 0x508   :  { %v931_v34 = vsel %vm480_vm2, %v4916_v32, -inf  ;;  %v4938_v48 = vmul.f32 0.35355338, %v622_v45 }
 0x509   :  { %932 = vmax.xlane.f32.xlu1 %v931_v34 }
 0x50a   :  { %v4921_v36 = vpop.eup %4158  ;;  %v637_v52 = vsel %vm480_vm2, %v4938_v48, -inf }
 0x50b   :  { %v658_v38 = vsel %vm480_vm2, %v4921_v36, 0.0  ;;  %v4926_v42 = vpop.eup %4160 }
 0x50c   :  { %659 = vadd.xlane.f32.xlu2 %v658_v38  ;;  %v655_v25 = vsel %vm480_vm2, %v4926_v42, 0.0 }
 0x50d   :  { %v900_v39 = vpop.f32.mrf.mxu1 }
 0x50e   :  { %v928_v40 = vmul.f32 0.35355338, %v900_v39 }
 0x50f   :  { %v624_v46 = vpop.f32.mrf.mxu2 }
 0x510   :  { %v934_v41 = vsel %vm480_vm2, %v928_v40, -inf  ;;  %v630_v10 = vmul.f32 0.35355338, %v624_v46 }
 0x511   :  { %935 = vmax.xlane.f32.xlu0 %v934_v41 }
 0x517   :  { %v772_v47 = vpop.f32.mrf.mxu2 }
 0x518   :  { %v4942_v53 = vmul.f32 0.35355338, %v772_v47 }
 0x519   :  { %656 = vadd.xlane.f32.xlu0 %v655_v25 }
 0x51a   :  { %v787_v54 = vsel %vm480_vm2, %v4942_v53, -inf }
 0x51f   :  { %v774_v50 = vpop.f32.mrf.mxu2 }
 0x520   :  { %v4969_v18 = vmul.f32 0.35355338, %v774_v50 }
 0x522   :  { %559 = vrot.lane.b32.xlu1 %v4859_v22, %s4624_s27  ;;  %v790_v24 = vsel %vm480_vm2, %v4969_v18, -inf }
 0x527   :  { %v922_v55 = vpop.f32.mrf.mxu2 }
 0x528   :  { %v4946_v56 = vmul.f32 0.35355338, %v922_v55 }
 0x52a   :  { %v937_v58 = vsel %vm480_vm2, %v4946_v56, -inf }
 0x52d   :  { %684 = vrot.lane.b32.xlu0 %v4844_v49, %s5947_s30 }
 0x52f   :  { %v924_v33 = vpop.f32.mrf.mxu2 }
 0x530   :  { %v4984_v38 = vmul.f32 0.35355338, %v924_v33 }
 0x557   :  { %638 = vmax.xlane.f32.xlu0 %v637_v52 }
 0x55f   :  { %788 = vmax.xlane.f32.xlu0 %v787_v54 }
 0x567   :  { %938 = vmax.xlane.f32.xlu0 %v937_v58 }
 0x56c   :  { %v783_v59 = vpop.xlane.xlu2 %782 }
 0x56d   :  { %v793_v60 = vsub.f32 %v777_v16, %v783_v59  ;;  %v640_v16 = vsel %vm480_vm2, %v630_v10, -inf }
 0x56f   :  { %v797_v62 = vmul.f32 1.442695, %v793_v60 }
 0x571   :  { %4162 = vpow2.f32 %v797_v62 }
 0x572   :  { %4164 = vpow2.f32 %v501_v63 }
 0x574   :  { %v786_v51 = vpop.xlane.xlu1 %785 }
 0x575   :  { %v794_v0 = vsub.f32 %v778_v21, %v786_v51 }
 0x577   :  { %v4951_v1 = vpop.eup %4162  ;;  %v799_v4 = vmul.f32 1.442695, %v794_v0 }
 0x578   :  { %v805_v5 = vsel %vm480_vm2, %v4951_v1, 0.0  ;;  %v4956_v7 = vpop.eup %4164 }
 0x579   :  { %4166 = vpow2.f32 %v799_v4  ;;  %806 = vadd.xlane.f32.xlu2 %v805_v5  ;;  %v511_v8 = vsel %vm480_vm2, %v4956_v7, 0.0 }
 0x57a   :  { %4168 = vpow2.f32 %v503_v6 }
 0x57c   :  { %v933_v20 = vpop.xlane.xlu1 %932 }
 0x57d   :  { %v943_v31 = vsub.f32 %v4916_v32, %v933_v20 }
 0x57f   :  { %v4958_v3 = vpop.eup %4166  ;;  %v947_v37 = vmul.f32 1.442695, %v943_v31  ;;  %v660_v54 = vpop.xlane.xlu2 %659 }
 0x580   :  { %v808_v9 = vsel %vm480_vm2, %v4958_v3, 0.0  ;;  %v4964_v12 = vpop.eup %4168 }
 0x581   :  { %512 = vadd.xlane.f32.xlu2 %v511_v8  ;;  %809 = vadd.xlane.f32.xlu1 %v808_v9  ;;  %v514_v17 = vsel %vm480_vm2, %v4964_v12, 0.0 }
 0x584   :  { %v936_v11 = vpop.xlane.xlu0 %935 }
 0x585   :  { %v944_v13 = vsub.f32 %v928_v40, %v936_v11  ;;  %v940_v40 = vsel %vm480_vm2, %v4984_v38, -inf }
 0x587   :  { %v949_v15 = vmul.f32 1.442695, %v944_v13 }
 0x589   :  { %4170 = vpow2.f32 %v949_v15  ;;  %641 = vmax.xlane.f32.xlu2 %v640_v16  ;;  %515 = vadd.xlane.f32.xlu1 %v514_v17 }
 0x58a   :  { %4172 = vpow2.f32 %v947_v37 }
 0x58c   :  { %v657_v29 = vpop.xlane.xlu0 %656 }
 0x58f   :  { %v4971_v21 = vpop.eup %4170 }
 0x590   :  { %v958_v26 = vsel %vm480_vm2, %v4971_v21, 0.0  ;;  %v4989_v45 = vpop.eup %4172 }
 0x591   :  { %791 = vmax.xlane.f32.xlu2 %v790_v24  ;;  %959 = vadd.xlane.f32.xlu1 %v958_v26  ;;  %v955_v32 = vsel %vm480_vm2, %v4989_v45, 0.0 }
 0x594   :  { %v560_v28 = vpop.permute.xlu1 %559 }
 0x595   :  { %572 = vmatpush.bf16.msrb.mxu3 %v560_v28 }
 0x59f   :  { %v685_v30 = vpop.permute.xlu0 %684 }
 0x5a0   :  { %697 = vmatpush.bf16.msra.mxu3 %v685_v30 }
 0x5a9   :  { %834 = vrot.lane.b32.xlu2 %v4844_v49, %s5945_s19 }
 0x5aa   :  { %709 = vrot.lane.b32.xlu1 %v4859_v22, %s5947_s30 }
 0x5b2   :  { %859 = vrot.lane.b32.xlu1 %v4859_v22, %s5945_s19 }
 0x5ca   :  { %v639_v34 = vpop.xlane.xlu0 %638 }
 0x5cb   :  { %v645_v39 = vsub.f32 %v4938_v48, %v639_v34 }
 0x5cd   :  { %v651_v25 = vmul.f32 1.442695, %v645_v39 }
 0x5cf   :  { %4174 = vpow2.f32 %v651_v25 }
 0x5d2   :  { %941 = vmax.xlane.f32.xlu2 %v940_v40  ;;  %v789_v41 = vpop.xlane.xlu0 %788 }
 0x5d3   :  { %v795_v51 = vsub.f32 %v4942_v53, %v789_v41 }
 0x5d5   :  { %v4994_v52 = vpop.eup %4174  ;;  %v801_v5 = vmul.f32 1.442695, %v795_v51 }
 0x5d6   :  { %v661_v48 = vsel %vm480_vm2, %v4994_v52, 0.0 }
 0x5da   :  { %v939_v46 = vpop.xlane.xlu0 %938  ;;  %956 = vadd.xlane.f32.xlu2 %v955_v32 }
 0x5db   :  { %v945_v47 = vsub.f32 %v4946_v56, %v939_v46 }
 0x5dd   :  { %v951_v50 = vmul.f32 1.442695, %v945_v47 }
 0x5df   :  { %4176 = vpow2.f32 %v951_v50 }
 0x5e2   :  { %662 = vadd.xlane.f32.xlu2 %v661_v48 }
 0x5e5   :  { %v4998_v55 = vpop.eup %4176 }
 0x5e6   :  { %v961_v57 = vsel %vm480_vm2, %v4998_v55, 0.0 }
 0x5ea   :  { %962 = vadd.xlane.f32.xlu2 %v961_v57 }
 0x5ec   :  { %v807_v58 = vpop.xlane.xlu2 %806 }
 0x5f4   :  { %v513_v59 = vpop.xlane.xlu2 %512  ;;  %v810_v60 = vpop.xlane.xlu1 %809 }
 0x5f5   :  { %4178 = vrcp.f32 %v513_v59 }
 0x5fb   :  { %v4179_v62 = vpop.eup %4178 }
 0x5fc   :  { %v642_v56 = vpop.xlane.xlu2 %641  ;;  %v516_v61 = vpop.xlane.xlu1 %515  ;;  %v523_v2 = vmul.f32 %v4179_v62, %v4956_v7 }
 0x5fd   :  { %v646_v63 = vsub.f32 %v630_v10, %v642_v56  ;;  %4180 = vrcp.f32 %v516_v61 }
 0x5fe   :  { %v527_v6 = vpack.c.bf16 %v523_v2, %v523_v2 }
 0x5ff   :  { %v653_v0 = vmul.f32 1.442695, %v646_v63 }
 0x600   :  { %v556_v13 = vunpack.c.l.b16 %v527_v6 }
 0x601   :  { %4182 = vpow2.f32 %v653_v0 }
 0x602   :  { %1009 = vrot.lane.b32.xlu2 %v4859_v22, %s5943_s29  ;;  %4184 = vrcp.f32 %v657_v29 }
 0x603   :  { %v4181_v4 = vpop.eup %4180  ;;  %4186 = vrcp.f32 %v660_v54 }
 0x604   :  { %v524_v8 = vmul.f32 %v4181_v4, %v4964_v12  ;;  %v792_v9 = vpop.xlane.xlu2 %791  ;;  %4188 = vpow2.f32 %v801_v5  ;;  %v960_v31 = vpop.xlane.xlu1 %959 }
 0x605   :  { %v796_v53 = vsub.f32 %v4969_v18, %v792_v9 }
 0x606   :  { %v528_v10 = vpack.c.bf16 %v524_v8, %v524_v8 }
 0x607   :  { %v5007_v11 = vpop.eup %4182  ;;  %v803_v17 = vmul.f32 1.442695, %v796_v53 }
 0x608   :  { %v664_v7 = vsel %vm480_vm2, %v5007_v11, 0.0  ;;  %v557_v15 = vunpack.c.l.b16 %v528_v10  ;;  %v4185_v16 = vpop.eup %4184 }
 0x609   :  { %665 = vadd.xlane.f32.xlu0 %v664_v7  ;;  %v4187_v20 = vpop.eup %4186  ;;  %v671_v26 = vmul.f32 %v4185_v16, %v4926_v42  ;;  %4190 = vpow2.f32 %v803_v17 }
 0x60a   :  { %v558_v22 = vpack.c.b16 %v557_v15, %v556_v13  ;;  %v5013_v24 = vpop.eup %4188  ;;  %v672_v18 = vmul.f32 %v4187_v20, %v4921_v36  ;;  %4192 = vrcp.f32 %v810_v60 }
 0x60b   :  { %v811_v28 = vsel %vm480_vm2, %v5013_v24, 0.0  ;;  %v675_v29 = vpack.c.bf16 %v671_v26, %v671_v26  ;;  %4194 = vrcp.f32 %v807_v58 }
 0x60c   :  { %v835_v12 = vpop.permute.xlu2 %834  ;;  %3724 = vmatmul.msk.bf16.vlgmr.msrb.gmra.mxu3 %vm480_vm2, %v558_v22  ;;  %v676_v30 = vpack.c.bf16 %v672_v18, %v672_v18 }
 0x60d   :  { %847 = vmatpush.bf16.msrb.mxu3 %v835_v12  ;;  %v681_v34 = vunpack.c.l.b16 %v675_v29 }
 0x60e   :  { %v682_v37 = vunpack.c.l.b16 %v676_v30 }
 0x60f   :  { %v4191_v33 = vpop.eup %4190 }
 0x610   :  { %v814_v39 = vsel %vm480_vm2, %v4191_v33, 0.0  ;;  %v683_v40 = vpack.c.b16 %v682_v37, %v681_v34  ;;  %v4193_v42 = vpop.eup %4192 }
 0x611   :  { %812 = vadd.xlane.f32.xlu0 %v811_v28  ;;  %v4195_v41 = vpop.eup %4194  ;;  %v822_v25 = vmul.f32 %v4193_v42, %v4958_v3 }
 0x612   :  { %v821_v32 = vmul.f32 %v4195_v41, %v4951_v1 }
 0x613   :  { %v826_v46 = vpack.c.bf16 %v822_v25, %v822_v25 }
 0x614   :  { %v825_v47 = vpack.c.bf16 %v821_v32, %v821_v32 }
 0x615   :  { %v832_v48 = vunpack.c.l.b16 %v826_v46 }
 0x616   :  { %v831_v54 = vunpack.c.l.b16 %v825_v47 }
 0x618   :  { %v833_v57 = vpack.c.b16 %v832_v48, %v831_v54 }
 0x619   :  { %815 = vadd.xlane.f32.xlu0 %v814_v39 }
 0x61c   :  { %3727 = vmatmul.msk.bf16.vlgmr.msra.gmra.mxu3 %vm480_vm2, %v683_v40  ;;  %v710_v36 = vpop.permute.xlu1 %709 }
 0x61d   :  { %722 = vmatpush.bf16.msrb.mxu0 %v710_v36 }
 0x624   :  { %v860_v50 = vpop.permute.xlu1 %859 }
 0x625   :  { %872 = vmatpush.bf16.msra.mxu0 %v860_v50 }
 0x62c   :  { %3731 = vmatmul.msk.bf16.vlgmr.msrb.gmra.mxu3 %vm480_vm2, %v833_v57 }
 0x62d   :  { %984 = vrot.lane.b32.xlu0 %v4844_v49, %s5943_s29 }
 0x645   :  { %v942_v58 = vpop.xlane.xlu2 %941 }
 0x646   :  { %v946_v59 = vsub.f32 %v4984_v38, %v942_v58 }
 0x648   :  { %v953_v60 = vmul.f32 1.442695, %v946_v59 }
 0x64a   :  { %4196 = vpow2.f32 %v953_v60 }
 0x64d   :  { %v957_v56 = vpop.xlane.xlu2 %956 }
 0x650   :  { %v5027_v3 = vpop.eup %4196 }
 0x651   :  { %v964_v1 = vsel %vm480_vm2, %v5027_v3, 0.0 }
 0x652   :  { %965 = vadd.xlane.f32.xlu1 %v964_v1 }
 0x655   :  { %v663_v61 = vpop.xlane.xlu2 %662 }
 0x656   :  { %4198 = vrcp.f32 %v663_v61 }
 0x65c   :  { %v4199_v63 = vpop.eup %4198 }
 0x65d   :  { %v673_v51 = vmul.f32 %v4199_v63, %v4994_v52  ;;  %v963_v49 = vpop.xlane.xlu2 %962 }
 0x65f   :  { %v677_v2 = vpack.c.bf16 %v673_v51, %v673_v51 }
 0x661   :  { %v706_v6 = vunpack.c.l.b16 %v677_v2 }
 0x665   :  { %v1010_v10 = vpop.permute.xlu2 %1009 }
 0x67c   :  { %v666_v62 = vpop.xlane.xlu0 %665 }
 0x67d   :  { %4200 = vrcp.f32 %v666_v62 }
 0x683   :  { %v4201_v0 = vpop.eup %4200 }
 0x684   :  { %v674_v38 = vmul.f32 %v4201_v0, %v5007_v11  ;;  %v813_v4 = vpop.xlane.xlu0 %812 }
 0x685   :  { %4202 = vrcp.f32 %v813_v4  ;;  %v3966_v4 = vld [vmem:[%s5923_s6] sm:$0xff] }
 0x686   :  { %v678_v5 = vpack.c.bf16 %v674_v38, %v674_v38  ;;  %4204 = vrcp.f32 %v957_v56 }
 0x688   :  { %v707_v8 = vunpack.c.l.b16 %v678_v5 }
 0x68a   :  { %v708_v9 = vpack.c.b16 %v707_v8, %v706_v6 }
 0x68b   :  { %v4203_v7 = vpop.eup %4202 }
 0x68c   :  { %v816_v53 = vpop.xlane.xlu0 %815  ;;  %3728 = vmatmul.msk.bf16.vlgmr.msrb.gmra.mxu0 %vm480_vm2, %v708_v9  ;;  %v823_v13 = vmul.f32 %v4203_v7, %v5013_v24  ;;  %v4205_v11 = vpop.eup %4204 }
 0x68d   :  { %4206 = vrcp.f32 %v816_v53  ;;  %1022 = vmatpush.bf16.msrb.mxu0 %v1010_v10  ;;  %v971_v20 = vmul.f32 %v4205_v11, %v4989_v45 }
 0x68e   :  { %4208 = vrcp.f32 %v960_v31  ;;  %v827_v16 = vpack.c.bf16 %v823_v13, %v823_v13 }
 0x68f   :  { %v5034_v52 = vpop.f32.mrf.mxu3  ;;  %v975_v30 = vpack.c.bf16 %v971_v20, %v971_v20  ;;  %4210 = vrcp.f32 %v963_v49  ;;  %v3967_v49 = vld [vmem:[%s5923_s6 + $0x8] sm:$0xff] }
 0x690   :  { %v856_v28 = vunpack.c.l.b16 %v827_v16  ;;  %1120 = vmatpush.bf16.msra.mxu1 %v3967_v49 }
 0x691   :  { %v981_v24 = vunpack.c.l.b16 %v975_v30 }
 0x693   :  { %v4207_v15 = vpop.eup %4206 }
 0x694   :  { %v4209_v22 = vpop.eup %4208  ;;  %v824_v17 = vmul.f32 %v4207_v15, %v4191_v33  ;;  %1121 = vmatpush.bf16.msra.mxu1 %v3966_v4 }
 0x695   :  { %v972_v26 = vmul.f32 %v4209_v22, %v4971_v21  ;;  %v4211_v32 = vpop.eup %4210 }
 0x696   :  { %v828_v12 = vpack.c.bf16 %v824_v17, %v824_v17  ;;  %v973_v46 = vmul.f32 %v4211_v32, %v4998_v55 }
 0x697   :  { %v5039_v18 = vpop.f32.mrf.mxu3  ;;  %v976_v34 = vpack.c.bf16 %v972_v26, %v972_v26 }
 0x698   :  { %v857_v29 = vunpack.c.l.b16 %v828_v12  ;;  %v977_v50 = vpack.c.bf16 %v973_v46, %v973_v46 }
 0x699   :  { %v982_v37 = vunpack.c.l.b16 %v976_v34 }
 0x69a   :  { %v858_v31 = vpack.c.b16 %v857_v29, %v856_v28  ;;  %v1006_v57 = vunpack.c.l.b16 %v977_v50 }
 0x69b   :  { %v983_v33 = vpack.c.b16 %v982_v37, %v981_v24 }
 0x69c   :  { %3732 = vmatmul.msk.bf16.vlgmr.msra.gmra.mxu0 %vm480_vm2, %v858_v31 }
 0x69f   :  { %v985_v39 = vpop.permute.xlu0 %984  ;;  %v699_v40 = vpop.f32.mrf.mxu3 }
 0x6a0   :  { %997 = vmatpush.bf16.msra.mxu3 %v985_v39 }
 0x6a3   :  { %3735 = vmatmul.msk.bf16.vlgmr.msra.gmra.mxu3 %vm480_vm2, %v983_v33 }
 0x6a7   :  { %v701_v45 = vpop.f32.mrf.mxu3 }
 0x6a8   :  { %v4024_v42 = vpack.i.bf16 %v701_v45, %v699_v40 }
 0x6aa   :  { %4025 = vrot.lane.b32.xlu0 %v4024_v42, %s5954_s13 }
 0x6af   :  { %v849_v21 = vpop.f32.mrf.mxu3 }
 0x6b7   :  { %v851_v36 = vpop.f32.mrf.mxu3 }
 0x6b8   :  { %v4029_v41 = vpack.i.bf16 %v851_v36, %v849_v21 }
 0x6ba   :  { %4030 = vrot.lane.b32.xlu0 %v4029_v41, %s5955_s3 }
 0x6c5   :  { %v966_v25 = vpop.xlane.xlu1 %965 }
 0x6c6   :  { %4212 = vrcp.f32 %v966_v25 }
 0x6cc   :  { %v4213_v47 = vpop.eup %4212 }
 0x6cd   :  { %v974_v48 = vmul.f32 %v4213_v47, %v5027_v3 }
 0x6cf   :  { %v978_v54 = vpack.c.bf16 %v974_v48, %v974_v48 }
 0x6d1   :  { %v1007_v58 = vunpack.c.l.b16 %v978_v54 }
 0x6d3   :  { %v1008_v59 = vpack.c.b16 %v1007_v58, %v1006_v57 }
 0x6d5   :  { %3736 = vmatmul.msk.bf16.vlgmr.msrb.gmra.mxu0 %vm480_vm2, %v1008_v59 }
 0x709   :  { %v724_v60 = vpop.f32.mrf.mxu0 }
 0x711   :  { %v726_v1 = vpop.f32.mrf.mxu0 }
 0x712   :  { %v4039_v56 = vpack.i.bf16 %v726_v1, %v724_v60 }
 0x714   :  { %4040 = vrot.lane.b32.xlu2 %v4039_v56, %s5954_s13 }
 0x719   :  { %v874_v62 = vpop.f32.mrf.mxu0 }
 0x71c   :  { %v4026_v5 = vpop.permute.xlu0 %4025 }
 0x71d   :  { %v4028_v8 = vunpack.i.h.bf16 %v4026_v5  ;;  %v4027_v9 = vunpack.i.l.bf16 %v4026_v5 }
 0x71f   :  { %v1078_v13 = vsel %vm428_vm15, %v4934_v44, %v4028_v8  ;;  %v1077_v11 = vsel %vm428_vm15, %v4932_v43, %v4027_v9 }
 0x721   :  { %v876_v55 = vpop.f32.mrf.mxu0 }
 0x722   :  { %v4044_v3 = vpack.i.bf16 %v876_v55, %v874_v62 }
 0x726   :  { %v999_v61 = vpop.f32.mrf.mxu3 }
 0x72c   :  { %v4031_v6 = vpop.permute.xlu0 %4030 }
 0x72d   :  { %v4033_v10 = vunpack.i.h.bf16 %v4031_v6  ;;  %v4032_v53 = vunpack.i.l.bf16 %v4031_v6 }
 0x72e   :  { %v1001_v63 = vpop.f32.mrf.mxu3 }
 0x72f   :  { %v4034_v51 = vpack.i.bf16 %v1001_v63, %v999_v61  ;;  %v1082_v16 = vsel %vm480_vm2, %v1078_v13, %v4033_v10  ;;  %v1081_v17 = vsel %vm480_vm2, %v1077_v11, %v4032_v53 }
 0x731   :  { %4035 = vrot.lane.b32.xlu0 %v4034_v51, %s5941_s0 }
 0x739   :  { %4045 = vrot.lane.b32.xlu0 %v4044_v3, %s5955_s3 }
 0x752   :  { %v1024_v0 = vpop.f32.mrf.mxu0 }
 0x75a   :  { %v1026_v2 = vpop.f32.mrf.mxu0 }
 0x75b   :  { %v4049_v38 = vpack.i.bf16 %v1026_v2, %v1024_v0 }
 0x75d   :  { %4050 = vrot.lane.b32.xlu2 %v4049_v38, %s5941_s0 }
 0x76e   :  { %v4041_v28 = vpop.permute.xlu2 %4040 }
 0x76f   :  { %v4043_v30 = vunpack.i.h.bf16 %v4041_v28  ;;  %v4042_v44 = vunpack.i.l.bf16 %v4041_v28 }
 0x771   :  { %v1080_v24 = vsel %vm428_vm15, %v5039_v18, %v4043_v30  ;;  %v1079_v37 = vsel %vm428_vm15, %v5034_v52, %v4042_v44  ;;  %v4118_v18 = vld [vmem:[%s5924_s7] ss:$0 sm:$0xff] }
 0x7a3   :  { %v4036_v7 = vpop.permute.xlu0 %4035 }
 0x7a4   :  { %v4038_v15 = vunpack.i.h.bf16 %v4036_v7  ;;  %v4037_v22 = vunpack.i.l.bf16 %v4036_v7  ;;  %v3969_v7 = vld [vmem:[%s5925_s8 + $0x8] sm:$0xff] }
 0x7a5   :  { %1283 = vmatpush.bf16.msrb.mxu2 %v3969_v7 }
 0x7a6   :  { %v1087_v20 = vsel %vm1085_vm3, %v1082_v16, %v4038_v15  ;;  %v1086_v12 = vsel %vm1085_vm3, %v1081_v17, %v4037_v22  ;;  %v3968_v22 = vld [vmem:[%s5925_s8] sm:$0xff] }
 0x7a7   :  { %v1090_v26 = vpack.c.bf16 %v1087_v20, %v1086_v12 }
 0x7a9   :  { %3745 = vmatmul.msk.bf16.vlgmr.msra.gmra.mxu1 %vm260_vm1, %v1090_v26  ;;  %1284 = vmatpush.bf16.msrb.mxu2 %v3968_v22  ;;  %v4121_v22 = vld [vmem:[%s5926_s9] ss:$0 sm:$0xff] }
 0x7ab   :  { %v4046_v29 = vpop.permute.xlu0 %4045 }
 0x7ac   :  { %v4048_v31 = vunpack.i.h.bf16 %v4046_v29  ;;  %v4047_v34 = vunpack.i.l.bf16 %v4046_v29 }
 0x7ae   :  { %v1083_v33 = vsel %vm480_vm2, %v1079_v37, %v4047_v34  ;;  %v1084_v45 = vsel %vm480_vm2, %v1080_v24, %v4048_v31 }
 0x7b7   :  { %v4051_v43 = vpop.permute.xlu2 %4050 }
 0x7b8   :  { %v4053_v39 = vunpack.i.h.bf16 %v4051_v43  ;;  %v4052_v40 = vunpack.i.l.bf16 %v4051_v43 }
 0x7ba   :  { %v1088_v42 = vsel %vm1085_vm3, %v1083_v33, %v4052_v40  ;;  %v1089_v21 = vsel %vm1085_vm3, %v1084_v45, %v4053_v39 }
 0x7bb   :  { %v1091_v36 = vpack.c.bf16 %v1089_v21, %v1088_v42  ;;  %v4119_v42 = vld [vmem:[#allocation13] ss:$0 sm:$0xff] }
 0x7bd   :  { %3746 = vmatmul.msk.bf16.gmra.mxu1 %vm260_vm1, %v1091_v36 }
 0x826   :  { %v1123_v41 = vpop.f32.mrf.mxu1 }
 0x827   :  { %v1133_v52 = vadd.f32 %v1123_v41, %v4789_v14 }
 0x829   :  { %v5080_v25 = vadd.f32 %v4118_v18, %v1133_v52 }
 0x82b   :  { %v1147_v32 = vsel %vm260_vm1, %v5080_v25, 0.0 }
 0x82c   :  { %1148 = vadd.xlane.f32.xlu0 %v1147_v32 }
 0x82e   :  { %v1125_v46 = vpop.f32.mrf.mxu1 }
 0x82f   :  { %v1134_v47 = vadd.f32 %v1125_v46, %v4793_v19 }
 0x831   :  { %v5085_v50 = vadd.f32 %v4118_v18, %v1134_v47 }
 0x833   :  { %v1150_v48 = vsel %vm260_vm1, %v5085_v50, 0.0 }
 0x834   :  { %1151 = vadd.xlane.f32.xlu1 %v1150_v48 }
 0x83a   :  { %v1128_v54 = vpop.f32.mrf.mxu1 }
 0x83b   :  { %v1135_v57 = vadd.f32 %v1128_v54, %v4797_v23  ;;  %v4120_v54 = vld [vmem:[%s5932_s15] ss:$0 sm:$0xff] }
 0x83d   :  { %v5090_v58 = vadd.f32 %v4118_v18, %v1135_v57 }
 0x83f   :  { %v1153_v14 = vsel %vm260_vm1, %v5090_v58, 0.0 }
 0x840   :  { %1154 = vadd.xlane.f32.xlu2 %v1153_v14 }
 0x842   :  { %v1130_v59 = vpop.f32.mrf.mxu1 }
 0x843   :  { %v1136_v60 = vadd.f32 %v1130_v59, %v4801_v27 }
 0x845   :  { %v5095_v1 = vadd.f32 %v4118_v18, %v1136_v60 }
 0x847   :  { %v1156_v19 = vsel %vm260_vm1, %v5095_v1, 0.0 }
 0x848   :  { %1157 = vadd.xlane.f32.xlu1 %v1156_v19 }
 0x89f   :  { %v1149_v56 = vpop.xlane.xlu0 %1148 }
 0x8a0   :  { %v1159_v61 = vmul.f32 %v1149_v56, %v4805_v35 }
 0x8a2   :  { %v1163_v23 = vsub.f32 %v5080_v25, %v1159_v61 }
 0x8a4   :  { %v1167_v62 = vmul.f32 %v1163_v23, %v1163_v23 }
 0x8a6   :  { %v1171_v63 = vsel %vm260_vm1, %v1167_v62, 0.0 }
 0x8a7   :  { %1172 = vadd.xlane.f32.xlu1 %v1171_v63  ;;  %v1152_v51 = vpop.xlane.xlu1 %1151 }
 0x8a8   :  { %v1160_v55 = vmul.f32 %v1152_v51, %v4805_v35 }
 0x8aa   :  { %v1164_v27 = vsub.f32 %v5085_v50, %v1160_v55 }
 0x8ac   :  { %v1168_v3 = vmul.f32 %v1164_v27, %v1164_v27 }
 0x8ae   :  { %v1174_v49 = vsel %vm260_vm1, %v1168_v3, 0.0 }
 0x8af   :  { %1175 = vadd.xlane.f32.xlu1 %v1174_v49 }
 0x8b3   :  { %v1155_v0 = vpop.xlane.xlu2 %1154 }
 0x8b4   :  { %v1161_v2 = vmul.f32 %v1155_v0, %v4805_v35 }
 0x8b6   :  { %v5107_v38 = vsub.f32 %v5090_v58, %v1161_v2 }
 0x8b8   :  { %v1169_v4 = vmul.f32 %v5107_v38, %v5107_v38 }
 0x8ba   :  { %v1177_v5 = vsel %vm260_vm1, %v1169_v4, 0.0 }
 0x8bb   :  { %1178 = vadd.xlane.f32.xlu1 %v1177_v5  ;;  %v1158_v6 = vpop.xlane.xlu1 %1157 }
 0x8bc   :  { %v1162_v8 = vmul.f32 %v1158_v6, %v4805_v35 }
 0x8be   :  { %v5114_v9 = vsub.f32 %v5095_v1, %v1162_v8 }
 0x8c0   :  { %v1170_v10 = vmul.f32 %v5114_v9, %v5114_v9 }
 0x8c2   :  { %v1180_v53 = vsel %vm260_vm1, %v1170_v10, 0.0 }
 0x8c3   :  { %1181 = vadd.xlane.f32.xlu0 %v1180_v53 }
 0x91a   :  { %v1173_v13 = vpop.xlane.xlu1 %1172 }
 0x91b   :  { %v1183_v11 = vmul.f32 %v1173_v13, %v4805_v35  ;;  %v3973_v13 = vld [vmem:[%s5927_s10 + $0x18] sm:$0xff] }
 0x91c   :  { %1344 = vmatpush.bf16.msrb.mxu3 %v3973_v13 }
 0x91d   :  { %v1187_v15 = vadd.f32 1e-05, %v1183_v11  ;;  %v3970_v11 = vld [vmem:[%s5927_s10] sm:$0xff] }
 0x91f   :  { %4214 = vrsqrt.f32 %v1187_v15  ;;  %vm1197_vm5 = vweird.f32 %v1187_v15 }
 0x922   :  { %v1176_v16 = vpop.xlane.xlu1 %1175 }
 0x923   :  { %v1184_v17 = vmul.f32 %v1176_v16, %v4805_v35 }
 0x925   :  { %v4215_v20 = vpop.eup %4214  ;;  %v1188_v12 = vadd.f32 1e-05, %v1184_v17 }
 0x926   :  { %v1192_v26 = vmul.f32 %v4215_v20, %v1187_v15  ;;  %vm1198_vm4 = vweird.f32 %v4215_v20 }
 0x927   :  { %4216 = vrsqrt.f32 %v1188_v12  ;;  %vm1199_vm6 = vmor %vm1197_vm5, %vm1198_vm4  ;;  %vm1207_vm8 = vweird.f32 %v1188_v12 }
 0x928   :  { %v1193_v28 = vmul.f32 %v4215_v20, %v1192_v26 }
 0x92a   :  { %v1194_v29 = vmul.f32 0.5, %v1193_v28 }
 0x92c   :  { %v1195_v30 = vsub.f32 1.5, %v1194_v29 }
 0x92d   :  { %v4217_v44 = vpop.eup %4216 }
 0x92e   :  { %v1196_v31 = vmul.f32 %v4215_v20, %v1195_v30  ;;  %v1202_v34 = vmul.f32 %v4217_v44, %v1188_v12  ;;  %v1179_v43 = vpop.xlane.xlu1 %1178  ;;  %vm1208_vm7 = vweird.f32 %v4217_v44 }
 0x92f   :  { %v1185_v24 = vmul.f32 %v1179_v43, %v4805_v35  ;;  %vm1209_vm9 = vmor %vm1207_vm8, %vm1208_vm7 }
 0x930   :  { %v1203_v37 = vmul.f32 %v4217_v44, %v1202_v34  ;;  %v1200_v40 = vsel %vm1199_vm6, %v4215_v20, %v1196_v31 }
 0x931   :  { %v1189_v39 = vadd.f32 1e-05, %v1185_v24  ;;  %v1231_v21 = vmul.f32 %v1200_v40, %v1163_v23 }
 0x932   :  { %v1204_v33 = vmul.f32 0.5, %v1203_v37  ;;  %v4122_v37 = vld [vmem:[#allocation8] ss:$0 sm:$0xff] }
 0x933   :  { %4218 = vrsqrt.f32 %v1189_v39  ;;  %v1238_v46 = vmul.f32 %v4119_v42, %v1231_v21  ;;  %vm1217_vm11 = vweird.f32 %v1189_v39 }
 0x934   :  { %v1205_v45 = vsub.f32 1.5, %v1204_v33 }
 0x935   :  { %v1245_v60 = vadd.f32 %v4120_v54, %v1238_v46 }
 0x936   :  { %v1206_v36 = vmul.f32 %v4217_v44, %v1205_v45  ;;  %v1182_v18 = vpop.xlane.xlu0 %1181 }
 0x937   :  { %v1186_v41 = vmul.f32 %v1182_v18, %v4805_v35 }
 0x938   :  { %v1210_v52 = vsel %vm1209_vm9, %v4217_v44, %v1206_v36 }
 0x939   :  { %v4219_v32 = vpop.eup %4218  ;;  %v1232_v47 = vmul.f32 %v1210_v52, %v1164_v27  ;;  %v1190_v48 = vadd.f32 1e-05, %v1186_v41 }
 0x93a   :  { %v1212_v57 = vmul.f32 %v4219_v32, %v1189_v39  ;;  %vm1218_vm10 = vweird.f32 %v4219_v32 }
 0x93b   :  { %v1239_v14 = vmul.f32 %v4119_v42, %v1232_v47  ;;  %4220 = vrsqrt.f32 %v1190_v48  ;;  %vm1219_vm12 = vmor %vm1217_vm11, %vm1218_vm10  ;;  %vm1227_vm14 = vweird.f32 %v1190_v48 }
 0x93c   :  { %v1213_v59 = vmul.f32 %v4219_v32, %v1212_v57 }
 0x93d   :  { %v1246_v19 = vadd.f32 %v4120_v54, %v1239_v14 }
 0x93e   :  { %v1214_v56 = vmul.f32 0.5, %v1213_v59 }
 0x93f   :  { %v1249_v61 = vpack.c.bf16 %v1246_v19, %v1245_v60 }
 0x940   :  { %v1215_v23 = vsub.f32 1.5, %v1214_v56 }
 0x941   :  { %v4221_v62 = vpop.eup %4220  ;;  %3755 = vmatmul.msk.bf16.vlgmr.msrb.gmra.mxu2 %vm260_vm1, %v1249_v61 }
 0x942   :  { %v1216_v63 = vmul.f32 %v4219_v32, %v1215_v23  ;;  %v1222_v51 = vmul.f32 %v4221_v62, %v1190_v48  ;;  %vm1228_vm13 = vweird.f32 %v4221_v62 }
 0x943   :  { %vm1229_vm4 = vmor %vm1227_vm14, %vm1228_vm13 }
 0x944   :  { %v1223_v55 = vmul.f32 %v4221_v62, %v1222_v51  ;;  %v1220_v27 = vsel %vm1219_vm12, %v4219_v32, %v1216_v63 }
 0x945   :  { %v1233_v0 = vmul.f32 %v1220_v27, %v5107_v38  ;;  %v3972_v38 = vld [vmem:[%s5927_s10 + $0x10] sm:$0xff] }
 0x946   :  { %v1224_v3 = vmul.f32 0.5, %v1223_v55  ;;  %1345 = vmatpush.bf16.msrb.mxu3 %v3972_v38 }
 0x947   :  { %v1240_v6 = vmul.f32 %v4119_v42, %v1233_v0 }
 0x948   :  { %v1225_v49 = vsub.f32 1.5, %v1224_v3 }
 0x949   :  { %v1247_v10 = vadd.f32 %v4120_v54, %v1240_v6 }
 0x94a   :  { %v1226_v2 = vmul.f32 %v4221_v62, %v1225_v49 }
 0x94c   :  { %v1230_v4 = vsel %vm1229_vm4, %v4221_v62, %v1226_v2 }
 0x94d   :  { %v1234_v5 = vmul.f32 %v1230_v4, %v5114_v9  ;;  %v3971_v9 = vld [vmem:[%s5927_s10 + $0x8] sm:$0xff]  ;;  %v3975_v4 = vld [vmem:[%s5921_s4 + $0x18] sm:$0xff] }
 0x94e   :  { %1346 = vmatpush.bf16.msrb.mxu3 %v3971_v9  ;;  %1513 = vmatpush.bf16.msra.mxu0 %v3975_v4 }
 0x94f   :  { %v1241_v8 = vmul.f32 %v4119_v42, %v1234_v5 }
 0x951   :  { %v1248_v53 = vadd.f32 %v4120_v54, %v1241_v8 }
 0x952   :  { %1347 = vmatpush.bf16.msrb.mxu3 %v3970_v11 }
 0x953   :  { %v1250_v7 = vpack.c.bf16 %v1248_v53, %v1247_v10  ;;  %v3974_v10 = vld [vmem:[%s5921_s4 + $0x10] sm:$0xff] }
 0x954   :  { %1514 = vmatpush.bf16.msra.mxu0 %v3974_v10 }
 0x955   :  { %3756 = vmatmul.msk.bf16.gmra.mxu2 %vm260_vm1, %v1250_v7 }
 0x9c4   :  { %v1286_v15 = vpop.f32.mrf.mxu2 }
 0x9c5   :  { %v1287_v16 = vadd.f32 %v4121_v22, %v1286_v15 }
 0x9c7   :  { %v1296_v12 = vmax.f32 %v1287_v16, 0.0 }
 0x9cc   :  { %v1288_v17 = vpop.f32.mrf.mxu2 }
 0x9cd   :  { %v1289_v20 = vadd.f32 %v4121_v22, %v1288_v17 }
 0x9cf   :  { %v1297_v26 = vmax.f32 %v1289_v20, 0.0 }
 0x9d1   :  { %v1300_v28 = vpack.c.bf16 %v1297_v26, %v1296_v12 }
 0x9d3   :  { %3773 = vmatmul.msk.bf16.vlgmr.msrb.gmra.mxu3 %vm226_vm0, %v1300_v28 }
 0x9d8   :  { %v1291_v29 = vpop.f32.mrf.mxu2 }
 0x9d9   :  { %v1292_v30 = vadd.f32 %v4121_v22, %v1291_v29 }
 0x9db   :  { %v1298_v34 = vmax.f32 %v1292_v30, 0.0 }
 0x9e0   :  { %v1293_v44 = vpop.f32.mrf.mxu2 }
 0x9e1   :  { %v1294_v31 = vadd.f32 %v4121_v22, %v1293_v44 }
 0x9e3   :  { %v1299_v43 = vmax.f32 %v1294_v31, 0.0 }
 0x9e5   :  { %v1301_v24 = vpack.c.bf16 %v1299_v43, %v1298_v34  ;;  %v4123_v34 = vld [vmem:[#allocation10 + $0x1] ss:$0 sm:$0xff] }
 0x9e7   :  { %3774 = vmatmul.msk.bf16.gmra.mxu3 %vm226_vm0, %v1301_v24 }
 0xa56   :  { %v1349_v39 = vpop.f32.mrf.mxu3 }
 0xa57   :  { %v1359_v40 = vadd.f32 %v1349_v39, %v5080_v25 }
 0xa59   :  { %v5154_v33 = vadd.f32 %v4122_v37, %v1359_v40 }
 0xa5b   :  { %v1375_v45 = vsel %vm260_vm1, %v5154_v33, 0.0 }
 0xa5c   :  { %1376 = vadd.xlane.f32.xlu1 %v1375_v45 }
 0xa5e   :  { %v1351_v42 = vpop.f32.mrf.mxu3 }
 0xa5f   :  { %v1360_v21 = vadd.f32 %v1351_v42, %v5085_v50 }
 0xa61   :  { %v5159_v36 = vadd.f32 %v4122_v37, %v1360_v21  ;;  %v4124_v21 = vld [vmem:[#allocation11 + $0x1] ss:$0 sm:$0xff] }
 0xa63   :  { %v1378_v18 = vsel %vm260_vm1, %v5159_v36, 0.0 }
 0xa64   :  { %1379 = vadd.xlane.f32.xlu2 %v1378_v18 }
 0xa6a   :  { %v1354_v41 = vpop.f32.mrf.mxu3 }
 0xa6b   :  { %v1361_v52 = vadd.f32 %v1354_v41, %v5090_v58 }
 0xa6d   :  { %v5164_v32 = vadd.f32 %v4122_v37, %v1361_v52 }
 0xa6f   :  { %v1381_v25 = vsel %vm260_vm1, %v5164_v32, 0.0 }
 0xa70   :  { %1382 = vadd.xlane.f32.xlu0 %v1381_v25 }
 0xa72   :  { %v1356_v46 = vpop.f32.mrf.mxu3 }
 0xa73   :  { %v1362_v47 = vadd.f32 %v1356_v46, %v5095_v1 }
 0xa75   :  { %v5169_v48 = vadd.f32 %v4122_v37, %v1362_v47 }
 0xa77   :  { %v1384_v50 = vsel %vm260_vm1, %v5169_v48, 0.0 }
 0xa78   :  { %1385 = vadd.xlane.f32.xlu1 %v1384_v50 }
 0xacf   :  { %v1377_v54 = vpop.xlane.xlu1 %1376 }
 0xad0   :  { %v1387_v57 = vmul.f32 %v1377_v54, %v4805_v35 }
 0xad2   :  { %v1391_v58 = vsub.f32 %v5154_v33, %v1387_v57 }
 0xad4   :  { %v1395_v14 = vmul.f32 %v1391_v58, %v1391_v58 }
 0xad6   :  { %v1399_v59 = vsel %vm260_vm1, %v1395_v14, 0.0 }
 0xad7   :  { %v1380_v60 = vpop.xlane.xlu2 %1379  ;;  %1400 = vadd.xlane.f32.xlu2 %v1399_v59 }
 0xad8   :  { %v1388_v19 = vmul.f32 %v1380_v60, %v4805_v35 }
 0xada   :  { %v1392_v1 = vsub.f32 %v5159_v36, %v1388_v19 }
 0xadc   :  { %v1396_v56 = vmul.f32 %v1392_v1, %v1392_v1 }
 0xade   :  { %v1402_v61 = vsel %vm260_vm1, %v1396_v56, 0.0 }
 0xadf   :  { %1403 = vadd.xlane.f32.xlu0 %v1402_v61 }
 0xae3   :  { %v1383_v23 = vpop.xlane.xlu0 %1382 }
 0xae4   :  { %v1389_v62 = vmul.f32 %v1383_v23, %v4805_v35 }
 0xae6   :  { %v5181_v63 = vsub.f32 %v5164_v32, %v1389_v62 }
 0xae8   :  { %v1397_v51 = vmul.f32 %v5181_v63, %v5181_v63 }
 0xaea   :  { %v1405_v55 = vsel %vm260_vm1, %v1397_v51, 0.0 }
 0xaeb   :  { %1406 = vadd.xlane.f32.xlu1 %v1405_v55  ;;  %v1386_v27 = vpop.xlane.xlu1 %1385 }
 0xaec   :  { %v1390_v3 = vmul.f32 %v1386_v27, %v4805_v35 }
 0xaee   :  { %v5188_v49 = vsub.f32 %v5169_v48, %v1390_v3 }
 0xaf0   :  { %v1398_v0 = vmul.f32 %v5188_v49, %v5188_v49 }
 0xaf2   :  { %v1408_v2 = vsel %vm260_vm1, %v1398_v0, 0.0 }
 0xaf3   :  { %1409 = vadd.xlane.f32.xlu2 %v1408_v2 }
 0xb4a   :  { %v1401_v5 = vpop.xlane.xlu2 %1400 }
 0xb4b   :  { %v1411_v6 = vmul.f32 %v1401_v5, %v4805_v35 }
 0xb4d   :  { %v1415_v8 = vadd.f32 1e-05, %v1411_v6  ;;  %v4125_v6 = vld [vmem:[%s5922_s5 + $0x1] ss:$0 sm:$0xff] }
 0xb4f   :  { %4222 = vrsqrt.f32 %v1415_v8  ;;  %vm1425_vm6 = vweird.f32 %v1415_v8 }
 0xb52   :  { %v1404_v53 = vpop.xlane.xlu0 %1403 }
 0xb53   :  { %v1412_v7 = vmul.f32 %v1404_v53, %v4805_v35 }
 0xb55   :  { %v4223_v13 = vpop.eup %4222  ;;  %v1416_v38 = vadd.f32 1e-05, %v1412_v7 }
 0xb56   :  { %v1420_v9 = vmul.f32 %v4223_v13, %v1415_v8  ;;  %vm1426_vm5 = vweird.f32 %v4223_v13 }
 0xb57   :  { %4224 = vrsqrt.f32 %v1416_v38  ;;  %vm1427_vm7 = vmor %vm1425_vm6, %vm1426_vm5  ;;  %vm1435_vm9 = vweird.f32 %v1416_v38 }
 0xb58   :  { %v1421_v11 = vmul.f32 %v4223_v13, %v1420_v9 }
 0xb5a   :  { %v1422_v15 = vmul.f32 0.5, %v1421_v11 }
 0xb5c   :  { %v1423_v22 = vsub.f32 1.5, %v1422_v15 }
 0xb5d   :  { %v4225_v16 = vpop.eup %4224 }
 0xb5e   :  { %v1424_v17 = vmul.f32 %v4223_v13, %v1423_v22  ;;  %v1430_v20 = vmul.f32 %v4225_v16, %v1416_v38  ;;  %v1407_v12 = vpop.xlane.xlu1 %1406  ;;  %vm1436_vm8 = vweird.f32 %v4225_v16 }
 0xb5f   :  { %v1413_v26 = vmul.f32 %v1407_v12, %v4805_v35  ;;  %vm1437_vm10 = vmor %vm1435_vm9, %vm1436_vm8 }
 0xb60   :  { %v1431_v28 = vmul.f32 %v4225_v16, %v1430_v20  ;;  %v1428_v30 = vsel %vm1427_vm7, %v4223_v13, %v1424_v17 }
 0xb61   :  { %v1417_v29 = vadd.f32 1e-05, %v1413_v26  ;;  %v1459_v43 = vmul.f32 %v1428_v30, %v1391_v58 }
 0xb62   :  { %v1432_v44 = vmul.f32 0.5, %v1431_v28 }
 0xb63   :  { %4226 = vrsqrt.f32 %v1417_v29  ;;  %v1466_v42 = vmul.f32 %v4123_v34, %v1459_v43  ;;  %vm1445_vm12 = vweird.f32 %v1417_v29 }
 0xb64   :  { %v1433_v31 = vsub.f32 1.5, %v1432_v44 }
 0xb65   :  { %v1473_v50 = vadd.f32 %v4124_v21, %v1466_v42 }
 0xb66   :  { %v1434_v24 = vmul.f32 %v4225_v16, %v1433_v31  ;;  %v1410_v37 = vpop.xlane.xlu2 %1409 }
 0xb67   :  { %v1414_v39 = vmul.f32 %v1410_v37, %v4805_v35 }
 0xb68   :  { %v1438_v40 = vsel %vm1437_vm10, %v4225_v16, %v1434_v24 }
 0xb69   :  { %v4227_v45 = vpop.eup %4226  ;;  %v1460_v18 = vmul.f32 %v1438_v40, %v1392_v1  ;;  %v1418_v41 = vadd.f32 1e-05, %v1414_v39 }
 0xb6a   :  { %v1440_v52 = vmul.f32 %v4227_v45, %v1417_v29  ;;  %vm1446_vm11 = vweird.f32 %v4227_v45 }
 0xb6b   :  { %v1467_v25 = vmul.f32 %v4123_v34, %v1460_v18  ;;  %4228 = vrsqrt.f32 %v1418_v41  ;;  %vm1447_vm13 = vmor %vm1445_vm12, %vm1446_vm11  ;;  %vm1455_vm4 = vweird.f32 %v1418_v41 }
 0xb6c   :  { %v1441_v46 = vmul.f32 %v4227_v45, %v1440_v52 }
 0xb6d   :  { %v1474_v47 = vadd.f32 %v4124_v21, %v1467_v25 }
 0xb6e   :  { %v1442_v54 = vmul.f32 0.5, %v1441_v46 }
 0xb6f   :  { %v1477_v57 = vpack.c.bf16 %v1474_v47, %v1473_v50 }
 0xb70   :  { %v1443_v58 = vsub.f32 1.5, %v1442_v54 }
 0xb71   :  { %v4229_v14 = vpop.eup %4228  ;;  %3788 = vmatmul.msk.bf16.vlgmr.msra.gmra.mxu0 %vm260_vm1, %v1477_v57 }
 0xb72   :  { %v1444_v59 = vmul.f32 %v4227_v45, %v1443_v58  ;;  %v1450_v60 = vmul.f32 %v4229_v14, %v1418_v41  ;;  %vm1456_vm14 = vweird.f32 %v4229_v14 }
 0xb73   :  { %vm1457_vm5 = vmor %vm1455_vm4, %vm1456_vm14 }
 0xb74   :  { %v1451_v19 = vmul.f32 %v4229_v14, %v1450_v60  ;;  %v1448_v1 = vsel %vm1447_vm13, %v4227_v45, %v1444_v59 }
 0xb75   :  { %v1461_v23 = vmul.f32 %v1448_v1, %v5181_v63 }
 0xb76   :  { %v1452_v56 = vmul.f32 0.5, %v1451_v19 }
 0xb77   :  { %v1468_v27 = vmul.f32 %v4123_v34, %v1461_v23 }
 0xb78   :  { %v1453_v61 = vsub.f32 1.5, %v1452_v56 }
 0xb79   :  { %v1475_v0 = vadd.f32 %v4124_v21, %v1468_v27 }
 0xb7a   :  { %v1454_v62 = vmul.f32 %v4229_v14, %v1453_v61 }
 0xb7c   :  { %v1458_v51 = vsel %vm1457_vm5, %v4229_v14, %v1454_v62 }
 0xb7d   :  { %v1462_v55 = vmul.f32 %v1458_v51, %v5188_v49 }
 0xb7f   :  { %v1469_v3 = vmul.f32 %v4123_v34, %v1462_v55 }
 0xb81   :  { %v1476_v2 = vadd.f32 %v4124_v21, %v1469_v3 }
 0xb83   :  { %v1478_v4 = vpack.c.bf16 %v1476_v2, %v1475_v0 }
 0xb85   :  { %3789 = vmatmul.msk.bf16.gmra.mxu0 %vm260_vm1, %v1478_v4 }
 0xbee   :  { %v1516_v5 = vpop.f32.mrf.mxu0 }
 0xbef   :  { %v1517_v8 = vadd.f32 %v4125_v6, %v1516_v5 }
 0xbf1   :  { %v1526_v10 = vpack.c.bf16 %v1517_v8, %v1517_v8 }
 0xbf3   :  { %v1532_v13 = vunpack.c.l.b16 %v1526_v10 }
 0xbf6   :  { %v1518_v63 = vpop.f32.mrf.mxu0 }
 0xbf7   :  { %v1519_v53 = vadd.f32 %v4125_v6, %v1518_v63 }
 0xbf9   :  { %v1527_v7 = vpack.c.bf16 %v1519_v53, %v1519_v53 }
 0xbfb   :  { %v1533_v38 = vunpack.c.l.b16 %v1527_v7 }
 0xbfd   :  { %v5210_v49 = vpack.c.b16 %v1533_v38, %v1532_v13 }
 0xbff   :  { %1535 = vrot.lane.b32.xlu0 %v5210_v49, %s4628_s14  ;;  %1688 = vrot.lane.b32.xlu2 %v5210_v49, %s4627_s25 }
 0xc02   :  { %v1521_v9 = vpop.f32.mrf.mxu0 }
 0xc03   :  { %v1522_v11 = vadd.f32 %v4125_v6, %v1521_v9 }
 0xc05   :  { %v1528_v22 = vpack.c.bf16 %v1522_v11, %v1522_v11 }
 0xc07   :  { %1686 = vrot.lane.b32.xlu0 %v5210_v49, %s4629_s28  ;;  %1838 = vrot.lane.b32.xlu2 %v5210_v49, %s4630_s16  ;;  %v1559_v20 = vunpack.c.l.b16 %v1528_v22 }
 0xc0a   :  { %v1523_v15 = vpop.f32.mrf.mxu0 }
 0xc0b   :  { %v1524_v16 = vadd.f32 %v4125_v6, %v1523_v15 }
 0xc0d   :  { %v1529_v17 = vpack.c.bf16 %v1524_v16, %v1524_v16 }
 0xc0f   :  { %v1560_v12 = vunpack.c.l.b16 %v1529_v17 }
 0xc11   :  { %v5220_v26 = vpack.c.b16 %v1560_v12, %v1559_v20 }
 0xc13   :  { %1862 = vrot.lane.b32.xlu2 %v5220_v26, %s4630_s16  ;;  %1710 = vrot.lane.b32.xlu0 %v5220_v26, %s4629_s28 }
 0xc14   :  { %1562 = vrot.lane.b32.xlu1 %v5220_v26, %s4628_s14 }
 0xc1b   :  { %1986 = vrot.lane.b32.xlu2 %v5210_v49, %s4632_s11  ;;  %1988 = vrot.lane.b32.xlu0 %v5210_v49, %s4631_s26 }
 0xc1c   :  { %1712 = vrot.lane.b32.xlu1 %v5220_v26, %s4627_s25 }
 0xc23   :  { %2012 = vrot.lane.b32.xlu0 %v5220_v26, %s4631_s26 }
 0xc24   :  { %1836 = vrot.lane.b32.xlu1 %v5210_v49, %s4633_s1 }
 0xc2c   :  { %1860 = vrot.lane.b32.xlu1 %v5220_v26, %s4633_s1 }
 0xc34   :  { %2010 = vrot.lane.b32.xlu1 %v5220_v26, %s4632_s11 }
 0xc59   :  { %v1689_v28 = vpop.permute.xlu2 %1688 }
 0xc5a   :  { %v1694_v44 = vsel %vm428_vm15, %v1689_v28, 0 }
 0xc61   :  { %v1839_v31 = vpop.permute.xlu2 %1838 }
 0xc62   :  { %v1844_v34 = vsel %vm428_vm15, %v1839_v31, 0 }
 0xc6d   :  { %v1863_v40 = vpop.permute.xlu2 %1862 }
 0xc6e   :  { %v1868_v41 = vsel %vm428_vm15, %v1863_v40, 0 }
 0xc71   :  { %v1536_v29 = vpop.permute.xlu0 %1535 }
 0xc72   :  { %v1541_v30 = vsel %vm428_vm15, %v1536_v29, 0 }
 0xc73   :  { %1550 = vmatpush.bf16.xpose.msrb.mxu1 %v1541_v30 }
 0xc75   :  { %v1987_v47 = vpop.permute.xlu2 %1986 }
 0xc79   :  { %v1687_v43 = vpop.permute.xlu0 %1686 }
 0xc7a   :  { %3790 = vmatmul.msk.bf16.vlgmr.msrb.gmra.mxu1 %vm428_vm15, %v5210_v49 }
 0xc7b   :  { %1703 = vmatpush.bf16.xpose.msra.mxu1 %v1694_v44 }
 0xc83   :  { %1853 = vmatpush.bf16.xpose.msrb.mxu1 %v1844_v34 }
 0xc85   :  { %v1711_v24 = vpop.permute.xlu0 %1710 }
 0xc86   :  { %v1563_v37 = vpop.permute.xlu1 %1562 }
 0xc87   :  { %v1568_v39 = vsel %vm428_vm15, %v1563_v37, 0 }
 0xc88   :  { %1577 = vmatpush.bf16.xpose.msra.mxu2 %v1568_v39 }
 0xc8a   :  { %3794 = vmatmul.msk.bf16.vlgmr.msra.gmra.mxu1 %vm428_vm15, %v1687_v43 }
 0xc8d   :  { %v1989_v45 = vpop.permute.xlu0 %1988 }
 0xc8e   :  { %v1994_v42 = vsel %vm428_vm15, %v1989_v45, 0  ;;  %v1713_v21 = vpop.permute.xlu1 %1712 }
 0xc8f   :  { %v1718_v18 = vsel %vm428_vm15, %v1713_v21, 0  ;;  %3791 = vmatmul.msk.bf16.vlgmr.msra.gmra.mxu2 %vm428_vm15, %v5220_v26  ;;  %2003 = vmatpush.bf16.xpose.msra.mxu1 %v1994_v42 }
 0xc90   :  { %1727 = vmatpush.bf16.xpose.msrb.mxu2 %v1718_v18 }
 0xc95   :  { %v2013_v25 = vpop.permute.xlu0 %2012 }
 0xc96   :  { %v1837_v52 = vpop.permute.xlu1 %1836  ;;  %v2018_v46 = vsel %vm428_vm15, %v2013_v25, 0 }
 0xc98   :  { %1877 = vmatpush.bf16.xpose.msra.mxu2 %v1868_v41 }
 0xc9a   :  { %3798 = vmatmul.msk.bf16.vlgmr.msrb.gmra.mxu1 %vm428_vm15, %v1837_v52 }
 0xc9e   :  { %v1861_v50 = vpop.permute.xlu1 %1860 }
 0xc9f   :  { %3795 = vmatmul.msk.bf16.vlgmr.msrb.gmra.mxu2 %vm428_vm15, %v1711_v24 }
 0xca0   :  { %2027 = vmatpush.bf16.xpose.msrb.mxu2 %v2018_v46 }
 0xca6   :  { %v2011_v54 = vpop.permute.xlu1 %2010 }
 0xcaa   :  { %3802 = vmatmul.msk.bf16.vlgmr.msra.gmra.mxu1 %vm428_vm15, %v1987_v47 }
 0xcaf   :  { %3799 = vmatmul.msk.bf16.vlgmr.msra.gmra.mxu2 %vm428_vm15, %v1861_v50 }
 0xcbf   :  { %3803 = vmatmul.msk.bf16.vlgmr.msrb.gmra.mxu2 %vm428_vm15, %v2011_v54 }
 0xcf7   :  { %v1552_v57 = vpop.f32.mrf.mxu1 }
 0xcf8   :  { %v1584_v58 = vmul.f32 0.35355338, %v1552_v57 }
 0xcfa   :  { %v1588_v14 = vsel %vm480_vm2, %v1584_v58, -inf }
 0xcfb   :  { %1589 = vmax.xlane.f32.xlu2 %v1588_v14 }
 0xcff   :  { %v1554_v59 = vpop.f32.mrf.mxu1 }
 0xd00   :  { %v1585_v60 = vmul.f32 0.35355338, %v1554_v59 }
 0xd02   :  { %v1591_v19 = vsel %vm480_vm2, %v1585_v60, -inf }
 0xd03   :  { %1592 = vmax.xlane.f32.xlu0 %v1591_v19 }
 0xd07   :  { %v1705_v1 = vpop.f32.mrf.mxu1 }
 0xd08   :  { %v1734_v56 = vmul.f32 0.35355338, %v1705_v1 }
 0xd0a   :  { %v1738_v61 = vsel %vm480_vm2, %v1734_v56, -inf }
 0xd0b   :  { %1739 = vmax.xlane.f32.xlu1 %v1738_v61 }
 0xd0f   :  { %v1707_v23 = vpop.f32.mrf.mxu1 }
 0xd10   :  { %v1735_v62 = vmul.f32 0.35355338, %v1707_v23 }
 0xd12   :  { %v1741_v51 = vsel %vm480_vm2, %v1735_v62, -inf  ;;  %v1579_v17 = vpop.f32.mrf.mxu2 }
 0xd13   :  { %1742 = vmax.xlane.f32.xlu2 %v1741_v51  ;;  %v5287_v44 = vmul.f32 0.35355338, %v1579_v17 }
 0xd15   :  { %v1594_v39 = vsel %vm480_vm2, %v5287_v44, -inf }
 0xd17   :  { %v1855_v55 = vpop.f32.mrf.mxu1 }
 0xd18   :  { %v1884_v27 = vmul.f32 0.35355338, %v1855_v55 }
 0xd1a   :  { %v1888_v3 = vsel %vm480_vm2, %v1884_v27, -inf  ;;  %v1581_v43 = vpop.f32.mrf.mxu2 }
 0xd1b   :  { %1889 = vmax.xlane.f32.xlu2 %v1888_v3  ;;  %v5307_v1 = vmul.f32 0.35355338, %v1581_v43 }
 0xd1d   :  { %v1597_v51 = vsel %vm480_vm2, %v5307_v1, -inf }
 0xd1f   :  { %v1857_v0 = vpop.f32.mrf.mxu1 }
 0xd20   :  { %v1885_v2 = vmul.f32 0.35355338, %v1857_v0 }
 0xd22   :  { %v1891_v4 = vsel %vm480_vm2, %v1885_v2, -inf  ;;  %v1729_v41 = vpop.f32.mrf.mxu2 }
 0xd23   :  { %1892 = vmax.xlane.f32.xlu0 %v1891_v4 }
 0xd27   :  { %v2005_v5 = vpop.f32.mrf.mxu1 }
 0xd28   :  { %v2034_v6 = vmul.f32 0.35355338, %v2005_v5 }
 0xd2a   :  { %v2038_v8 = vsel %vm480_vm2, %v2034_v6, -inf  ;;  %v1731_v57 = vpop.f32.mrf.mxu2 }
 0xd2b   :  { %2039 = vmax.xlane.f32.xlu0 %v2038_v8  ;;  %v5322_v8 = vmul.f32 0.35355338, %v1731_v57 }
 0xd2f   :  { %v2007_v63 = vpop.f32.mrf.mxu1 }
 0xd30   :  { %v5267_v10 = vmul.f32 0.35355338, %v2007_v63 }
 0xd32   :  { %v2041_v53 = vsel %vm480_vm2, %v5267_v10, -inf }
 0xd33   :  { %1791 = vrot.lane.b32.xlu2 %v5210_v49, %s5947_s30  ;;  %2042 = vmax.xlane.f32.xlu1 %v2041_v53  ;;  %v1747_v53 = vsel %vm480_vm2, %v5322_v8, -inf }
 0xd3f   :  { %1641 = vrot.lane.b32.xlu0 %v5210_v49, %s4624_s27 }
 0xd47   :  { %1941 = vrot.lane.b32.xlu0 %v5210_v49, %s5945_s19 }
 0xd4c   :  { %1666 = vrot.lane.b32.xlu1 %v5220_v26, %s4624_s27 }
 0xd6e   :  { %v1590_v7 = vpop.xlane.xlu2 %1589 }
 0xd6f   :  { %v1600_v13 = vsub.f32 %v1584_v58, %v1590_v7 }
 0xd71   :  { %v1604_v38 = vmul.f32 1.442695, %v1600_v13 }
 0xd73   :  { %4230 = vpow2.f32 %v1604_v38 }
 0xd76   :  { %v1593_v9 = vpop.xlane.xlu0 %1592 }
 0xd77   :  { %v1601_v11 = vsub.f32 %v1585_v60, %v1593_v9 }
 0xd79   :  { %v5279_v15 = vpop.eup %4230  ;;  %v1606_v22 = vmul.f32 1.442695, %v1601_v11 }
 0xd7a   :  { %v1612_v16 = vsel %vm480_vm2, %v5279_v15, 0.0 }
 0xd7b   :  { %4232 = vpow2.f32 %v1606_v22  ;;  %1613 = vadd.xlane.f32.xlu2 %v1612_v16 }
 0xd7e   :  { %v1740_v20 = vpop.xlane.xlu1 %1739 }
 0xd7f   :  { %v1750_v12 = vsub.f32 %v1734_v56, %v1740_v20  ;;  %v1879_v56 = vpop.f32.mrf.mxu2 }
 0xd80   :  { %v5328_v7 = vmul.f32 0.35355338, %v1879_v56 }
 0xd81   :  { %v5283_v28 = vpop.eup %4232  ;;  %v1754_v29 = vmul.f32 1.442695, %v1750_v12 }
 0xd82   :  { %v1615_v30 = vsel %vm480_vm2, %v5283_v28, 0.0  ;;  %v1894_v9 = vsel %vm480_vm2, %v5328_v7, -inf }
 0xd83   :  { %4234 = vpow2.f32 %v1754_v29  ;;  %1616 = vadd.xlane.f32.xlu0 %v1615_v30 }
 0xd86   :  { %v1743_v31 = vpop.xlane.xlu2 %1742 }
 0xd87   :  { %v1751_v34 = vsub.f32 %v1735_v62, %v1743_v31 }
 0xd89   :  { %v5289_v24 = vpop.eup %4234  ;;  %v1756_v37 = vmul.f32 1.442695, %v1751_v34 }
 0xd8a   :  { %v1762_v40 = vsel %vm480_vm2, %v5289_v24, 0.0 }
 0xd8b   :  { %4236 = vpow2.f32 %v1756_v37  ;;  %1595 = vmax.xlane.f32.xlu0 %v1594_v39  ;;  %1763 = vadd.xlane.f32.xlu1 %v1762_v40 }
 0xd8e   :  { %v1890_v45 = vpop.xlane.xlu2 %1889 }
 0xd8f   :  { %v1900_v42 = vsub.f32 %v1884_v27, %v1890_v45  ;;  %v1881_v27 = vpop.f32.mrf.mxu2 }
 0xd90   :  { %v5330_v38 = vmul.f32 0.35355338, %v1881_v27 }
 0xd91   :  { %v5295_v21 = vpop.eup %4236  ;;  %v1904_v18 = vmul.f32 1.442695, %v1900_v42 }
 0xd92   :  { %v1765_v52 = vsel %vm480_vm2, %v5295_v21, 0.0  ;;  %v1897_v11 = vsel %vm480_vm2, %v5330_v38, -inf }
 0xd93   :  { %4238 = vpow2.f32 %v1904_v18  ;;  %1766 = vadd.xlane.f32.xlu2 %v1765_v52 }
 0xd96   :  { %v1893_v25 = vpop.xlane.xlu0 %1892 }
 0xd97   :  { %v1901_v46 = vsub.f32 %v1885_v2, %v1893_v25  ;;  %v1792_v2 = vpop.permute.xlu2 %1791  ;;  %v2029_v63 = vpop.f32.mrf.mxu2 }
 0xd98   :  { %v5336_v16 = vmul.f32 0.35355338, %v2029_v63 }
 0xd99   :  { %v5299_v47 = vpop.eup %4238  ;;  %v1906_v50 = vmul.f32 1.442695, %v1901_v46 }
 0xd9a   :  { %v1912_v54 = vsel %vm480_vm2, %v5299_v47, 0.0  ;;  %v2044_v20 = vsel %vm480_vm2, %v5336_v16, -inf }
 0xd9b   :  { %4240 = vpow2.f32 %v1906_v50  ;;  %1913 = vadd.xlane.f32.xlu1 %v1912_v54 }
 0xd9e   :  { %v2040_v58 = vpop.xlane.xlu0 %2039 }
 0xd9f   :  { %v2050_v59 = vsub.f32 %v2034_v6, %v2040_v58  ;;  %v5320_v6 = vmul.f32 0.35355338, %v1729_v41  ;;  %v2031_v22 = vpop.f32.mrf.mxu2 }
 0xda0   :  { %v5338_v17 = vmul.f32 0.35355338, %v2031_v22 }
 0xda1   :  { %v5303_v14 = vpop.eup %4240  ;;  %v2054_v19 = vmul.f32 1.442695, %v2050_v59 }
 0xda2   :  { %v1915_v60 = vsel %vm480_vm2, %v5303_v14, 0.0  ;;  %v2047_v12 = vsel %vm480_vm2, %v5338_v17, -inf }
 0xda3   :  { %1916 = vadd.xlane.f32.xlu1 %v1915_v60  ;;  %4242 = vpow2.f32 %v2054_v19 }
 0xda6   :  { %v2043_v61 = vpop.xlane.xlu1 %2042 }
 0xda7   :  { %v2051_v23 = vsub.f32 %v5267_v10, %v2043_v61  ;;  %v1744_v10 = vsel %vm480_vm2, %v5320_v6, -inf }
 0xda9   :  { %v2056_v62 = vmul.f32 1.442695, %v2051_v23  ;;  %v5312_v55 = vpop.eup %4242 }
 0xdaa   :  { %v2062_v4 = vsel %vm480_vm2, %v5312_v55, 0.0 }
 0xdab   :  { %4244 = vpow2.f32 %v2056_v62  ;;  %1598 = vmax.xlane.f32.xlu1 %v1597_v51 }
 0xdb1   :  { %v5314_v3 = vpop.eup %4244  ;;  %v1642_v0 = vpop.permute.xlu0 %1641 }
 0xdb2   :  { %1654 = vmatpush.bf16.msra.mxu3 %v1642_v0  ;;  %v2065_v5 = vsel %vm480_vm2, %v5314_v3, 0.0 }
 0xdb3   :  { %2063 = vadd.xlane.f32.xlu1 %v2062_v4  ;;  %2066 = vadd.xlane.f32.xlu2 %v2065_v5 }
 0xdb6   :  { %1804 = vmatpush.bf16.msrb.mxu3 %v1792_v2 }
 0xdb9   :  { %v1942_v29 = vpop.permute.xlu0 %1941 }
 0xdbb   :  { %1745 = vmax.xlane.f32.xlu1 %v1744_v10  ;;  %1748 = vmax.xlane.f32.xlu2 %v1747_v53 }
 0xdbe   :  { %v1667_v13 = vpop.permute.xlu1 %1666 }
 0xdbf   :  { %1679 = vmatpush.bf16.msrb.mxu0 %v1667_v13 }
 0xdc3   :  { %1895 = vmax.xlane.f32.xlu1 %v1894_v9  ;;  %1898 = vmax.xlane.f32.xlu2 %v1897_v11 }
 0xdcb   :  { %2045 = vmax.xlane.f32.xlu1 %v2044_v20  ;;  %2048 = vmax.xlane.f32.xlu2 %v2047_v12 }
 0xdee   :  { %v1614_v30 = vpop.xlane.xlu2 %1613 }
 0xdef   :  { %4246 = vrcp.f32 %v1614_v30 }
 0xdf5   :  { %v4247_v34 = vpop.eup %4246 }
 0xdf6   :  { %v1617_v31 = vpop.xlane.xlu0 %1616  ;;  %v1628_v43 = vmul.f32 %v4247_v34, %v5279_v15 }
 0xdf7   :  { %4248 = vrcp.f32 %v1617_v31 }
 0xdf8   :  { %v1632_v39 = vpack.c.bf16 %v1628_v43, %v1628_v43 }
 0xdfa   :  { %v1638_v25 = vunpack.c.l.b16 %v1632_v39 }
 0xdfd   :  { %v4249_v37 = vpop.eup %4248 }
 0xdfe   :  { %v1629_v40 = vmul.f32 %v4249_v37, %v5283_v28  ;;  %v1596_v45 = vpop.xlane.xlu0 %1595  ;;  %v1764_v42 = vpop.xlane.xlu1 %1763 }
 0xdff   :  { %v1602_v18 = vsub.f32 %v5287_v44, %v1596_v45  ;;  %4250 = vrcp.f32 %v1764_v42 }
 0xe00   :  { %v1633_v41 = vpack.c.bf16 %v1629_v40, %v1629_v40 }
 0xe01   :  { %v1608_v52 = vmul.f32 1.442695, %v1602_v18 }
 0xe02   :  { %v1639_v46 = vunpack.c.l.b16 %v1633_v41 }
 0xe03   :  { %4252 = vpow2.f32 %v1608_v52 }
 0xe04   :  { %v1640_v50 = vpack.c.b16 %v1639_v46, %v1638_v25 }
 0xe05   :  { %v4251_v57 = vpop.eup %4250 }
 0xe06   :  { %v1767_v54 = vpop.xlane.xlu2 %1766  ;;  %3792 = vmatmul.msk.bf16.vlgmr.msra.gmra.mxu3 %vm480_vm2, %v1640_v50  ;;  %v1778_v28 = vmul.f32 %v4251_v57, %v5289_v24 }
 0xe07   :  { %4254 = vrcp.f32 %v1767_v54  ;;  %1954 = vmatpush.bf16.msra.mxu3 %v1942_v29 }
 0xe08   :  { %v1782_v59 = vpack.c.bf16 %v1778_v28, %v1778_v28 }
 0xe09   :  { %v5348_v15 = vpop.eup %4252 }
 0xe0a   :  { %v1618_v44 = vsel %vm480_vm2, %v5348_v15, 0.0  ;;  %v1788_v61 = vunpack.c.l.b16 %v1782_v59 }
 0xe0b   :  { %1619 = vadd.xlane.f32.xlu0 %v1618_v44 }
 0xe0d   :  { %v4255_v58 = vpop.eup %4254 }
 0xe0e   :  { %v1779_v60 = vmul.f32 %v4255_v58, %v5295_v21  ;;  %v1914_v19 = vpop.xlane.xlu1 %1913 }
 0xe0f   :  { %4256 = vrcp.f32 %v1914_v19 }
 0xe10   :  { %v1783_v56 = vpack.c.bf16 %v1779_v60, %v1779_v60 }
 0xe12   :  { %v1789_v23 = vunpack.c.l.b16 %v1783_v56 }
 0xe14   :  { %v1790_v62 = vpack.c.b16 %v1789_v23, %v1788_v61 }
 0xe15   :  { %v4257_v27 = vpop.eup %4256 }
 0xe16   :  { %3796 = vmatmul.msk.bf16.vlgmr.msrb.gmra.mxu3 %vm480_vm2, %v1790_v62  ;;  %v1917_v51 = vpop.xlane.xlu1 %1916  ;;  %v1928_v24 = vmul.f32 %v4257_v27, %v5299_v47 }
 0xe17   :  { %4258 = vrcp.f32 %v1917_v51 }
 0xe18   :  { %v1932_v2 = vpack.c.bf16 %v1928_v24, %v1928_v24 }
 0xe1a   :  { %v1938_v53 = vunpack.c.l.b16 %v1932_v2 }
 0xe1d   :  { %v4259_v0 = vpop.eup %4258 }
 0xe1e   :  { %v1929_v4 = vmul.f32 %v4259_v0, %v5303_v14  ;;  %v1599_v5 = vpop.xlane.xlu1 %1598 }
 0xe1f   :  { %v1603_v21 = vsub.f32 %v5307_v1, %v1599_v5  ;;  %1816 = vrot.lane.b32.xlu0 %v5220_v26, %s5947_s30 }
 0xe20   :  { %v1933_v63 = vpack.c.bf16 %v1929_v4, %v1929_v4 }
 0xe21   :  { %v1610_v10 = vmul.f32 1.442695, %v1603_v21 }
 0xe22   :  { %v1939_v13 = vunpack.c.l.b16 %v1933_v63 }
 0xe23   :  { %4260 = vpow2.f32 %v1610_v10 }
 0xe24   :  { %v1940_v9 = vpack.c.b16 %v1939_v13, %v1938_v53 }
 0xe26   :  { %3800 = vmatmul.msk.bf16.vlgmr.msra.gmra.mxu3 %vm480_vm2, %v1940_v9  ;;  %v2064_v11 = vpop.xlane.xlu1 %2063  ;;  %v2067_v47 = vpop.xlane.xlu2 %2066 }
 0xe27   :  { %4262 = vrcp.f32 %v2064_v11 }
 0xe28   :  { %4264 = vrcp.f32 %v2067_v47 }
 0xe29   :  { %v5361_v22 = vpop.eup %4260 }
 0xe2a   :  { %v1621_v14 = vsel %vm480_vm2, %v5361_v22, 0.0 }
 0xe2b   :  { %1622 = vadd.xlane.f32.xlu1 %v1621_v14 }
 0xe2d   :  { %v4263_v1 = vpop.eup %4262 }
 0xe2e   :  { %v4265_v20 = vpop.eup %4264  ;;  %v2078_v12 = vmul.f32 %v4263_v1, %v5312_v55  ;;  %v1746_v29 = vpop.xlane.xlu1 %1745 }
 0xe2f   :  { %v2079_v30 = vmul.f32 %v4265_v20, %v5314_v3  ;;  %v1752_v31 = vsub.f32 %v5320_v6, %v1746_v29  ;;  %v1749_v40 = vpop.xlane.xlu2 %1748 }
 0xe30   :  { %v2082_v34 = vpack.c.bf16 %v2078_v12, %v2078_v12  ;;  %v1753_v55 = vsub.f32 %v5322_v8, %v1749_v40 }
 0xe31   :  { %v2083_v43 = vpack.c.bf16 %v2079_v30, %v2079_v30  ;;  %v1758_v37 = vmul.f32 1.442695, %v1752_v31 }
 0xe32   :  { %v5368_v39 = vunpack.c.l.b16 %v2082_v34  ;;  %v1760_v25 = vmul.f32 1.442695, %v1753_v55 }
 0xe33   :  { %v5370_v45 = vunpack.c.l.b16 %v2083_v43  ;;  %4266 = vpow2.f32 %v1758_v37 }
 0xe35   :  { %v2090_v42 = vpack.c.b16 %v5370_v45, %v5368_v39 }
 0xe36   :  { %v1896_v18 = vpop.xlane.xlu1 %1895 }
 0xe37   :  { %v1902_v41 = vsub.f32 %v5328_v7, %v1896_v18  ;;  %v1899_v46 = vpop.xlane.xlu2 %1898 }
 0xe38   :  { %v1903_v50 = vsub.f32 %v5330_v38, %v1899_v46 }
 0xe39   :  { %v5376_v3 = vpop.eup %4266  ;;  %v1908_v6 = vmul.f32 1.442695, %v1902_v41 }
 0xe3a   :  { %v1768_v52 = vsel %vm480_vm2, %v5376_v3, 0.0  ;;  %v1910_v57 = vmul.f32 1.442695, %v1903_v50 }
 0xe3b   :  { %4268 = vpow2.f32 %v1908_v6  ;;  %1769 = vadd.xlane.f32.xlu2 %v1768_v52 }
 0xe3c   :  { %4270 = vpow2.f32 %v1760_v25 }
 0xe3d   :  { %4272 = vpow2.f32 %v1910_v57 }
 0xe3e   :  { %v2046_v61 = vpop.xlane.xlu1 %2045 }
 0xe3f   :  { %v2049_v58 = vpop.xlane.xlu2 %2048  ;;  %v2052_v23 = vsub.f32 %v5336_v16, %v2046_v61 }
 0xe40   :  { %v2053_v59 = vsub.f32 %v5338_v17, %v2049_v58 }
 0xe41   :  { %v5381_v54 = vpop.eup %4268  ;;  %v2058_v62 = vmul.f32 1.442695, %v2052_v23 }
 0xe42   :  { %v1918_v8 = vsel %vm480_vm2, %v5381_v54, 0.0  ;;  %v5387_v7 = vpop.eup %4270  ;;  %v2060_v60 = vmul.f32 1.442695, %v2053_v59 }
 0xe43   :  { %1919 = vadd.xlane.f32.xlu2 %v1918_v8  ;;  %v1771_v28 = vsel %vm480_vm2, %v5387_v7, 0.0  ;;  %v5391_v44 = vpop.eup %4272 }
 0xe44   :  { %1966 = vrot.lane.b32.xlu1 %v5220_v26, %s5945_s19  ;;  %v1921_v38 = vsel %vm480_vm2, %v5391_v44, 0.0  ;;  %4274 = vpow2.f32 %v2060_v60 }
 0xe45   :  { %4276 = vpow2.f32 %v2058_v62 }
 0xe49   :  { %1772 = vadd.xlane.f32.xlu0 %v1771_v28 }
 0xe4a   :  { %v5400_v19 = vpop.eup %4274 }
 0xe4b   :  { %v2071_v56 = vsel %vm480_vm2, %v5400_v19, 0.0  ;;  %v5405_v51 = vpop.eup %4276 }
 0xe51   :  { %1922 = vadd.xlane.f32.xlu0 %v1921_v38 }
 0xe5b   :  { %2091 = vrot.lane.b32.xlu2 %v5210_v49, %s5957_s2  ;;  %v2068_v49 = vsel %vm480_vm2, %v5405_v51, 0.0 }
 0xe65   :  { %2116 = vrot.lane.b32.xlu0 %v5220_v26, %s5957_s2 }
 0xe6e   :  { %2072 = vadd.xlane.f32.xlu1 %v2071_v56 }
 0xe7e   :  { %v1620_v17 = vpop.xlane.xlu0 %1619 }
 0xe7f   :  { %4278 = vrcp.f32 %v1620_v17 }
 0xe84   :  { %2069 = vadd.xlane.f32.xlu2 %v2068_v49 }
 0xe85   :  { %v4279_v4 = vpop.eup %4278 }
 0xe86   :  { %v1630_v5 = vmul.f32 %v4279_v4, %v5348_v15 }
 0xe88   :  { %v1634_v10 = vpack.c.bf16 %v1630_v5, %v1630_v5 }
 0xe89   :  { %v5409_v27 = vpop.f32.mrf.mxu3 }
 0xe8a   :  { %v1663_v11 = vunpack.c.l.b16 %v1634_v10 }
 0xe91   :  { %v5411_v26 = vpop.f32.mrf.mxu3  ;;  %v1817_v24 = vpop.permute.xlu0 %1816 }
 0xe92   :  { %1829 = vmatpush.bf16.msra.mxu0 %v1817_v24 }
 0xe99   :  { %v1806_v0 = vpop.f32.mrf.mxu3 }
 0xe9e   :  { %v1623_v2 = vpop.xlane.xlu1 %1622 }
 0xe9f   :  { %4280 = vrcp.f32 %v1623_v2 }
 0xea1   :  { %v1808_v16 = vpop.f32.mrf.mxu3 }
 0xea2   :  { %v4054_v21 = vpack.i.bf16 %v1808_v16, %v1806_v0 }
 0xea4   :  { %4055 = vrot.lane.b32.xlu0 %v4054_v21, %s5954_s13 }
 0xea5   :  { %v4281_v63 = vpop.eup %4280 }
 0xea6   :  { %v1631_v53 = vmul.f32 %v4281_v63, %v5361_v22  ;;  %v3977_v63 = vld [vmem:[%s5923_s6 + $0x18] sm:$0xff] }
 0xea7   :  { %2227 = vmatpush.bf16.msrb.mxu1 %v3977_v63 }
 0xea8   :  { %v1635_v13 = vpack.c.bf16 %v1631_v53, %v1631_v53 }
 0xea9   :  { %v1956_v9 = vpop.f32.mrf.mxu3 }
 0xeaa   :  { %v1664_v47 = vunpack.c.l.b16 %v1635_v13 }
 0xeac   :  { %v1665_v14 = vpack.c.b16 %v1664_v47, %v1663_v11 }
 0xeae   :  { %v1770_v1 = vpop.xlane.xlu2 %1769  ;;  %3793 = vmatmul.msk.bf16.vlgmr.msrb.gmra.mxu0 %vm480_vm2, %v1665_v14 }
 0xeaf   :  { %4282 = vrcp.f32 %v1770_v1 }
 0xeb1   :  { %v1958_v20 = vpop.f32.mrf.mxu3 }
 0xeb2   :  { %v4059_v12 = vpack.i.bf16 %v1958_v20, %v1956_v9  ;;  %v3976_v9 = vld [vmem:[%s5923_s6 + $0x10] sm:$0xff] }
 0xeb3   :  { %2228 = vmatpush.bf16.msrb.mxu1 %v3976_v9 }
 0xeb4   :  { %4060 = vrot.lane.b32.xlu0 %v4059_v12, %s5955_s3 }
 0xeb5   :  { %v4283_v31 = vpop.eup %4282 }
 0xeb6   :  { %v1920_v15 = vpop.xlane.xlu2 %1919  ;;  %v1967_v29 = vpop.permute.xlu1 %1966  ;;  %v1780_v34 = vmul.f32 %v4283_v31, %v5376_v3 }
 0xeb7   :  { %1979 = vmatpush.bf16.msrb.mxu0 %v1967_v29 }
 0xeb8   :  { %v1784_v37 = vpack.c.bf16 %v1780_v34, %v1780_v34 }
 0xeba   :  { %v1813_v41 = vunpack.c.l.b16 %v1784_v37 }
 0xebc   :  { %v1773_v30 = vpop.xlane.xlu0 %1772 }
 0xebd   :  { %4284 = vrcp.f32 %v1773_v30 }
 0xebe   :  { %v2092_v22 = vpop.permute.xlu2 %2091 }
 0xebf   :  { %2104 = vmatpush.bf16.msrb.mxu3 %v2092_v22 }
 0xec2   :  { %3804 = vmatmul.msk.bf16.vlgmr.msrb.gmra.mxu3 %vm480_vm2, %v2090_v42 }
 0xec3   :  { %v4285_v43 = vpop.eup %4284 }
 0xec4   :  { %v1781_v40 = vmul.f32 %v4285_v43, %v5387_v7  ;;  %v1923_v18 = vpop.xlane.xlu0 %1922 }
 0xec5   :  { %4286 = vrcp.f32 %v1923_v18 }
 0xec6   :  { %v1785_v55 = vpack.c.bf16 %v1781_v40, %v1781_v40  ;;  %4288 = vrcp.f32 %v1920_v15 }
 0xec8   :  { %v1814_v6 = vunpack.c.l.b16 %v1785_v55 }
 0xeca   :  { %v1815_v52 = vpack.c.b16 %v1814_v6, %v1813_v41 }
 0xecb   :  { %v4287_v25 = vpop.eup %4286 }
 0xecc   :  { %3797 = vmatmul.msk.bf16.vlgmr.msra.gmra.mxu0 %vm480_vm2, %v1815_v52  ;;  %v4289_v3 = vpop.eup %4288  ;;  %v1931_v46 = vmul.f32 %v4287_v25, %v5391_v44 }
 0xecd   :  { %v1930_v39 = vmul.f32 %v4289_v3, %v5381_v54 }
 0xece   :  { %v1935_v45 = vpack.c.bf16 %v1931_v46, %v1931_v46 }
 0xecf   :  { %v1934_v42 = vpack.c.bf16 %v1930_v39, %v1930_v39 }
 0xed0   :  { %v1964_v50 = vunpack.c.l.b16 %v1935_v45 }
 0xed1   :  { %v1963_v57 = vunpack.c.l.b16 %v1934_v42 }
 0xed3   :  { %v1965_v7 = vpack.c.b16 %v1964_v50, %v1963_v57 }
 0xed7   :  { %v2117_v8 = vpop.permute.xlu0 %2116 }
 0xed8   :  { %2129 = vmatpush.bf16.msra.mxu0 %v2117_v8 }
 0xedc   :  { %3801 = vmatmul.msk.bf16.vlgmr.msrb.gmra.mxu0 %vm480_vm2, %v1965_v7 }
 0xee1   :  { %v2073_v28 = vpop.xlane.xlu1 %2072 }
 0xee2   :  { %4290 = vrcp.f32 %v2073_v28  ;;  %v4126_v28 = vld [vmem:[%s5924_s7 + $0x1] ss:$0 sm:$0xff] }
 0xee8   :  { %v4291_v58 = vpop.eup %4290 }
 0xee9   :  { %v2081_v59 = vmul.f32 %v4291_v58, %v5400_v19 }
 0xeeb   :  { %v2085_v44 = vpack.c.bf16 %v2081_v59, %v2081_v59 }
 0xeed   :  { %v2114_v61 = vunpack.c.l.b16 %v2085_v44 }
 0xef7   :  { %v2070_v38 = vpop.xlane.xlu2 %2069 }
 0xef8   :  { %4292 = vrcp.f32 %v2070_v38 }
 0xefe   :  { %v4293_v60 = vpop.eup %4292 }
 0xeff   :  { %v2080_v54 = vmul.f32 %v4293_v60, %v5405_v51 }
 0xf01   :  { %v2084_v56 = vpack.c.bf16 %v2080_v54, %v2080_v54 }
 0xf03   :  { %v2113_v23 = vunpack.c.l.b16 %v2084_v56 }
 0xf05   :  { %v2115_v62 = vpack.c.b16 %v2114_v61, %v2113_v23 }
 0xf07   :  { %3805 = vmatmul.msk.bf16.vlgmr.msra.gmra.mxu0 %vm480_vm2, %v2115_v62 }
 0xf16   :  { %v4056_v11 = vpop.permute.xlu0 %4055 }
 0xf17   :  { %v4058_v14 = vunpack.i.h.bf16 %v4056_v11  ;;  %v4057_v1 = vunpack.i.l.bf16 %v4056_v11 }
 0xf19   :  { %v2185_v29 = vsel %vm428_vm15, %v5411_v26, %v4058_v14  ;;  %v2184_v30 = vsel %vm428_vm15, %v5409_v27, %v4057_v1 }
 0xf26   :  { %v4061_v47 = vpop.permute.xlu0 %4060 }
 0xf27   :  { %v4063_v20 = vunpack.i.h.bf16 %v4061_v47  ;;  %v4062_v12 = vunpack.i.l.bf16 %v4061_v47 }
 0xf29   :  { %v2189_v34 = vsel %vm480_vm2, %v2185_v29, %v4063_v20  ;;  %v2188_v43 = vsel %vm480_vm2, %v2184_v30, %v4062_v12  ;;  %v3979_v29 = vld [vmem:[%s5925_s8 + $0x18] sm:$0xff] }
 0xf2a   :  { %2395 = vmatpush.bf16.msra.mxu2 %v3979_v29  ;;  %v3983_v29 = vld [vmem:[%s5927_s10 + $0x38] sm:$0xff] }
 0xf2b   :  { %v1681_v49 = vpop.f32.mrf.mxu0  ;;  %2457 = vmatpush.bf16.msra.mxu3 %v3983_v29 }
 0xf33   :  { %v1683_v17 = vpop.f32.mrf.mxu0 }
 0xf45   :  { %v2106_v24 = vpop.f32.mrf.mxu3 }
 0xf49   :  { %v1831_v0 = vpop.f32.mrf.mxu0 }
 0xf4d   :  { %v2108_v2 = vpop.f32.mrf.mxu3 }
 0xf4e   :  { %v4064_v4 = vpack.i.bf16 %v2108_v2, %v2106_v24 }
 0xf50   :  { %4065 = vrot.lane.b32.xlu2 %v4064_v4, %s5958_s12 }
 0xf51   :  { %v1833_v16 = vpop.f32.mrf.mxu0 }
 0xf52   :  { %v4069_v19 = vpack.i.bf16 %v1833_v16, %v1831_v0 }
 0xf54   :  { %4070 = vrot.lane.b32.xlu0 %v4069_v19, %s5954_s13 }
 0xf59   :  { %v1981_v5 = vpop.f32.mrf.mxu0 }
 0xf61   :  { %v1983_v51 = vpop.f32.mrf.mxu0 }
 0xf62   :  { %v4074_v21 = vpack.i.bf16 %v1983_v51, %v1981_v5 }
 0xf64   :  { %4075 = vrot.lane.b32.xlu1 %v4074_v21, %s5955_s3 }
 0xf84   :  { %v2131_v10 = vpop.f32.mrf.mxu0 }
 0xf8c   :  { %v2133_v53 = vpop.f32.mrf.mxu0 }
 0xf8d   :  { %v4079_v13 = vpack.i.bf16 %v2133_v53, %v2131_v10 }
 0xf8f   :  { %4080 = vrot.lane.b32.xlu0 %v4079_v13, %s5958_s12 }
 0xfaa   :  { %v4066_v15 = vpop.permute.xlu2 %4065 }
 0xfab   :  { %v4068_v31 = vunpack.i.h.bf16 %v4066_v15  ;;  %v4067_v22 = vunpack.i.l.bf16 %v4066_v15 }
 0xfad   :  { %v2193_v37 = vsel %vm1085_vm3, %v2189_v34, %v4068_v31  ;;  %v2192_v40 = vsel %vm1085_vm3, %v2188_v43, %v4067_v22  ;;  %v3978_v22 = vld [vmem:[%s5925_s8 + $0x10] sm:$0xff] }
 0xfae   :  { %v2196_v18 = vpack.c.bf16 %v2193_v37, %v2192_v40  ;;  %2396 = vmatpush.bf16.msra.mxu2 %v3978_v22  ;;  %v4129_v22 = vld [vmem:[%s5926_s9 + $0x1] ss:$0 sm:$0xff] }
 0xfb0   :  { %3818 = vmatmul.msk.bf16.vlgmr.msrb.gmra.mxu1 %vm260_vm1, %v2196_v18 }
 0xfc6   :  { %v4071_v55 = vpop.permute.xlu0 %4070 }
 0xfc7   :  { %v4073_v6 = vunpack.i.h.bf16 %v4071_v55  ;;  %v4072_v26 = vunpack.i.l.bf16 %v4071_v55 }
 0xfc9   :  { %v2187_v3 = vsel %vm428_vm15, %v1683_v17, %v4073_v6  ;;  %v2186_v46 = vsel %vm428_vm15, %v1681_v49, %v4072_v26 }
 0xfd6   :  { %v4076_v41 = vpop.permute.xlu1 %4075 }
 0xfd7   :  { %v4078_v52 = vunpack.i.h.bf16 %v4076_v41  ;;  %v4077_v25 = vunpack.i.l.bf16 %v4076_v41 }
 0xfd9   :  { %v2191_v42 = vsel %vm480_vm2, %v2187_v3, %v4078_v52  ;;  %v2190_v50 = vsel %vm480_vm2, %v2186_v46, %v4077_v25 }
0x1001   :  { %v4081_v27 = vpop.permute.xlu0 %4080 }
0x1002   :  { %v4083_v39 = vunpack.i.h.bf16 %v4081_v27  ;;  %v4082_v45 = vunpack.i.l.bf16 %v4081_v27 }
0x1004   :  { %v2194_v8 = vsel %vm1085_vm3, %v2190_v50, %v4082_v45  ;;  %v2195_v57 = vsel %vm1085_vm3, %v2191_v42, %v4083_v39  ;;  %v4127_v45 = vld [vmem:[#allocation13 + $0x1] ss:$0 sm:$0xff] }
0x1005   :  { %v2197_v7 = vpack.c.bf16 %v2195_v57, %v2194_v8  ;;  %v4128_v57 = vld [vmem:[%s5932_s15 + $0x1] ss:$0 sm:$0xff] }
0x1007   :  { %3819 = vmatmul.msk.bf16.gmra.mxu1 %vm260_vm1, %v2197_v7 }
0x102d   :  { %v2230_v38 = vpop.f32.mrf.mxu1 }
0x102e   :  { %v2240_v58 = vadd.f32 %v2230_v38, %v5154_v33 }
0x1030   :  { %v5461_v59 = vadd.f32 %v4126_v28, %v2240_v58 }
0x1032   :  { %v2257_v60 = vsel %vm260_vm1, %v5461_v59, 0.0 }
0x1033   :  { %2258 = vadd.xlane.f32.xlu0 %v2257_v60 }
0x1035   :  { %v2232_v44 = vpop.f32.mrf.mxu1 }
0x1036   :  { %v2241_v54 = vadd.f32 %v2232_v44, %v5159_v36 }
0x1038   :  { %v5466_v56 = vadd.f32 %v4126_v28, %v2241_v54 }
0x103a   :  { %v2260_v61 = vsel %vm260_vm1, %v5466_v56, 0.0 }
0x103b   :  { %2261 = vadd.xlane.f32.xlu2 %v2260_v61 }
0x1084   :  { %v2235_v23 = vpop.f32.mrf.mxu1 }
0x1085   :  { %v2242_v62 = vadd.f32 %v2235_v23, %v5164_v32 }
0x1087   :  { %v5471_v49 = vadd.f32 %v4126_v28, %v2242_v62 }
0x1089   :  { %v2263_v33 = vsel %vm260_vm1, %v5471_v49, 0.0 }
0x108a   :  { %2264 = vadd.xlane.f32.xlu1 %v2263_v33 }
0x108c   :  { %v2237_v17 = vpop.f32.mrf.mxu1 }
0x108d   :  { %v2243_v24 = vadd.f32 %v2237_v17, %v5169_v48 }
0x108f   :  { %v5476_v0 = vadd.f32 %v4126_v28, %v2243_v24 }
0x1091   :  { %v2266_v36 = vsel %vm260_vm1, %v5476_v0, 0.0 }
0x1092   :  { %2267 = vadd.xlane.f32.xlu2 %v2266_v36 }
0x10a6   :  { %v2259_v2 = vpop.xlane.xlu0 %2258 }
0x10a7   :  { %v2269_v4 = vmul.f32 %v2259_v2, %v4805_v35 }
0x10a9   :  { %v2273_v32 = vsub.f32 %v5461_v59, %v2269_v4 }
0x10ab   :  { %v2277_v16 = vmul.f32 %v2273_v32, %v2273_v32 }
0x10ad   :  { %v2281_v19 = vsel %vm260_vm1, %v2277_v16, 0.0 }
0x10ae   :  { %v2262_v5 = vpop.xlane.xlu2 %2261  ;;  %2282 = vadd.xlane.f32.xlu0 %v2281_v19 }
0x10af   :  { %v2270_v51 = vmul.f32 %v2262_v5, %v4805_v35 }
0x10b1   :  { %v2274_v48 = vsub.f32 %v5466_v56, %v2270_v51 }
0x10b3   :  { %v2278_v21 = vmul.f32 %v2274_v48, %v2274_v48 }
0x10b5   :  { %v2284_v63 = vsel %vm260_vm1, %v2278_v21, 0.0 }
0x10b6   :  { %2285 = vadd.xlane.f32.xlu2 %v2284_v63 }
0x10fd   :  { %v2265_v10 = vpop.xlane.xlu1 %2264 }
0x10fe   :  { %v2271_v53 = vmul.f32 %v2265_v10, %v4805_v35 }
0x1100   :  { %v5488_v13 = vsub.f32 %v5471_v49, %v2271_v53 }
0x1102   :  { %v2279_v9 = vmul.f32 %v5488_v13, %v5488_v13 }
0x1104   :  { %v2287_v11 = vsel %vm260_vm1, %v2279_v9, 0.0 }
0x1105   :  { %2288 = vadd.xlane.f32.xlu0 %v2287_v11  ;;  %v2268_v47 = vpop.xlane.xlu2 %2267 }
0x1106   :  { %v2272_v14 = vmul.f32 %v2268_v47, %v4805_v35 }
0x1108   :  { %v5495_v1 = vsub.f32 %v5476_v0, %v2272_v14 }
0x110a   :  { %v2280_v20 = vmul.f32 %v5495_v1, %v5495_v1 }
0x110c   :  { %v2290_v12 = vsel %vm260_vm1, %v2280_v20, 0.0 }
0x110d   :  { %2291 = vadd.xlane.f32.xlu1 %v2290_v12 }
0x1121   :  { %v2283_v15 = vpop.xlane.xlu0 %2282 }
0x1122   :  { %v2293_v30 = vmul.f32 %v2283_v15, %v4805_v35 }
0x1124   :  { %v2297_v31 = vadd.f32 1e-05, %v2293_v30  ;;  %v3980_v30 = vld [vmem:[%s5927_s10 + $0x20] sm:$0xff] }
0x1126   :  { %4294 = vrsqrt.f32 %v2297_v31  ;;  %vm2307_vm7 = vweird.f32 %v2297_v31 }
0x1129   :  { %v2286_v34 = vpop.xlane.xlu2 %2285 }
0x112a   :  { %v2294_v43 = vmul.f32 %v2286_v34, %v4805_v35 }
0x112c   :  { %v4295_v37 = vpop.eup %4294  ;;  %v2298_v40 = vadd.f32 1e-05, %v2294_v43 }
0x112d   :  { %v2302_v18 = vmul.f32 %v4295_v37, %v2297_v31  ;;  %vm2308_vm6 = vweird.f32 %v4295_v37 }
0x112e   :  { %4296 = vrsqrt.f32 %v2298_v40  ;;  %vm2309_vm8 = vmor %vm2307_vm7, %vm2308_vm6  ;;  %vm2317_vm10 = vweird.f32 %v2298_v40 }
0x112f   :  { %v2303_v55 = vmul.f32 %v4295_v37, %v2302_v18 }
0x1131   :  { %v2304_v41 = vmul.f32 0.5, %v2303_v55 }
0x1133   :  { %v2305_v6 = vsub.f32 1.5, %v2304_v41 }
0x1134   :  { %v4297_v26 = vpop.eup %4296 }
0x1135   :  { %v2306_v52 = vmul.f32 %v4295_v37, %v2305_v6  ;;  %v2312_v25 = vmul.f32 %v4297_v26, %v2298_v40  ;;  %vm2318_vm9 = vweird.f32 %v4297_v26 }
0x1136   :  { %vm2319_vm11 = vmor %vm2317_vm10, %vm2318_vm9 }
0x1137   :  { %v2313_v27 = vmul.f32 %v4297_v26, %v2312_v25  ;;  %v2310_v3 = vsel %vm2309_vm8, %v4295_v37, %v2306_v52 }
0x1138   :  { %v2341_v42 = vmul.f32 %v2310_v3, %v2273_v32 }
0x1139   :  { %v2314_v46 = vmul.f32 0.5, %v2313_v27 }
0x113a   :  { %v2348_v7 = vmul.f32 %v4127_v45, %v2341_v42 }
0x113b   :  { %v2315_v39 = vsub.f32 1.5, %v2314_v46  ;;  %v4130_v46 = vld [vmem:[#allocation8 + $0x1] ss:$0 sm:$0xff] }
0x113c   :  { %v2355_v58 = vadd.f32 %v4128_v57, %v2348_v7 }
0x113d   :  { %v2316_v50 = vmul.f32 %v4297_v26, %v2315_v39 }
0x113f   :  { %v2320_v8 = vsel %vm2319_vm11, %v4297_v26, %v2316_v50 }
0x1140   :  { %v2342_v28 = vmul.f32 %v2320_v8, %v2274_v48 }
0x1142   :  { %v2349_v38 = vmul.f32 %v4127_v45, %v2342_v28 }
0x1144   :  { %v2356_v60 = vadd.f32 %v4128_v57, %v2349_v38 }
0x1146   :  { %v2359_v44 = vpack.c.bf16 %v2356_v60, %v2355_v58 }
0x1148   :  { %3835 = vmatmul.msk.bf16.vlgmr.msra.gmra.mxu2 %vm260_vm1, %v2359_v44 }
0x1178   :  { %v2289_v54 = vpop.xlane.xlu0 %2288 }
0x1179   :  { %v2295_v61 = vmul.f32 %v2289_v54, %v4805_v35 }
0x117b   :  { %v2299_v23 = vadd.f32 1e-05, %v2295_v61 }
0x117d   :  { %4298 = vrsqrt.f32 %v2299_v23  ;;  %vm2327_vm13 = vweird.f32 %v2299_v23 }
0x1180   :  { %v2292_v62 = vpop.xlane.xlu1 %2291 }
0x1181   :  { %v2296_v33 = vmul.f32 %v2292_v62, %v4805_v35 }
0x1183   :  { %v4299_v17 = vpop.eup %4298  ;;  %v2300_v24 = vadd.f32 1e-05, %v2296_v33 }
0x1184   :  { %v2322_v36 = vmul.f32 %v4299_v17, %v2299_v23  ;;  %vm2328_vm12 = vweird.f32 %v4299_v17 }
0x1185   :  { %4300 = vrsqrt.f32 %v2300_v24  ;;  %vm2329_vm14 = vmor %vm2327_vm13, %vm2328_vm12  ;;  %vm2337_vm5 = vweird.f32 %v2300_v24 }
0x1186   :  { %v2323_v2 = vmul.f32 %v4299_v17, %v2322_v36 }
0x1188   :  { %v2324_v4 = vmul.f32 0.5, %v2323_v2 }
0x118a   :  { %v2325_v32 = vsub.f32 1.5, %v2324_v4 }
0x118b   :  { %v4301_v16 = vpop.eup %4300 }
0x118c   :  { %v2326_v19 = vmul.f32 %v4299_v17, %v2325_v32  ;;  %v2332_v5 = vmul.f32 %v4301_v16, %v2300_v24  ;;  %vm2338_vm4 = vweird.f32 %v4301_v16 }
0x118d   :  { %vm2339_vm6 = vmor %vm2337_vm5, %vm2338_vm4 }
0x118e   :  { %v2333_v51 = vmul.f32 %v4301_v16, %v2332_v5  ;;  %v2330_v48 = vsel %vm2329_vm14, %v4299_v17, %v2326_v19 }
0x118f   :  { %v2343_v10 = vmul.f32 %v2330_v48, %v5488_v13  ;;  %v3982_v13 = vld [vmem:[%s5927_s10 + $0x30] sm:$0xff] }
0x1190   :  { %v2334_v21 = vmul.f32 0.5, %v2333_v51  ;;  %2458 = vmatpush.bf16.msra.mxu3 %v3982_v13 }
0x1191   :  { %v2350_v47 = vmul.f32 %v4127_v45, %v2343_v10 }
0x1192   :  { %v2335_v63 = vsub.f32 1.5, %v2334_v21 }
0x1193   :  { %v2357_v20 = vadd.f32 %v4128_v57, %v2350_v47 }
0x1194   :  { %v2336_v53 = vmul.f32 %v4301_v16, %v2335_v63 }
0x1196   :  { %v2340_v9 = vsel %vm2339_vm6, %v4301_v16, %v2336_v53 }
0x1197   :  { %v2344_v11 = vmul.f32 %v2340_v9, %v5495_v1  ;;  %v3981_v1 = vld [vmem:[%s5927_s10 + $0x28] sm:$0xff] }
0x1198   :  { %2459 = vmatpush.bf16.msra.mxu3 %v3981_v1 }
0x1199   :  { %v2351_v14 = vmul.f32 %v4127_v45, %v2344_v11  ;;  %v3985_v11 = vld [vmem:[%s5921_s4 + $0x28] sm:$0xff] }
0x119a   :  { %2627 = vmatpush.bf16.msrb.mxu0 %v3985_v11 }
0x119b   :  { %v2358_v12 = vadd.f32 %v4128_v57, %v2351_v14 }
0x119c   :  { %2460 = vmatpush.bf16.msra.mxu3 %v3980_v30 }
0x119d   :  { %v2360_v15 = vpack.c.bf16 %v2358_v12, %v2357_v20  ;;  %v3984_v20 = vld [vmem:[%s5921_s4 + $0x20] sm:$0xff]  ;;  %s3677_s4 = sshll.u32 %s4639_s20, 4  ;;  %s3678_s4 = int_to_ptr.vmem [resolvable:$true] %s3677_s4 }
0x119e   :  { %2628 = vmatpush.bf16.msrb.mxu0 %v3984_v20 }
0x119f   :  { %3836 = vmatmul.msk.bf16.gmra.mxu2 %vm260_vm1, %v2360_v15 }
0x11cb   :  { %v2398_v31 = vpop.f32.mrf.mxu2 }
0x11cc   :  { %v2399_v34 = vadd.f32 %v4129_v22, %v2398_v31 }
0x11ce   :  { %v2408_v40 = vmax.f32 %v2399_v34, 0.0 }
0x11d3   :  { %v2400_v43 = vpop.f32.mrf.mxu2 }
0x11d4   :  { %v2401_v37 = vadd.f32 %v4129_v22, %v2400_v43 }
0x11d6   :  { %v2409_v18 = vmax.f32 %v2401_v37, 0.0 }
0x11d8   :  { %v2412_v55 = vpack.c.bf16 %v2409_v18, %v2408_v40 }
0x11da   :  { %3861 = vmatmul.msk.bf16.vlgmr.msra.gmra.mxu3 %vm226_vm0, %v2412_v55 }
0x1222   :  { %v2403_v41 = vpop.f32.mrf.mxu2 }
0x1223   :  { %v2404_v6 = vadd.f32 %v4129_v22, %v2403_v41 }
0x1225   :  { %v2410_v25 = vmax.f32 %v2404_v6, 0.0  ;;  %v4131_v6 = vld [vmem:[#allocation10 + $0x2] ss:$0 sm:$0xff] }
0x122a   :  { %v2405_v26 = vpop.f32.mrf.mxu2 }
0x122b   :  { %v2406_v52 = vadd.f32 %v4129_v22, %v2405_v26 }
0x122d   :  { %v2411_v27 = vmax.f32 %v2406_v52, 0.0 }
0x122f   :  { %v2413_v3 = vpack.c.bf16 %v2411_v27, %v2410_v25  ;;  %v4132_v27 = vld [vmem:[#allocation11 + $0x2] ss:$0 sm:$0xff] }
0x1231   :  { %3862 = vmatmul.msk.bf16.gmra.mxu3 %vm226_vm0, %v2413_v3 }
0x125d   :  { %v2462_v39 = vpop.f32.mrf.mxu3 }
0x125e   :  { %v2472_v45 = vadd.f32 %v2462_v39, %v5461_v59 }
0x1260   :  { %v5535_v42 = vadd.f32 %v4130_v46, %v2472_v45 }
0x1262   :  { %v2489_v50 = vsel %vm260_vm1, %v5535_v42, 0.0 }
0x1263   :  { %2490 = vadd.xlane.f32.xlu2 %v2489_v50 }
0x1265   :  { %v2464_v8 = vpop.f32.mrf.mxu3 }
0x1266   :  { %v2473_v57 = vadd.f32 %v2464_v8, %v5466_v56 }
0x1268   :  { %v5540_v7 = vadd.f32 %v4130_v46, %v2473_v57 }
0x126a   :  { %v2492_v28 = vsel %vm260_vm1, %v5540_v7, 0.0 }
0x126b   :  { %2493 = vadd.xlane.f32.xlu0 %v2492_v28 }
0x12b4   :  { %v2467_v38 = vpop.f32.mrf.mxu3 }
0x12b5   :  { %v2474_v58 = vadd.f32 %v2467_v38, %v5471_v49 }
0x12b7   :  { %v5545_v60 = vadd.f32 %v4130_v46, %v2474_v58 }
0x12b9   :  { %v2495_v59 = vsel %vm260_vm1, %v5545_v60, 0.0 }
0x12ba   :  { %2496 = vadd.xlane.f32.xlu1 %v2495_v59 }
0x12bc   :  { %v2469_v44 = vpop.f32.mrf.mxu3 }
0x12bd   :  { %v2475_v54 = vadd.f32 %v2469_v44, %v5476_v0 }
0x12bf   :  { %v5550_v61 = vadd.f32 %v4130_v46, %v2475_v54 }
0x12c1   :  { %v2498_v56 = vsel %vm260_vm1, %v5550_v61, 0.0 }
0x12c2   :  { %2499 = vadd.xlane.f32.xlu2 %v2498_v56 }
0x12d6   :  { %v2491_v23 = vpop.xlane.xlu2 %2490 }
0x12d7   :  { %v2501_v62 = vmul.f32 %v2491_v23, %v4805_v35 }
0x12d9   :  { %v2505_v49 = vsub.f32 %v5535_v42, %v2501_v62 }
0x12db   :  { %v2509_v33 = vmul.f32 %v2505_v49, %v2505_v49 }
0x12dd   :  { %v2513_v17 = vsel %vm260_vm1, %v2509_v33, 0.0 }
0x12de   :  { %2514 = vadd.xlane.f32.xlu0 %v2513_v17  ;;  %v2494_v24 = vpop.xlane.xlu0 %2493 }
0x12df   :  { %v2502_v36 = vmul.f32 %v2494_v24, %v4805_v35 }
0x12e1   :  { %v2506_v0 = vsub.f32 %v5540_v7, %v2502_v36 }
0x12e3   :  { %v2510_v2 = vmul.f32 %v2506_v0, %v2506_v0 }
0x12e5   :  { %v2516_v4 = vsel %vm260_vm1, %v2510_v2, 0.0 }
0x12e6   :  { %2517 = vadd.xlane.f32.xlu1 %v2516_v4 }
0x132d   :  { %v2497_v32 = vpop.xlane.xlu1 %2496 }
0x132e   :  { %v2503_v16 = vmul.f32 %v2497_v32, %v4805_v35 }
0x1330   :  { %v5562_v19 = vsub.f32 %v5545_v60, %v2503_v16 }
0x1332   :  { %v2511_v5 = vmul.f32 %v5562_v19, %v5562_v19 }
0x1334   :  { %v2519_v51 = vsel %vm260_vm1, %v2511_v5, 0.0 }
0x1335   :  { %2520 = vadd.xlane.f32.xlu2 %v2519_v51  ;;  %v2500_v48 = vpop.xlane.xlu2 %2499 }
0x1336   :  { %v2504_v21 = vmul.f32 %v2500_v48, %v4805_v35 }
0x1338   :  { %v5569_v63 = vsub.f32 %v5550_v61, %v2504_v21 }
0x133a   :  { %v2512_v10 = vmul.f32 %v5569_v63, %v5569_v63 }
0x133c   :  { %v2522_v53 = vsel %vm260_vm1, %v2512_v10, 0.0 }
0x133d   :  { %2523 = vadd.xlane.f32.xlu0 %v2522_v53 }
0x1351   :  { %v2515_v9 = vpop.xlane.xlu0 %2514 }
0x1352   :  { %v2525_v47 = vmul.f32 %v2515_v9, %v4805_v35 }
0x1354   :  { %v2529_v14 = vadd.f32 1e-05, %v2525_v47  ;;  %v4133_v47 = vld [vmem:[%s5922_s5 + $0x2] ss:$0 sm:$0xff]  ;;  %s5959_s5 = smov 56  }
0x1356   :  { %4302 = vrsqrt.f32 %v2529_v14  ;;  %vm2539_vm8 = vweird.f32 %v2529_v14 }
0x1359   :  { %v2518_v12 = vpop.xlane.xlu1 %2517 }
0x135a   :  { %v2526_v15 = vmul.f32 %v2518_v12, %v4805_v35 }
0x135c   :  { %v4303_v29 = vpop.eup %4302  ;;  %v2530_v13 = vadd.f32 1e-05, %v2526_v15 }
0x135d   :  { %v2534_v1 = vmul.f32 %v4303_v29, %v2529_v14  ;;  %vm2540_vm7 = vweird.f32 %v4303_v29 }
0x135e   :  { %4304 = vrsqrt.f32 %v2530_v13  ;;  %vm2541_vm9 = vmor %vm2539_vm8, %vm2540_vm7  ;;  %vm2549_vm11 = vweird.f32 %v2530_v13 }
0x135f   :  { %v2535_v30 = vmul.f32 %v4303_v29, %v2534_v1 }
0x1361   :  { %v2536_v31 = vmul.f32 0.5, %v2535_v30 }
0x1363   :  { %v2537_v22 = vsub.f32 1.5, %v2536_v31 }
0x1364   :  { %v4305_v34 = vpop.eup %4304 }
0x1365   :  { %v2538_v43 = vmul.f32 %v4303_v29, %v2537_v22  ;;  %v2544_v37 = vmul.f32 %v4305_v34, %v2530_v13  ;;  %vm2550_vm10 = vweird.f32 %v4305_v34 }
0x1366   :  { %vm2551_vm12 = vmor %vm2549_vm11, %vm2550_vm10 }
0x1367   :  { %v2545_v40 = vmul.f32 %v4305_v34, %v2544_v37  ;;  %v2542_v18 = vsel %vm2541_vm9, %v4303_v29, %v2538_v43 }
0x1368   :  { %v2573_v26 = vmul.f32 %v2542_v18, %v2505_v49 }
0x1369   :  { %v2546_v55 = vmul.f32 0.5, %v2545_v40 }
0x136a   :  { %v2580_v3 = vmul.f32 %v4131_v6, %v2573_v26 }
0x136b   :  { %v2547_v41 = vsub.f32 1.5, %v2546_v55 }
0x136c   :  { %v2587_v45 = vadd.f32 %v4132_v27, %v2580_v3 }
0x136d   :  { %v2548_v52 = vmul.f32 %v4305_v34, %v2547_v41 }
0x136f   :  { %v2552_v25 = vsel %vm2551_vm12, %v4305_v34, %v2548_v52 }
0x1370   :  { %v2574_v46 = vmul.f32 %v2552_v25, %v2506_v0 }
0x1372   :  { %v2581_v39 = vmul.f32 %v4131_v6, %v2574_v46 }
0x1374   :  { %v2588_v50 = vadd.f32 %v4132_v27, %v2581_v39 }
0x1376   :  { %v2591_v8 = vpack.c.bf16 %v2588_v50, %v2587_v45 }
0x1378   :  { %3876 = vmatmul.msk.bf16.vlgmr.msrb.gmra.mxu0 %vm260_vm1, %v2591_v8 }
0x13a8   :  { %v2521_v57 = vpop.xlane.xlu2 %2520 }
0x13a9   :  { %v2527_v28 = vmul.f32 %v2521_v57, %v4805_v35 }
0x13ab   :  { %v2531_v38 = vadd.f32 1e-05, %v2527_v28 }
0x13ad   :  { %4306 = vrsqrt.f32 %v2531_v38  ;;  %vm2559_vm14 = vweird.f32 %v2531_v38 }
0x13b0   :  { %v2524_v58 = vpop.xlane.xlu0 %2523 }
0x13b1   :  { %v2528_v59 = vmul.f32 %v2524_v58, %v4805_v35 }
0x13b3   :  { %v4307_v44 = vpop.eup %4306  ;;  %v2532_v54 = vadd.f32 1e-05, %v2528_v59 }
0x13b4   :  { %v2554_v56 = vmul.f32 %v4307_v44, %v2531_v38  ;;  %vm2560_vm13 = vweird.f32 %v4307_v44 }
0x13b5   :  { %4308 = vrsqrt.f32 %v2532_v54  ;;  %vm2561_vm4 = vmor %vm2559_vm14, %vm2560_vm13  ;;  %vm2569_vm6 = vweird.f32 %v2532_v54 }
0x13b6   :  { %v2555_v23 = vmul.f32 %v4307_v44, %v2554_v56 }
0x13b8   :  { %v2556_v62 = vmul.f32 0.5, %v2555_v23 }
0x13ba   :  { %v2557_v49 = vsub.f32 1.5, %v2556_v62 }
0x13bb   :  { %v4309_v33 = vpop.eup %4308 }
0x13bc   :  { %v2558_v17 = vmul.f32 %v4307_v44, %v2557_v49  ;;  %v2564_v24 = vmul.f32 %v4309_v33, %v2532_v54  ;;  %vm2570_vm5 = vweird.f32 %v4309_v33 }
0x13bd   :  { %vm2571_vm7 = vmor %vm2569_vm6, %vm2570_vm5  ;;  %vm3640_vm6 = vcmask 1041409  }
0x13be   :  { %v2565_v36 = vmul.f32 %v4309_v33, %v2564_v24  ;;  %v2562_v0 = vsel %vm2561_vm4, %v4307_v44, %v2558_v17 }
0x13bf   :  { %v2575_v32 = vmul.f32 %v2562_v0, %v5562_v19 }
0x13c0   :  { %v2566_v2 = vmul.f32 0.5, %v2565_v36 }
0x13c1   :  { %v2582_v48 = vmul.f32 %v4131_v6, %v2575_v32 }
0x13c2   :  { %v2567_v4 = vsub.f32 1.5, %v2566_v2 }
0x13c3   :  { %v2589_v10 = vadd.f32 %v4132_v27, %v2582_v48 }
0x13c4   :  { %v2568_v16 = vmul.f32 %v4309_v33, %v2567_v4 }
0x13c6   :  { %v2572_v5 = vsel %vm2571_vm7, %v4309_v33, %v2568_v16 }
0x13c7   :  { %v2576_v51 = vmul.f32 %v2572_v5, %v5569_v63 }
0x13c9   :  { %v2583_v21 = vmul.f32 %v4131_v6, %v2576_v51 }
0x13cb   :  { %v2590_v53 = vadd.f32 %v4132_v27, %v2583_v21 }
0x13cd   :  { %v2592_v9 = vpack.c.bf16 %v2590_v53, %v2589_v10 }
0x13cf   :  { %3877 = vmatmul.msk.bf16.gmra.mxu0 %vm260_vm1, %v2592_v9 }
0x13f5   :  { %v2630_v11 = vpop.f32.mrf.mxu0 }
0x13f6   :  { %v2631_v14 = vadd.f32 %v4133_v47, %v2630_v11 }
0x13f8   :  { %v2640_v20 = vpack.c.bf16 %v2631_v14, %v2631_v14 }
0x13fa   :  { %v2646_v29 = vunpack.c.l.b16 %v2640_v20 }
0x13fd   :  { %v2632_v19 = vpop.f32.mrf.mxu0 }
0x13fe   :  { %v2633_v12 = vadd.f32 %v4133_v47, %v2632_v19 }
0x1400   :  { %v2641_v15 = vpack.c.bf16 %v2633_v12, %v2633_v12 }
0x1402   :  { %v2647_v13 = vunpack.c.l.b16 %v2641_v15 }
0x1404   :  { %v5591_v63 = vpack.c.b16 %v2647_v13, %v2646_v29 }
0x1406   :  { %2649 = vrot.lane.b32.xlu1 %v5591_v63, %s4628_s14  ;;  %2802 = vrot.lane.b32.xlu0 %v5591_v63, %s4627_s25 }
0x140e   :  { %2800 = vrot.lane.b32.xlu0 %v5591_v63, %s4629_s28 }
0x144c   :  { %v2635_v1 = vpop.f32.mrf.mxu0 }
0x144d   :  { %v2636_v30 = vadd.f32 %v4133_v47, %v2635_v1 }
0x144f   :  { %v2642_v22 = vpack.c.bf16 %v2636_v30, %v2636_v30 }
0x1451   :  { %v2673_v37 = vunpack.c.l.b16 %v2642_v22 }
0x1454   :  { %v2637_v31 = vpop.f32.mrf.mxu0 }
0x1455   :  { %v2638_v34 = vadd.f32 %v4133_v47, %v2637_v31 }
0x1457   :  { %v2643_v43 = vpack.c.bf16 %v2638_v34, %v2638_v34 }
0x1459   :  { %v2674_v40 = vunpack.c.l.b16 %v2643_v43 }
0x145b   :  { %v5599_v18 = vpack.c.b16 %v2674_v40, %v2673_v37 }
0x145d   :  { %2824 = vrot.lane.b32.xlu0 %v5599_v18, %s4629_s28  ;;  %2826 = vrot.lane.b32.xlu1 %v5599_v18, %s4627_s25  ;;  %s5960_s25 = smov 48  }
0x145e   :  { %2676 = vrot.lane.b32.xlu2 %v5599_v18, %s4628_s14 }
0x1465   :  { %3102 = vrot.lane.b32.xlu0 %v5591_v63, %s4631_s26  ;;  %2950 = vrot.lane.b32.xlu1 %v5591_v63, %s4633_s1 }
0x1466   :  { %2952 = vrot.lane.b32.xlu2 %v5591_v63, %s4630_s16 }
0x146d   :  { %3126 = vrot.lane.b32.xlu0 %v5599_v18, %s4631_s26  ;;  %2974 = vrot.lane.b32.xlu1 %v5599_v18, %s4633_s1 }
0x146e   :  { %2976 = vrot.lane.b32.xlu2 %v5599_v18, %s4630_s16 }
0x1475   :  { %3124 = vrot.lane.b32.xlu1 %v5599_v18, %s4632_s11 }
0x1476   :  { %3100 = vrot.lane.b32.xlu2 %v5591_v63, %s4632_s11 }
0x1478   :  { %v2650_v55 = vpop.permute.xlu1 %2649  ;;  %v2803_v41 = vpop.permute.xlu0 %2802 }
0x1479   :  { %v2655_v6 = vsel %vm428_vm15, %v2650_v55, 0  ;;  %v2808_v26 = vsel %vm428_vm15, %v2803_v41, 0 }
0x147a   :  { %2664 = vmatpush.bf16.xpose.msra.mxu1 %v2655_v6 }
0x1480   :  { %v2801_v52 = vpop.permute.xlu0 %2800 }
0x1481   :  { %3878 = vmatmul.msk.bf16.vlgmr.msra.gmra.mxu1 %vm428_vm15, %v5591_v63 }
0x1482   :  { %2817 = vmatpush.bf16.xpose.msrb.mxu1 %v2808_v26 }
0x1491   :  { %3882 = vmatmul.msk.bf16.vlgmr.msrb.gmra.mxu1 %vm428_vm15, %v2801_v52 }
0x14b8   :  { %v2677_v25 = vpop.permute.xlu2 %2676 }
0x14b9   :  { %v2682_v27 = vsel %vm428_vm15, %v2677_v25, 0 }
0x14ba   :  { %2691 = vmatpush.bf16.xpose.msrb.mxu2 %v2682_v27 }
0x14c0   :  { %v2953_v3 = vpop.permute.xlu2 %2952 }
0x14c1   :  { %v2958_v46 = vsel %vm428_vm15, %v2953_v3, 0  ;;  %3879 = vmatmul.msk.bf16.vlgmr.msrb.gmra.mxu2 %vm428_vm15, %v5599_v18 }
0x14c2   :  { %2967 = vmatpush.bf16.xpose.msra.mxu1 %v2958_v46 }
0x14c8   :  { %v2977_v39 = vpop.permute.xlu2 %2976 }
0x14c9   :  { %v2982_v57 = vsel %vm428_vm15, %v2977_v39, 0 }
0x14cf   :  { %v2825_v45 = vpop.permute.xlu0 %2824  ;;  %v2827_v50 = vpop.permute.xlu1 %2826 }
0x14d0   :  { %v2832_v8 = vsel %vm428_vm15, %v2827_v50, 0  ;;  %v3101_v54 = vpop.permute.xlu2 %3100 }
0x14d1   :  { %2841 = vmatpush.bf16.xpose.msra.mxu2 %v2832_v8 }
0x14d7   :  { %v3103_v28 = vpop.permute.xlu0 %3102  ;;  %v2951_v38 = vpop.permute.xlu1 %2950 }
0x14d8   :  { %v3108_v58 = vsel %vm428_vm15, %v3103_v28, 0  ;;  %3883 = vmatmul.msk.bf16.vlgmr.msra.gmra.mxu2 %vm428_vm15, %v2825_v45  ;;  %3886 = vmatmul.msk.bf16.vlgmr.msra.gmra.mxu1 %vm428_vm15, %v2951_v38 }
0x14d9   :  { %2991 = vmatpush.bf16.xpose.msrb.mxu2 %v2982_v57  ;;  %3117 = vmatpush.bf16.xpose.msrb.mxu1 %v3108_v58 }
0x14df   :  { %v3127_v59 = vpop.permute.xlu0 %3126  ;;  %v2975_v56 = vpop.permute.xlu1 %2974 }
0x14e0   :  { %v3132_v44 = vsel %vm428_vm15, %v3127_v59, 0 }
0x14e1   :  { %3141 = vmatpush.bf16.xpose.msra.mxu2 %v3132_v44 }
0x14e7   :  { %v3125_v23 = vpop.permute.xlu1 %3124 }
0x14e8   :  { %3887 = vmatmul.msk.bf16.vlgmr.msrb.gmra.mxu2 %vm428_vm15, %v2975_v56  ;;  %3890 = vmatmul.msk.bf16.vlgmr.msrb.gmra.mxu1 %vm428_vm15, %v3101_v54 }
0x14f8   :  { %3891 = vmatmul.msk.bf16.vlgmr.msra.gmra.mxu2 %vm428_vm15, %v3125_v23 }
0x14fe   :  { %v2666_v62 = vpop.f32.mrf.mxu1 }
0x14ff   :  { %v2698_v49 = vmul.f32 0.35355338, %v2666_v62 }
0x1501   :  { %v2702_v33 = vsel %vm480_vm2, %v2698_v49, -inf }
0x1502   :  { %2703 = vmax.xlane.f32.xlu2 %v2702_v33 }
0x1506   :  { %v2668_v17 = vpop.f32.mrf.mxu1 }
0x1507   :  { %v2699_v24 = vmul.f32 0.35355338, %v2668_v17 }
0x1509   :  { %v2705_v36 = vsel %vm480_vm2, %v2699_v24, -inf }
0x150a   :  { %2706 = vmax.xlane.f32.xlu0 %v2705_v36 }
0x150e   :  { %v2819_v0 = vpop.f32.mrf.mxu1 }
0x150f   :  { %v2848_v2 = vmul.f32 0.35355338, %v2819_v0 }
0x1511   :  { %v2852_v4 = vsel %vm480_vm2, %v2848_v2, -inf }
0x1512   :  { %2853 = vmax.xlane.f32.xlu1 %v2852_v4 }
0x1516   :  { %v2821_v32 = vpop.f32.mrf.mxu1 }
0x1517   :  { %v2849_v16 = vmul.f32 0.35355338, %v2821_v32 }
0x1519   :  { %v2855_v5 = vsel %vm480_vm2, %v2849_v16, -inf }
0x151a   :  { %2856 = vmax.xlane.f32.xlu2 %v2855_v5 }
0x1544   :  { %v2693_v6 = vpop.f32.mrf.mxu2 }
0x1545   :  { %v5663_v26 = vmul.f32 0.35355338, %v2693_v6 }
0x1547   :  { %v2708_v46 = vsel %vm480_vm2, %v5663_v26, -inf }
0x154c   :  { %v2695_v8 = vpop.f32.mrf.mxu2 }
0x154d   :  { %v5691_v33 = vmul.f32 0.35355338, %v2695_v8 }
0x1555   :  { %v2969_v51 = vpop.f32.mrf.mxu1 }
0x1556   :  { %v2998_v48 = vmul.f32 0.35355338, %v2969_v51 }
0x1558   :  { %v3002_v21 = vsel %vm480_vm2, %v2998_v48, -inf }
0x1559   :  { %3003 = vmax.xlane.f32.xlu2 %v3002_v21 }
0x155b   :  { %v2843_v57 = vpop.f32.mrf.mxu2 }
0x155d   :  { %v2971_v10 = vpop.f32.mrf.mxu1 }
0x155e   :  { %v2999_v53 = vmul.f32 0.35355338, %v2971_v10 }
0x1560   :  { %v3005_v9 = vsel %vm480_vm2, %v2999_v53, -inf }
0x1561   :  { %3006 = vmax.xlane.f32.xlu0 %v3005_v9 }
0x1563   :  { %v2845_v59 = vpop.f32.mrf.mxu2 }
0x1564   :  { %v5700_v4 = vmul.f32 0.35355338, %v2845_v59 }
0x1565   :  { %v3119_v11 = vpop.f32.mrf.mxu1 }
0x1566   :  { %v5647_v47 = vmul.f32 0.35355338, %v3119_v11  ;;  %v2861_v21 = vsel %vm480_vm2, %v5700_v4, -inf }
0x1568   :  { %v3152_v14 = vsel %vm480_vm2, %v5647_v47, -inf }
0x1569   :  { %3153 = vmax.xlane.f32.xlu0 %v3152_v14 }
0x156d   :  { %v3121_v19 = vpop.f32.mrf.mxu1 }
0x156e   :  { %v5651_v20 = vmul.f32 0.35355338, %v3121_v19 }
0x1570   :  { %v3155_v12 = vsel %vm480_vm2, %v5651_v20, -inf }
0x1571   :  { %3156 = vmax.xlane.f32.xlu1 %v3155_v12 }
0x1575   :  { %v2704_v15 = vpop.xlane.xlu2 %2703 }
0x1576   :  { %v2714_v29 = vsub.f32 %v2698_v49, %v2704_v15  ;;  %v2993_v49 = vpop.f32.mrf.mxu2 }
0x1577   :  { %v5717_v19 = vmul.f32 0.35355338, %v2993_v49 }
0x1578   :  { %v2718_v13 = vmul.f32 1.442695, %v2714_v29 }
0x1579   :  { %v3008_v15 = vsel %vm480_vm2, %v5717_v19, -inf }
0x157a   :  { %4310 = vpow2.f32 %v2718_v13 }
0x157d   :  { %v2707_v1 = vpop.xlane.xlu0 %2706 }
0x157e   :  { %v2715_v30 = vsub.f32 %v2699_v24, %v2707_v1 }
0x1580   :  { %v5655_v31 = vpop.eup %4310  ;;  %v2720_v22 = vmul.f32 1.442695, %v2715_v30 }
0x1581   :  { %v2726_v34 = vsel %vm480_vm2, %v5655_v31, 0.0 }
0x1582   :  { %4312 = vpow2.f32 %v2720_v22  ;;  %2727 = vadd.xlane.f32.xlu2 %v2726_v34 }
0x1585   :  { %v2854_v43 = vpop.xlane.xlu1 %2853 }
0x1586   :  { %v2864_v37 = vsub.f32 %v2848_v2, %v2854_v43  ;;  %v2711_v2 = vsel %vm480_vm2, %v5691_v33, -inf }
0x1588   :  { %v5659_v40 = vpop.eup %4312  ;;  %v2868_v55 = vmul.f32 1.442695, %v2864_v37 }
0x1589   :  { %v2729_v41 = vsel %vm480_vm2, %v5659_v40, 0.0 }
0x158a   :  { %4314 = vpow2.f32 %v2868_v55  ;;  %2730 = vadd.xlane.f32.xlu0 %v2729_v41 }
0x158d   :  { %v2857_v52 = vpop.xlane.xlu2 %2856 }
0x158e   :  { %v2865_v25 = vsub.f32 %v2849_v16, %v2857_v52  ;;  %v2995_v16 = vpop.f32.mrf.mxu2 }
0x1590   :  { %v5665_v27 = vpop.eup %4314  ;;  %v2870_v3 = vmul.f32 1.442695, %v2865_v25 }
0x1591   :  { %v2876_v39 = vsel %vm480_vm2, %v5665_v27, 0.0 }
0x1592   :  { %4316 = vpow2.f32 %v2870_v3  ;;  %2709 = vmax.xlane.f32.xlu0 %v2708_v46  ;;  %2877 = vadd.xlane.f32.xlu1 %v2876_v39 }
0x1596   :  { %v3143_v11 = vpop.f32.mrf.mxu2 }
0x1597   :  { %v5725_v13 = vmul.f32 0.35355338, %v3143_v11 }
0x1598   :  { %v5671_v45 = vpop.eup %4316 }
0x1599   :  { %v2879_v50 = vsel %vm480_vm2, %v5671_v45, 0.0  ;;  %v3158_v34 = vsel %vm480_vm2, %v5725_v13, -inf }
0x159a   :  { %2880 = vadd.xlane.f32.xlu2 %v2879_v50 }
0x159e   :  { %v3145_v29 = vpop.f32.mrf.mxu2 }
0x159f   :  { %v5727_v1 = vmul.f32 0.35355338, %v3145_v29 }
0x15a1   :  { %v3161_v22 = vsel %vm480_vm2, %v5727_v1, -inf }
0x15a6   :  { %2755 = vrot.lane.b32.xlu0 %v5591_v63, %s4624_s27 }
0x15ae   :  { %2905 = vrot.lane.b32.xlu0 %v5591_v63, %s5959_s5 }
0x15b6   :  { %2780 = vrot.lane.b32.xlu0 %v5599_v18, %s4624_s27 }
0x15be   :  { %3055 = vrot.lane.b32.xlu0 %v5591_v63, %s5960_s25 }
0x15c6   :  { %2930 = vrot.lane.b32.xlu0 %v5599_v18, %s5959_s5 }
0x15cc   :  { %v3004_v28 = vpop.xlane.xlu2 %3003 }
0x15cd   :  { %v3014_v38 = vsub.f32 %v2998_v48, %v3004_v28 }
0x15ce   :  { %3205 = vrot.lane.b32.xlu0 %v5591_v63, %s5957_s2 }
0x15cf   :  { %v3018_v58 = vmul.f32 1.442695, %v3014_v38 }
0x15d1   :  { %4318 = vpow2.f32 %v3018_v58 }
0x15d4   :  { %v3007_v44 = vpop.xlane.xlu0 %3006 }
0x15d5   :  { %v3015_v54 = vsub.f32 %v2999_v53, %v3007_v44  ;;  %v5709_v53 = vmul.f32 0.35355338, %v2843_v57 }
0x15d7   :  { %v5687_v56 = vpop.eup %4318  ;;  %v3020_v23 = vmul.f32 1.442695, %v3015_v54  ;;  %v2858_v14 = vsel %vm480_vm2, %v5709_v53, -inf }
0x15d8   :  { %v3026_v62 = vsel %vm480_vm2, %v5687_v56, 0.0 }
0x15d9   :  { %4320 = vpow2.f32 %v3020_v23  ;;  %3027 = vadd.xlane.f32.xlu1 %v3026_v62 }
0x15dc   :  { %v3154_v17 = vpop.xlane.xlu0 %3153 }
0x15dd   :  { %v3164_v24 = vsub.f32 %v5647_v47, %v3154_v17 }
0x15df   :  { %v5694_v63 = vpop.eup %4320  ;;  %v3168_v36 = vmul.f32 1.442695, %v3164_v24 }
0x15e0   :  { %v3029_v0 = vsel %vm480_vm2, %v5694_v63, 0.0 }
0x15e1   :  { %4322 = vpow2.f32 %v3168_v36  ;;  %3030 = vadd.xlane.f32.xlu2 %v3029_v0  ;;  %2712 = vmax.xlane.f32.xlu1 %v2711_v2 }
0x15e4   :  { %v3157_v32 = vpop.xlane.xlu1 %3156 }
0x15e5   :  { %v3165_v5 = vsub.f32 %v5651_v20, %v3157_v32  ;;  %v5719_v20 = vmul.f32 0.35355338, %v2995_v16 }
0x15e7   :  { %v5703_v51 = vpop.eup %4322  ;;  %v3170_v48 = vmul.f32 1.442695, %v3165_v5  ;;  %v3011_v12 = vsel %vm480_vm2, %v5719_v20, -inf }
0x15e8   :  { %v3176_v10 = vsel %vm480_vm2, %v5703_v51, 0.0 }
0x15e9   :  { %4324 = vpow2.f32 %v3170_v48  ;;  %2862 = vmax.xlane.f32.xlu2 %v2861_v21  ;;  %3177 = vadd.xlane.f32.xlu1 %v3176_v10 }
0x15ef   :  { %v5711_v9 = vpop.eup %4324 }
0x15f0   :  { %v3179_v47 = vsel %vm480_vm2, %v5711_v9, 0.0 }
0x15f1   :  { %3180 = vadd.xlane.f32.xlu2 %v3179_v47  ;;  %2859 = vmax.xlane.f32.xlu1 %v2858_v14 }
0x15f5   :  { %v2728_v43 = vpop.xlane.xlu2 %2727 }
0x15f9   :  { %3012 = vmax.xlane.f32.xlu2 %v3011_v12  ;;  %3009 = vmax.xlane.f32.xlu1 %v3008_v15 }
0x15fd   :  { %v2731_v30 = vpop.xlane.xlu0 %2730 }
0x15fe   :  { %4326 = vrcp.f32 %v2731_v30 }
0x15ff   :  { %4328 = vrcp.f32 %v2728_v43 }
0x1601   :  { %3162 = vmax.xlane.f32.xlu2 %v3161_v22  ;;  %3159 = vmax.xlane.f32.xlu1 %v3158_v34 }
0x1604   :  { %v4327_v6 = vpop.eup %4326 }
0x1605   :  { %v2710_v37 = vpop.xlane.xlu0 %2709  ;;  %v4329_v52 = vpop.eup %4328  ;;  %v2743_v25 = vmul.f32 %v4327_v6, %v5659_v40 }
0x1606   :  { %v2716_v55 = vsub.f32 %v5663_v26, %v2710_v37  ;;  %v2742_v46 = vmul.f32 %v4329_v52, %v5655_v31  ;;  %v2878_v28 = vpop.xlane.xlu1 %2877 }
0x1607   :  { %v2747_v50 = vpack.c.bf16 %v2743_v25, %v2743_v25 }
0x1608   :  { %v2722_v41 = vmul.f32 1.442695, %v2716_v55  ;;  %v2746_v57 = vpack.c.bf16 %v2742_v46, %v2742_v46 }
0x1609   :  { %v2753_v26 = vunpack.c.l.b16 %v2747_v50 }
0x160a   :  { %4330 = vpow2.f32 %v2722_v41  ;;  %v2752_v38 = vunpack.c.l.b16 %v2746_v57 }
0x160c   :  { %v2754_v59 = vpack.c.b16 %v2753_v26, %v2752_v38 }
0x160d   :  { %v2881_v8 = vpop.xlane.xlu2 %2880 }
0x160e   :  { %4332 = vrcp.f32 %v2881_v8 }
0x160f   :  { %4334 = vrcp.f32 %v2878_v28 }
0x1610   :  { %v5735_v3 = vpop.eup %4330 }
0x1611   :  { %v2732_v39 = vsel %vm480_vm2, %v5735_v3, 0.0 }
0x1612   :  { %2733 = vadd.xlane.f32.xlu1 %v2732_v39 }
0x1614   :  { %v4333_v40 = vpop.eup %4332 }
0x1615   :  { %v4335_v44 = vpop.eup %4334  ;;  %v2893_v31 = vmul.f32 %v4333_v40, %v5671_v45 }
0x1616   :  { %v2892_v54 = vmul.f32 %v4335_v44, %v5665_v27 }
0x1617   :  { %v2897_v62 = vpack.c.bf16 %v2893_v31, %v2893_v31 }
0x1618   :  { %v2756_v58 = vpop.permute.xlu0 %2755  ;;  %v2896_v49 = vpack.c.bf16 %v2892_v54, %v2892_v54 }
0x1619   :  { %2768 = vmatpush.bf16.msrb.mxu3 %v2756_v58  ;;  %v2903_v17 = vunpack.c.l.b16 %v2897_v62 }
0x161a   :  { %v2902_v24 = vunpack.c.l.b16 %v2896_v49 }
0x161c   :  { %3880 = vmatmul.msk.bf16.vlgmr.msrb.gmra.mxu3 %vm480_vm2, %v2754_v59  ;;  %v2904_v0 = vpack.c.b16 %v2903_v17, %v2902_v24 }
0x1620   :  { %v2906_v23 = vpop.permute.xlu0 %2905 }
0x1621   :  { %2918 = vmatpush.bf16.msra.mxu3 %v2906_v23 }
0x1628   :  { %v2781_v36 = vpop.permute.xlu0 %2780 }
0x1629   :  { %2793 = vmatpush.bf16.msra.mxu0 %v2781_v36 }
0x162c   :  { %3884 = vmatmul.msk.bf16.vlgmr.msra.gmra.mxu3 %vm480_vm2, %v2904_v0 }
0x1630   :  { %v3056_v2 = vpop.permute.xlu0 %3055 }
0x1631   :  { %3068 = vmatpush.bf16.msrb.mxu3 %v3056_v2 }
0x1638   :  { %v2931_v32 = vpop.permute.xlu0 %2930 }
0x1639   :  { %2943 = vmatpush.bf16.msrb.mxu0 %v2931_v32 }
0x1640   :  { %v3206_v16 = vpop.permute.xlu0 %3205 }
0x1641   :  { %3218 = vmatpush.bf16.msra.mxu3 %v3206_v16 }
0x164c   :  { %v3028_v45 = vpop.xlane.xlu1 %3027 }
0x164d   :  { %4336 = vrcp.f32 %v3028_v45 }
0x1653   :  { %v4337_v48 = vpop.eup %4336 }
0x1654   :  { %v2713_v27 = vpop.xlane.xlu1 %2712  ;;  %v3031_v5 = vpop.xlane.xlu2 %3030  ;;  %v3042_v11 = vmul.f32 %v4337_v48, %v5687_v56 }
0x1655   :  { %v2717_v21 = vsub.f32 %v5691_v33, %v2713_v27  ;;  %4338 = vrcp.f32 %v3031_v5 }
0x1656   :  { %v3046_v14 = vpack.c.bf16 %v3042_v11, %v3042_v11 }
0x1657   :  { %v2724_v10 = vmul.f32 1.442695, %v2717_v21 }
0x1658   :  { %v3052_v37 = vunpack.c.l.b16 %v3046_v14 }
0x1659   :  { %4340 = vpow2.f32 %v2724_v10 }
0x165b   :  { %v4339_v47 = vpop.eup %4338 }
0x165c   :  { %v3043_v12 = vmul.f32 %v4339_v47, %v5694_v63  ;;  %v3178_v15 = vpop.xlane.xlu1 %3177  ;;  %v2863_v29 = vpop.xlane.xlu2 %2862 }
0x165d   :  { %v2867_v30 = vsub.f32 %v5700_v4, %v2863_v29  ;;  %4342 = vrcp.f32 %v3178_v15 }
0x165e   :  { %v3047_v22 = vpack.c.bf16 %v3043_v12, %v3043_v12 }
0x165f   :  { %v5748_v34 = vpop.eup %4340  ;;  %v2874_v43 = vmul.f32 1.442695, %v2867_v30 }
0x1660   :  { %v3053_v33 = vunpack.c.l.b16 %v3047_v22  ;;  %v2735_v55 = vsel %vm480_vm2, %v5748_v34, 0.0 }
0x1661   :  { %4344 = vpow2.f32 %v2874_v43  ;;  %2736 = vadd.xlane.f32.xlu2 %v2735_v55 }
0x1662   :  { %v3054_v56 = vpack.c.b16 %v3053_v33, %v3052_v37 }
0x1663   :  { %v4343_v6 = vpop.eup %4342 }
0x1664   :  { %v2860_v41 = vpop.xlane.xlu1 %2859  ;;  %3888 = vmatmul.msk.bf16.vlgmr.msrb.gmra.mxu3 %vm480_vm2, %v3054_v56  ;;  %v3181_v63 = vpop.xlane.xlu2 %3180  ;;  %v3192_v46 = vmul.f32 %v4343_v6, %v5703_v51 }
0x1665   :  { %v2866_v4 = vsub.f32 %v5709_v53, %v2860_v41  ;;  %4346 = vrcp.f32 %v3181_v63 }
0x1666   :  { %v3196_v8 = vpack.c.bf16 %v3192_v46, %v3192_v46 }
0x1667   :  { %v5754_v52 = vpop.eup %4344  ;;  %v2872_v25 = vmul.f32 1.442695, %v2866_v4 }
0x1668   :  { %v2885_v39 = vsel %vm480_vm2, %v5754_v52, 0.0  ;;  %v3202_v51 = vunpack.c.l.b16 %v3196_v8 }
0x1669   :  { %4348 = vpow2.f32 %v2872_v25  ;;  %2886 = vadd.xlane.f32.xlu2 %v2885_v39 }
0x166b   :  { %v4347_v50 = vpop.eup %4346 }
0x166c   :  { %v3193_v57 = vmul.f32 %v4347_v50, %v5711_v9  ;;  %v3010_v28 = vpop.xlane.xlu1 %3009  ;;  %v3013_v26 = vpop.xlane.xlu2 %3012 }
0x166d   :  { %v3016_v38 = vsub.f32 %v5717_v19, %v3010_v28  ;;  %v3017_v53 = vsub.f32 %v5719_v20, %v3013_v26 }
0x166e   :  { %v3197_v58 = vpack.c.bf16 %v3193_v57, %v3193_v57 }
0x166f   :  { %v4349_v59 = vpop.eup %4348  ;;  %v3022_v40 = vmul.f32 1.442695, %v3016_v38  ;;  %v3024_v44 = vmul.f32 1.442695, %v3017_v53 }
0x1670   :  { %v3203_v31 = vunpack.c.l.b16 %v3197_v58  ;;  %v2882_v54 = vsel %vm480_vm2, %v4349_v59, 0.0 }
0x1671   :  { %4350 = vpow2.f32 %v3022_v40  ;;  %2883 = vadd.xlane.f32.xlu1 %v2882_v54 }
0x1672   :  { %v3204_v23 = vpack.c.b16 %v3203_v31, %v3202_v51  ;;  %4352 = vpow2.f32 %v3024_v44 }
0x1674   :  { %v3160_v62 = vpop.xlane.xlu1 %3159  ;;  %3892 = vmatmul.msk.bf16.vlgmr.msra.gmra.mxu3 %vm480_vm2, %v3204_v23  ;;  %v3163_v9 = vpop.xlane.xlu2 %3162 }
0x1675   :  { %v3166_v19 = vsub.f32 %v5725_v13, %v3160_v62  ;;  %v3167_v20 = vsub.f32 %v5727_v1, %v3163_v9 }
0x1677   :  { %v5766_v49 = vpop.eup %4350  ;;  %v3172_v17 = vmul.f32 1.442695, %v3166_v19  ;;  %v3174_v24 = vmul.f32 1.442695, %v3167_v20 }
0x1678   :  { %v4353_v36 = vpop.eup %4352  ;;  %v3032_v0 = vsel %vm480_vm2, %v5766_v49, 0.0 }
0x1679   :  { %4354 = vpow2.f32 %v3172_v17  ;;  %3033 = vadd.xlane.f32.xlu1 %v3032_v0  ;;  %v3035_v2 = vsel %vm480_vm2, %v4353_v36, 0.0 }
0x167a   :  { %4356 = vpow2.f32 %v3174_v24  ;;  %3036 = vadd.xlane.f32.xlu2 %v3035_v2 }
0x167f   :  { %v5771_v32 = vpop.eup %4354 }
0x1680   :  { %v5773_v16 = vpop.eup %4356  ;;  %v3182_v13 = vsel %vm480_vm2, %v5771_v32, 0.0 }
0x1681   :  { %v3185_v1 = vsel %vm480_vm2, %v5773_v16, 0.0 }
0x1682   :  { %3183 = vadd.xlane.f32.xlu2 %v3182_v13  ;;  %3186 = vadd.xlane.f32.xlu0 %v3185_v1 }
0x1685   :  { %v2734_v10 = vpop.xlane.xlu1 %2733 }
0x1686   :  { %4358 = vrcp.f32 %v2734_v10 }
0x168c   :  { %v4359_v47 = vpop.eup %4358 }
0x168d   :  { %v2744_v14 = vmul.f32 %v4359_v47, %v5735_v3 }
0x168f   :  { %v2748_v15 = vpack.c.bf16 %v2744_v14, %v2744_v14 }
0x1691   :  { %v2777_v22 = vunpack.c.l.b16 %v2748_v15 }
0x1692   :  { %3080 = vrot.lane.b32.xlu1 %v5599_v18, %s5960_s25  ;;  %s3679_s25 = sshll.u32 %s5935_s18, 4  ;;  %s3680_s25 = int_to_ptr.hbm [resolvable:$true] %s3679_s25 }
0x169a   :  { %3230 = vrot.lane.b32.xlu2 %v5599_v18, %s5957_s2 }
0x169f   :  { %v5783_v45 = vpop.f32.mrf.mxu3 }
0x16a7   :  { %v5785_v27 = vpop.f32.mrf.mxu3 }
0x16af   :  { %v2920_v5 = vpop.f32.mrf.mxu3 }
0x16b7   :  { %v2922_v48 = vpop.f32.mrf.mxu3 }
0x16b8   :  { %v4084_v21 = vpack.i.bf16 %v2922_v48, %v2920_v5  ;;  %v3987_v5 = vld [vmem:[%s5923_s6 + $0x28] sm:$0xff]  ;;  %v3986_v48 = vld [vmem:[%s5923_s6 + $0x20] sm:$0xff] }
0x16b9   :  { %3341 = vmatpush.bf16.msra.mxu1 %v3987_v5 }
0x16ba   :  { %4085 = vrot.lane.b32.xlu1 %v4084_v21, %s5954_s13 }
0x16bd   :  { %3342 = vmatpush.bf16.msra.mxu1 %v3986_v48 }
0x16d4   :  { %v2737_v11 = vpop.xlane.xlu2 %2736 }
0x16d5   :  { %4360 = vrcp.f32 %v2737_v11 }
0x16db   :  { %v4361_v12 = vpop.eup %4360 }
0x16dc   :  { %v2745_v18 = vmul.f32 %v4361_v12, %v5748_v34  ;;  %v2887_v29 = vpop.xlane.xlu2 %2886 }
0x16dd   :  { %4362 = vrcp.f32 %v2887_v29 }
0x16de   :  { %v2749_v30 = vpack.c.bf16 %v2745_v18, %v2745_v18 }
0x16e0   :  { %v2778_v43 = vunpack.c.l.b16 %v2749_v30 }
0x16e2   :  { %v2779_v37 = vpack.c.b16 %v2778_v43, %v2777_v22 }
0x16e3   :  { %v4363_v55 = vpop.eup %4362 }
0x16e4   :  { %v2884_v33 = vpop.xlane.xlu1 %2883  ;;  %3881 = vmatmul.msk.bf16.vlgmr.msra.gmra.mxu0 %vm480_vm2, %v2779_v37  ;;  %v2895_v41 = vmul.f32 %v4363_v55, %v5754_v52 }
0x16e5   :  { %4364 = vrcp.f32 %v2884_v33 }
0x16e6   :  { %v2899_v3 = vpack.c.bf16 %v2895_v41, %v2895_v41 }
0x16e7   :  { %v3070_v56 = vpop.f32.mrf.mxu3 }
0x16e8   :  { %v2928_v39 = vunpack.c.l.b16 %v2899_v3 }
0x16eb   :  { %v4365_v63 = vpop.eup %4364 }
0x16ec   :  { %v2894_v6 = vmul.f32 %v4365_v63, %v4349_v59  ;;  %v3034_v4 = vpop.xlane.xlu1 %3033 }
0x16ed   :  { %v3037_v34 = vpop.xlane.xlu2 %3036  ;;  %4366 = vrcp.f32 %v3034_v4 }
0x16ee   :  { %v2898_v25 = vpack.c.bf16 %v2894_v6, %v2894_v6  ;;  %4368 = vrcp.f32 %v3037_v34 }
0x16ef   :  { %v3072_v46 = vpop.f32.mrf.mxu3 }
0x16f0   :  { %v2927_v50 = vunpack.c.l.b16 %v2898_v25  ;;  %v4089_v8 = vpack.i.bf16 %v3072_v46, %v3070_v56  ;;  %v4134_v46 = vld [vmem:[%s5924_s7 + $0x2] ss:$0 sm:$0xff] }
0x16f2   :  { %v2929_v57 = vpack.c.b16 %v2928_v39, %v2927_v50  ;;  %4090 = vrot.lane.b32.xlu2 %v4089_v8, %s5955_s3 }
0x16f3   :  { %v4367_v28 = vpop.eup %4366 }
0x16f4   :  { %3885 = vmatmul.msk.bf16.vlgmr.msrb.gmra.mxu0 %vm480_vm2, %v2929_v57  ;;  %v4369_v26 = vpop.eup %4368  ;;  %v3044_v38 = vmul.f32 %v4367_v28, %v5766_v49 }
0x16f5   :  { %v3045_v53 = vmul.f32 %v4369_v26, %v4353_v36  ;;  %v3184_v58 = vpop.xlane.xlu2 %3183  ;;  %v3187_v59 = vpop.xlane.xlu0 %3186 }
0x16f6   :  { %v3048_v40 = vpack.c.bf16 %v3044_v38, %v3044_v38  ;;  %4370 = vrcp.f32 %v3187_v59 }
0x16f7   :  { %v3220_v52 = vpop.f32.mrf.mxu3  ;;  %v3049_v44 = vpack.c.bf16 %v3045_v53, %v3045_v53  ;;  %4372 = vrcp.f32 %v3184_v58 }
0x16f8   :  { %v3077_v54 = vunpack.c.l.b16 %v3048_v40 }
0x16f9   :  { %v3078_v23 = vunpack.c.l.b16 %v3049_v44 }
0x16fb   :  { %v3079_v20 = vpack.c.b16 %v3078_v23, %v3077_v54 }
0x16fc   :  { %v4371_v19 = vpop.eup %4370 }
0x16fd   :  { %v3231_v9 = vpop.permute.xlu2 %3230  ;;  %v4373_v49 = vpop.eup %4372  ;;  %v3195_v17 = vmul.f32 %v4371_v19, %v5773_v16 }
0x16fe   :  { %v3194_v24 = vmul.f32 %v4373_v49, %v5771_v32 }
0x16ff   :  { %v3222_v51 = vpop.f32.mrf.mxu3  ;;  %v3199_v36 = vpack.c.bf16 %v3195_v17, %v3195_v17 }
0x1700   :  { %v4094_v31 = vpack.i.bf16 %v3222_v51, %v3220_v52  ;;  %v3198_v0 = vpack.c.bf16 %v3194_v24, %v3194_v24 }
0x1701   :  { %v3228_v2 = vunpack.c.l.b16 %v3199_v36 }
0x1702   :  { %4095 = vrot.lane.b32.xlu1 %v4094_v31, %s5958_s12  ;;  %v3227_v13 = vunpack.c.l.b16 %v3198_v0 }
0x1704   :  { %v3081_v62 = vpop.permute.xlu1 %3080  ;;  %v3229_v1 = vpack.c.b16 %v3228_v2, %v3227_v13 }
0x1705   :  { %3093 = vmatpush.bf16.msra.mxu0 %v3081_v62 }
0x1708   :  { %3889 = vmatmul.msk.bf16.vlgmr.msra.gmra.mxu0 %vm480_vm2, %v3079_v20 }
0x1709   :  { %3243 = vmatpush.bf16.msrb.mxu0 %v3231_v9 }
0x1718   :  { %3893 = vmatmul.msk.bf16.vlgmr.msrb.gmra.mxu0 %vm480_vm2, %v3229_v1 }
0x172c   :  { %v4086_v32 = vpop.permute.xlu1 %4085 }
0x172d   :  { %v4088_v11 = vunpack.i.h.bf16 %v4086_v32  ;;  %v4087_v47 = vunpack.i.l.bf16 %v4086_v32 }
0x172f   :  { %v3299_v29 = vsel %vm428_vm15, %v5785_v27, %v4088_v11  ;;  %v3298_v30 = vsel %vm428_vm15, %v5783_v45, %v4087_v47 }
0x174c   :  { %v4091_v10 = vpop.permute.xlu2 %4090 }
0x174d   :  { %v4093_v12 = vunpack.i.h.bf16 %v4091_v10  ;;  %v4092_v15 = vunpack.i.l.bf16 %v4091_v10 }
0x174f   :  { %v3303_v37 = vsel %vm480_vm2, %v3299_v29, %v4093_v12  ;;  %v3302_v33 = vsel %vm480_vm2, %v3298_v30, %v4092_v15 }
0x1761   :  { %v2795_v16 = vpop.f32.mrf.mxu0 }
0x1769   :  { %v2797_v21 = vpop.f32.mrf.mxu0 }
0x1771   :  { %v2945_v14 = vpop.f32.mrf.mxu0 }
0x1774   :  { %v4096_v18 = vpop.permute.xlu1 %4095 }
0x1775   :  { %v4098_v22 = vunpack.i.h.bf16 %v4096_v18  ;;  %v4097_v43 = vunpack.i.l.bf16 %v4096_v18 }
0x1777   :  { %v3306_v55 = vsel %vm1085_vm3, %v3302_v33, %v4097_v43  ;;  %v3307_v56 = vsel %vm1085_vm3, %v3303_v37, %v4098_v22 }
0x1778   :  { %v3310_v41 = vpack.c.bf16 %v3307_v56, %v3306_v55  ;;  %v3989_v55 = vld [vmem:[%s5925_s8 + $0x28] sm:$0xff] }
0x1779   :  { %v2947_v63 = vpop.f32.mrf.mxu0  ;;  %3509 = vmatpush.bf16.msrb.mxu2 %v3989_v55 }
0x177a   :  { %v4099_v3 = vpack.i.bf16 %v2947_v63, %v2945_v14  ;;  %3906 = vmatmul.msk.bf16.vlgmr.msra.gmra.mxu1 %vm260_vm1, %v3310_v41 }
0x177c   :  { %4100 = vrot.lane.b32.xlu2 %v4099_v3, %s5954_s13 }
0x1785   :  { %v3095_v27 = vpop.f32.mrf.mxu0 }
0x178d   :  { %v3097_v6 = vpop.f32.mrf.mxu0 }
0x178e   :  { %v4104_v45 = vpack.i.bf16 %v3097_v6, %v3095_v27  ;;  %v3988_v27 = vld [vmem:[%s5925_s8 + $0x20] sm:$0xff] }
0x178f   :  { %3510 = vmatpush.bf16.msrb.mxu2 %v3988_v27 }
0x1790   :  { %4105 = vrot.lane.b32.xlu1 %v4104_v45, %s5955_s3 }
0x1795   :  { %v3245_v4 = vpop.f32.mrf.mxu0 }
0x179d   :  { %v3247_v25 = vpop.f32.mrf.mxu0 }
0x179e   :  { %v4109_v34 = vpack.i.bf16 %v3247_v25, %v3245_v4 }
0x17a0   :  { %4110 = vrot.lane.b32.xlu0 %v4109_v34, %s5958_s12 }
0x17d6   :  { %v4101_v53 = vpop.permute.xlu2 %4100 }
0x17d7   :  { %v4103_v59 = vunpack.i.h.bf16 %v4101_v53  ;;  %v4102_v40 = vunpack.i.l.bf16 %v4101_v53 }
0x17d9   :  { %v3301_v31 = vsel %vm428_vm15, %v2797_v21, %v4103_v59  ;;  %v3300_v54 = vsel %vm428_vm15, %v2795_v16, %v4102_v40  ;;  %v4135_v40 = vld [vmem:[#allocation13 + $0x2] ss:$0 sm:$0xff] }
0x17f7   :  { %v3344_v39 = vpop.f32.mrf.mxu1 }
0x17f8   :  { %v3354_v50 = vadd.f32 %v3344_v39, %v5535_v42 }
0x17fa   :  { %v5822_v8 = vadd.f32 %v4134_v46, %v3354_v50 }
0x17fc   :  { %v3371_v57 = vsel %vm260_vm1, %v5822_v8, 0.0 }
0x17fd   :  { %3372 = vadd.xlane.f32.xlu2 %v3371_v57 }
0x17ff   :  { %v3346_v28 = vpop.f32.mrf.mxu1 }
0x1800   :  { %v3355_v26 = vadd.f32 %v3346_v28, %v5540_v7 }
0x1802   :  { %v5827_v52 = vadd.f32 %v4134_v46, %v3355_v26  ;;  %v4106_v58 = vpop.permute.xlu1 %4105 }
0x1803   :  { %v4108_v42 = vunpack.i.h.bf16 %v4106_v58  ;;  %v4107_v44 = vunpack.i.l.bf16 %v4106_v58 }
0x1804   :  { %v3374_v38 = vsel %vm260_vm1, %v5827_v52, 0.0 }
0x1805   :  { %3375 = vadd.xlane.f32.xlu1 %v3374_v38  ;;  %v3304_v7 = vsel %vm480_vm2, %v3300_v54, %v4107_v44  ;;  %v3305_v9 = vsel %vm480_vm2, %v3301_v31, %v4108_v42  ;;  %v4136_v31 = vld [vmem:[%s5932_s15 + $0x2] ss:$0 sm:$0xff] }
0x1812   :  { %v4111_v51 = vpop.permute.xlu0 %4110 }
0x1813   :  { %v4113_v23 = vunpack.i.h.bf16 %v4111_v51  ;;  %v4112_v62 = vunpack.i.l.bf16 %v4111_v51 }
0x1815   :  { %v3308_v19 = vsel %vm1085_vm3, %v3304_v7, %v4112_v62  ;;  %v3309_v20 = vsel %vm1085_vm3, %v3305_v9, %v4113_v23 }
0x1816   :  { %v3311_v49 = vpack.c.bf16 %v3309_v20, %v3308_v19 }
0x1818   :  { %3907 = vmatmul.msk.bf16.gmra.mxu1 %vm260_vm1, %v3311_v49 }
0x1870   :  { %v3373_v17 = vpop.xlane.xlu2 %3372 }
0x1871   :  { %v3383_v24 = vmul.f32 %v3373_v17, %v4805_v35 }
0x1873   :  { %v3387_v36 = vsub.f32 %v5822_v8, %v3383_v24 }
0x1875   :  { %v3391_v0 = vmul.f32 %v3387_v36, %v3387_v36 }
0x1877   :  { %v3395_v2 = vsel %vm260_vm1, %v3391_v0, 0.0 }
0x1878   :  { %3396 = vadd.xlane.f32.xlu1 %v3395_v2  ;;  %v3376_v16 = vpop.xlane.xlu1 %3375 }
0x1879   :  { %v3384_v32 = vmul.f32 %v3376_v16, %v4805_v35 }
0x187b   :  { %v3388_v47 = vsub.f32 %v5827_v52, %v3384_v32 }
0x1895   :  { %v3349_v13 = vpop.f32.mrf.mxu1 }
0x1896   :  { %v3356_v1 = vadd.f32 %v3349_v13, %v5545_v60  ;;  %v3392_v60 = vmul.f32 %v3388_v47, %v3388_v47 }
0x1898   :  { %v5842_v5 = vadd.f32 %v4134_v46, %v3356_v1  ;;  %v3398_v12 = vsel %vm260_vm1, %v3392_v60, 0.0 }
0x189a   :  { %v3377_v48 = vsel %vm260_vm1, %v5842_v5, 0.0 }
0x189b   :  { %3378 = vadd.xlane.f32.xlu0 %v3377_v48 }
0x189d   :  { %v3351_v21 = vpop.f32.mrf.mxu1 }
0x189e   :  { %v3357_v10 = vadd.f32 %v3351_v21, %v5550_v61 }
0x18a0   :  { %v5848_v11 = vadd.f32 %v4134_v46, %v3357_v10 }
0x18a2   :  { %v3380_v14 = vsel %vm260_vm1, %v5848_v11, 0.0 }
0x18a3   :  { %3381 = vadd.xlane.f32.xlu2 %v3380_v14  ;;  %v3993_v14 = vld [vmem:[%s5927_s10 + $0x58] sm:$0xff] }
0x18a4   :  { %3571 = vmatpush.bf16.msrb.mxu3 %v3993_v14 }
0x18ab   :  { %3399 = vadd.xlane.f32.xlu2 %v3398_v12 }
0x18eb   :  { %v3397_v15 = vpop.xlane.xlu1 %3396 }
0x18ec   :  { %v3407_v18 = vmul.f32 %v3397_v15, %v4805_v35  ;;  %v3992_v15 = vld [vmem:[%s5927_s10 + $0x50] sm:$0xff] }
0x18ed   :  { %3572 = vmatpush.bf16.msrb.mxu3 %v3992_v15 }
0x18ee   :  { %v3411_v29 = vadd.f32 1e-05, %v3407_v18 }
0x18f0   :  { %4374 = vrsqrt.f32 %v3411_v29  ;;  %vm3421_vm2 = vweird.f32 %v3411_v29 }
0x18f6   :  { %v4375_v56 = vpop.eup %4374 }
0x18f7   :  { %v3416_v3 = vmul.f32 %v4375_v56, %v3411_v29  ;;  %vm3422_vm15 = vweird.f32 %v4375_v56 }
0x18f8   :  { %vm3423_vm3 = vmor %vm3421_vm2, %vm3422_vm15 }
0x18f9   :  { %v3417_v4 = vmul.f32 %v4375_v56, %v3416_v3 }
0x18fb   :  { %v3418_v39 = vmul.f32 0.5, %v3417_v4 }
0x18fd   :  { %v3419_v50 = vsub.f32 1.5, %v3418_v39 }
0x18ff   :  { %v3420_v28 = vmul.f32 %v4375_v56, %v3419_v50 }
0x1901   :  { %v3424_v53 = vsel %vm3423_vm3, %v4375_v56, %v3420_v28 }
0x1902   :  { %v3455_v42 = vmul.f32 %v3424_v53, %v3387_v36 }
0x1904   :  { %v3462_v54 = vmul.f32 %v4135_v40, %v3455_v42  ;;  %v4138_v42 = vld [vmem:[#allocation8 + $0x2] ss:$0 sm:$0xff] }
0x1906   :  { %v3469_v7 = vadd.f32 %v4136_v31, %v3462_v54 }
0x190e   :  { %v3379_v30 = vpop.xlane.xlu0 %3378 }
0x190f   :  { %v3385_v22 = vmul.f32 %v3379_v30, %v4805_v35 }
0x1911   :  { %v5857_v61 = vsub.f32 %v5842_v5, %v3385_v22 }
0x1913   :  { %v3393_v43 = vmul.f32 %v5857_v61, %v5857_v61 }
0x1915   :  { %v3401_v37 = vsel %vm260_vm1, %v3393_v43, 0.0 }
0x1916   :  { %3402 = vadd.xlane.f32.xlu1 %v3401_v37  ;;  %v3382_v33 = vpop.xlane.xlu2 %3381  ;;  %v3991_v37 = vld [vmem:[%s5927_s10 + $0x48] sm:$0xff] }
0x1917   :  { %v3386_v41 = vmul.f32 %v3382_v33, %v4805_v35  ;;  %3573 = vmatpush.bf16.msrb.mxu3 %v3991_v37 }
0x1919   :  { %v5867_v63 = vsub.f32 %v5848_v11, %v3386_v41 }
0x191b   :  { %v3394_v6 = vmul.f32 %v5867_v63, %v5867_v63 }
0x191d   :  { %v3404_v45 = vsel %vm260_vm1, %v3394_v6, 0.0 }
0x191e   :  { %3405 = vadd.xlane.f32.xlu2 %v3404_v45  ;;  %v3400_v25 = vpop.xlane.xlu2 %3399 }
0x191f   :  { %v3408_v34 = vmul.f32 %v3400_v25, %v4805_v35 }
0x1921   :  { %v3412_v46 = vadd.f32 1e-05, %v3408_v34 }
0x1923   :  { %4376 = vrsqrt.f32 %v3412_v46  ;;  %vm3431_vm9 = vweird.f32 %v3412_v46 }
0x1929   :  { %v4377_v57 = vpop.eup %4376 }
0x192a   :  { %v3426_v26 = vmul.f32 %v4377_v57, %v3412_v46  ;;  %vm3432_vm8 = vweird.f32 %v4377_v57 }
0x192b   :  { %vm3433_vm10 = vmor %vm3431_vm9, %vm3432_vm8 }
0x192c   :  { %v3427_v38 = vmul.f32 %v4377_v57, %v3426_v26 }
0x192e   :  { %v3428_v58 = vmul.f32 0.5, %v3427_v38 }
0x1930   :  { %v3429_v59 = vsub.f32 1.5, %v3428_v58 }
0x1932   :  { %v3430_v44 = vmul.f32 %v4377_v57, %v3429_v59 }
0x1934   :  { %v3434_v51 = vsel %vm3433_vm10, %v4377_v57, %v3430_v44 }
0x1935   :  { %v3456_v23 = vmul.f32 %v3434_v51, %v3388_v47 }
0x1937   :  { %v3463_v62 = vmul.f32 %v4135_v40, %v3456_v23 }
0x1939   :  { %v3470_v9 = vadd.f32 %v4136_v31, %v3463_v62  ;;  %v4638_v62 = vmov 16.0  }
0x193b   :  { %v3473_v19 = vpack.c.bf16 %v3470_v9, %v3469_v7  ;;  %v3995_v7 = vld [vmem:[#allocation14 + $0x8] sm:$0xff] }
0x193c   :  { %3664 = vmatpush.bf16.msra.mxu0 %v3995_v7 }
0x193d   :  { %3923 = vmatmul.msk.bf16.vlgmr.msrb.gmra.mxu2 %vm260_vm1, %v3473_v19 }
0x1989   :  { %v3403_v20 = vpop.xlane.xlu1 %3402 }
0x198a   :  { %v3409_v49 = vmul.f32 %v3403_v20, %v4805_v35  ;;  %v3994_v20 = vld [vmem:[#allocation14] sm:$0xff] }
0x198b   :  { %3665 = vmatpush.bf16.msra.mxu0 %v3994_v20 }
0x198c   :  { %v3413_v17 = vadd.f32 1e-05, %v3409_v49 }
0x198e   :  { %4378 = vrsqrt.f32 %v3413_v17  ;;  %vm3441_vm12 = vweird.f32 %v3413_v17 }
0x1991   :  { %v3406_v24 = vpop.xlane.xlu2 %3405 }
0x1992   :  { %v3410_v36 = vmul.f32 %v3406_v24, %v4805_v35 }
0x1994   :  { %v4379_v0 = vpop.eup %4378  ;;  %v3414_v2 = vadd.f32 1e-05, %v3410_v36 }
0x1995   :  { %v3436_v13 = vmul.f32 %v4379_v0, %v3413_v17  ;;  %vm3442_vm11 = vweird.f32 %v4379_v0 }
0x1996   :  { %4380 = vrsqrt.f32 %v3414_v2  ;;  %vm3443_vm13 = vmor %vm3441_vm12, %vm3442_vm11  ;;  %vm3451_vm4 = vweird.f32 %v3414_v2 }
0x1997   :  { %v3437_v1 = vmul.f32 %v4379_v0, %v3436_v13  ;;  %4382 = vrcp.f32 %v4638_v62 }
0x1999   :  { %v3438_v48 = vmul.f32 0.5, %v3437_v1 }
0x199b   :  { %v3439_v16 = vsub.f32 1.5, %v3438_v48 }
0x199c   :  { %v4381_v21 = vpop.eup %4380 }
0x199d   :  { %v3440_v32 = vmul.f32 %v4379_v0, %v3439_v16  ;;  %v3446_v10 = vmul.f32 %v4381_v21, %v3414_v2  ;;  %vm3452_vm14 = vweird.f32 %v4381_v21  ;;  %v4383_v49 = vpop.eup %4382 }
0x199e   :  { %vm3453_vm5 = vmor %vm3451_vm4, %vm3452_vm14 }
0x199f   :  { %v3447_v47 = vmul.f32 %v4381_v21, %v3446_v10  ;;  %v3444_v60 = vsel %vm3443_vm13, %v4379_v0, %v3440_v32 }
0x19a0   :  { %v3457_v18 = vmul.f32 %v3444_v60, %v5857_v61  ;;  %v3990_v61 = vld [vmem:[%s5927_s10 + $0x40] sm:$0xff] }
0x19a1   :  { %v3448_v35 = vmul.f32 0.5, %v3447_v47  ;;  %3574 = vmatpush.bf16.msrb.mxu3 %v3990_v61 }
0x19a2   :  { %v3464_v43 = vmul.f32 %v4135_v40, %v3457_v18 }
0x19a3   :  { %v3449_v12 = vsub.f32 1.5, %v3448_v35 }
0x19a4   :  { %v3471_v55 = vadd.f32 %v4136_v31, %v3464_v43 }
0x19a5   :  { %v3450_v29 = vmul.f32 %v4381_v21, %v3449_v12 }
0x19a7   :  { %v3454_v30 = vsel %vm3453_vm5, %v4381_v21, %v3450_v29 }
0x19a8   :  { %v3458_v22 = vmul.f32 %v3454_v30, %v5867_v63  ;;  %v4137_v63 = vld [vmem:[%s5926_s9 + $0x2] ss:$0 sm:$0xff] }
0x19aa   :  { %v3465_v33 = vmul.f32 %v4135_v40, %v3458_v22 }
0x19ac   :  { %v3472_v56 = vadd.f32 %v4136_v31, %v3465_v33 }
0x19ae   :  { %v3474_v41 = vpack.c.bf16 %v3472_v56, %v3471_v55 }
0x19b0   :  { %3924 = vmatmul.msk.bf16.gmra.mxu2 %vm260_vm1, %v3474_v41  ;;  %v4139_v41 = vld [vmem:[%s5934_s17] ss:$0 sm:$0xff] }
0x19c0   :  { %v3512_v3 = vpop.f32.mrf.mxu2 }
0x19c1   :  { %v3513_v27 = vadd.f32 %v4137_v63, %v3512_v3 }
0x19c3   :  { %v3522_v4 = vmax.f32 %v3513_v27, 0.0 }
0x19c8   :  { %v3514_v6 = vpop.f32.mrf.mxu2 }
0x19c9   :  { %v3515_v45 = vadd.f32 %v4137_v63, %v3514_v6 }
0x19cb   :  { %v3523_v25 = vmax.f32 %v3515_v45, 0.0 }
0x19cd   :  { %v3526_v34 = vpack.c.bf16 %v3523_v25, %v3522_v4 }
0x19cf   :  { %3949 = vmatmul.msk.bf16.vlgmr.msrb.gmra.mxu3 %vm226_vm0, %v3526_v34 }
0x1a33   :  { %v3517_v46 = vpop.f32.mrf.mxu2 }
0x1a34   :  { %v3518_v39 = vadd.f32 %v4137_v63, %v3517_v46 }
0x1a36   :  { %v3524_v28 = vmax.f32 %v3518_v39, 0.0 }
0x1a3b   :  { %v3519_v50 = vpop.f32.mrf.mxu2 }
0x1a3c   :  { %v3520_v57 = vadd.f32 %v4137_v63, %v3519_v50 }
0x1a3e   :  { %v3525_v26 = vmax.f32 %v3520_v57, 0.0 }
0x1a40   :  { %v3527_v38 = vpack.c.bf16 %v3525_v26, %v3524_v28 }
0x1a42   :  { %3950 = vmatmul.msk.bf16.gmra.mxu3 %vm226_vm0, %v3527_v38  ;;  %vm3622_vm0 = vweird.f32 %v4383_v49 }
0x1a52   :  { %v3576_v53 = vpop.f32.mrf.mxu3 }
0x1a53   :  { %v3586_v40 = vadd.f32 %v3576_v53, %v5822_v8 }
0x1a55   :  { %v3595_v51 = vadd.f32 %v4138_v42, %v3586_v40 }
0x1a57   :  { %v3599_v54 = vsel %vm260_vm1, %v3595_v51, 0.0 }
0x1a5a   :  { %v3578_v58 = vpop.f32.mrf.mxu3 }
0x1a5b   :  { %v3587_v59 = vadd.f32 %v3578_v58, %v5827_v52  ;;  %v3618_v52 = vmul.f32 16.0, %v4383_v49 }
0x1a5d   :  { %v3596_v44 = vadd.f32 %v4138_v42, %v3587_v59  ;;  %v3619_v0 = vsub.f32 1.0, %v3618_v52 }
0x1a5f   :  { %v3600_v31 = vsel %vm260_vm1, %v3596_v44, 0.0  ;;  %v3620_v16 = vmul.f32 %v4383_v49, %v3619_v0 }
0x1a60   :  { %v3601_v23 = vadd.f32 %v3600_v31, %v3599_v54 }
0x1a61   :  { %v3621_v60 = vadd.f32 %v4383_v49, %v3620_v16 }
0x1a62   :  { %v3602_v9 = vrot.slane %v3601_v23, 4 }
0x1a63   :  { %v3623_v15 = vsel %vm3622_vm0, %v4383_v49, %v3621_v60 }
0x1a64   :  { %v3603_v17 = vadd.f32 %v3602_v9, %v3601_v23 }
0x1a66   :  { %v3604_v24 = vrot.slane %v3603_v17, 2 }
0x1a68   :  { %v3605_v48 = vadd.f32 %v3604_v24, %v3603_v17 }
0x1a6a   :  { %v3606_v47 = vrot.slane %v3605_v48, 1 }
0x1ac5   :  { %v3581_v19 = vpop.f32.mrf.mxu3 }
0x1ac6   :  { %v3588_v8 = vadd.f32 %v3581_v19, %v5842_v5  ;;  %v3607_v5 = vadd.f32 %v3606_v47, %v3605_v48 }
0x1ac8   :  { %v3597_v2 = vadd.f32 %v4138_v42, %v3588_v8  ;;  %v3624_v29 = vmul.f32 %v3623_v15, %v3607_v5 }
0x1aca   :  { %v3608_v21 = vsel %vm260_vm1, %v3597_v2, 0.0  ;;  %v3626_v22 = vpack.c.bf16 %v3624_v29, %v3624_v29 }
0x1acc   :  { %v3638_v33 = vunpack.c.l.b16 %v3626_v22 }
0x1acd   :  { %v3583_v36 = vpop.f32.mrf.mxu3 }
0x1ace   :  { %v3589_v13 = vadd.f32 %v3583_v36, %v5848_v11 }
0x1ad0   :  { %v3598_v1 = vadd.f32 %v4138_v42, %v3589_v13 }
0x1ad2   :  { %v3609_v32 = vsel %vm260_vm1, %v3598_v1, 0.0 }
0x1ad3   :  { %v3610_v10 = vadd.f32 %v3609_v32, %v3608_v21 }
0x1ad5   :  { %v3611_v14 = vrot.slane %v3610_v10, 4 }
0x1ad7   :  { %v3612_v35 = vadd.f32 %v3611_v14, %v3610_v10 }
0x1ad9   :  { %v3613_v12 = vrot.slane %v3612_v35, 2 }
0x1adb   :  { %v3614_v18 = vadd.f32 %v3613_v12, %v3612_v35 }
0x1add   :  { %v3615_v30 = vrot.slane %v3614_v18, 1 }
0x1adf   :  { %v3616_v11 = vadd.f32 %v3615_v30, %v3614_v18 }
0x1ae1   :  { %v3625_v43 = vmul.f32 %v3623_v15, %v3616_v11 }
0x1ae3   :  { %v3627_v37 = vpack.c.bf16 %v3625_v43, %v3625_v43 }
0x1ae5   :  { %v3639_v55 = vunpack.c.l.b16 %v3627_v37 }
0x1ae7   :  { %v3641_v56 = vsel %vm3640_vm6, %v3639_v55, %v3638_v33 }
0x1ae8   :  { %v3642_v61 = vpack.c.b16 %v3641_v56, %v3641_v56 }
0x1aea   :  { %3959 = vmatmul.msk.bf16.vlgmr.msra.gmra.mxu0 %vm260_vm1, %v3642_v61 }
0x1b67   :  { %v3667_v3 = vpop.f32.mrf.mxu0 }
0x1b68   :  { %v3668_v63 = vadd.f32 %v4139_v41, %v3667_v3 }
0x1b6a   :  { %3671 = vst [vmem:[#allocation16] sm:$0x3] %v3668_v63 }
0x1b6b   :  { %3682 = dma.vmem_to_hbm [thread:$0]  %s3678_s4, 32, %s3680_s25, [#allocation4]  }
0x1b6f   :  { %v3669_v27 = vpop.f32.mrf.mxu0 }
0x1b70   :  { %4610 = dma.done.wait [#allocation4], 32  }
0x1b71   :  { %4611 = vsyncadd [#allocation4], 4294967264 }
0x1b72   :  { %3687 = vsyncpa [#allocation3], 1 }
0x1b73   :  { %3688 = vsyncpa [#allocation6], 1 }
0x1b74   :  { %3689 = vsyncpa [#allocation9], 1 }
0x1b75   :  { %3690 = vsyncpa [#allocation12], 1 }
0x1b76   :  { %3691 = vsyncpa [#allocation15], 1 }
0x1b77   :  { %3692 = vsyncpa [#allocation4], 1 }

</bundles_post_ra>
